<compile_context>
chip_gen: v6e
topology: v6e:2x2x1
jax: 0.10.0
libtpu: 0.0.40
codegen_flags: <defaults>
</compile_context>

<pallas_src>
import functools

import jax
import jax.numpy as jnp
import numpy as np
from jax.experimental import pallas as pl
from jax.experimental.pallas import tpu as pltpu


# ----------------------------- gather matrices ------------------------------ #

def _gather_matrix(L, K, pad, stride, circular):
    """Per-tap 0/1 matrices G[k] (L, L_out): x @ G[k] selects x[:, stride*j + k - pad]
    (circular wrap or zero if out of range). Encodes padding + stride for a conv tap."""
    L_out = (L + 2 * pad - K) // stride + 1
    G = np.zeros((K, L, L_out), np.float32)
    for k in range(K):
        for j in range(L_out):
            i = stride * j + k - pad
            if circular:
                G[k, i % L, j] = 1.0
            elif 0 <= i < L:
                G[k, i, j] = 1.0
    return jnp.asarray(G)


# ------------------------------- Pallas kernel ------------------------------ #

def _elu(y):
    # min() keeps exp() finite in the untaken branch (forward-identical to ELU).
    return jnp.where(y > 0, y, jnp.exp(jnp.minimum(y, 0.0)) - 1.0)


def _conv_g(x, w_ref, g_ref):
    """Conv1d (bias-less) with padding/stride baked into gather matrices.

    x:     (C_in, L) f32 value
    w_ref: (K, C_out, C_in) per-tap weight matrices
    g_ref: (K, L, L_out)   per-tap gather matrices
    returns (C_out, L_out) f32
    """
    K, C_out, _ = w_ref.shape
    L_out = g_ref.shape[2]
    acc = jnp.zeros((C_out, L_out), jnp.float32)
    for k in range(K):  # static unroll over taps
        xk = jnp.dot(x, g_ref[k], preferred_element_type=jnp.float32)      # (C_in, L_out)
        acc = acc + jnp.dot(w_ref[k], xk, preferred_element_type=jnp.float32)
    return acc


def _encoder_kernel(*refs):
    """Whole Encoder forward for one batch element (grid axis = batch)."""
    o_ref = refs[-1]
    x_ref, g_in, w_in, b_in = refs[0], refs[1], refs[2], refs[3]

    # conv_in (k=7, pad=3, zero padding) + bias + ELU
    h = _conv_g(x_ref[0], w_in, g_in)
    h = _elu(h + b_in[...])

    idx = 4
    for _ in range(4):  # four ResDown blocks, fully unrolled
        g_s, g_d, w1, s1, t1, w2, w3, s2, t2 = refs[idx:idx + 9]
        idx += 9
        skip = _conv_g(h, w3, g_s)                  # stride-2 circular skip conv (bias folded)
        u = _conv_g(h, w1, g_s)                     # stride-2 circular conv1    (bias folded)
        u = _elu(u * s1[...] + t1[...])             # bn1 (eval) + ELU
        u = _conv_g(u, w2, g_d)                     # stride-1 circular conv2    (bias folded)
        h = _elu((u + skip) * s2[...] + t2[...])    # residual add + bn2 (eval) + ELU

    # adaptive_avg_pool1d(x, 1) epilogue
    o_ref[0] = jnp.mean(h, axis=-1, keepdims=True)


# ------------------------------ forward wrapper ----------------------------- #

def encoder_forward(x, params, z_dim, *, training=False, key=None):
    B, channels, L = x.shape
    ch = params["conv_in"]["w"].shape[0]
    c_final = 16 * ch  # == 2 * z_dim

    def tapw(w):  # (C_out, C_in, K) -> (K, C_out, C_in)
        return jnp.transpose(w, (2, 0, 1))

    inputs = [x.astype(jnp.float32)]
    # conv_in: k=7, pad=3, stride 1, zero padding
    inputs += [
        _gather_matrix(L, 7, 3, 1, False),
        tapw(params["conv_in"]["w"]),
        params["conv_in"]["b"].reshape(-1, 1),
    ]
    l_cur = L
    for name in ("rd1", "rd2", "rd3", "rd4"):
        p = params[name]
        g_s = _gather_matrix(l_cur, 3, 1, 2, True)   # stride-2 circular (conv1 & conv3)
        l_cur = l_cur // 2
        g_d = _gather_matrix(l_cur, 3, 1, 1, True)   # stride-1 circular (conv2)
        s1 = p["bn1"]["scale"]
        t1 = p["bn1"]["shift"] + s1 * p["conv1"]["b"]                       # fold conv1 bias
        s2 = p["bn2"]["scale"]
        t2 = p["bn2"]["shift"] + s2 * (p["conv2"]["b"] + p["conv3"]["b"])   # fold conv2+conv3 bias
        inputs += [
            g_s, g_d,
            tapw(p["conv1"]["w"]), s1.reshape(-1, 1), t1.reshape(-1, 1),
            tapw(p["conv2"]["w"]), tapw(p["conv3"]["w"]),
            s2.reshape(-1, 1), t2.reshape(-1, 1),
        ]

    def full_spec(a):
        n = a.ndim
        return pl.BlockSpec(a.shape, lambda b, n=n: (0,) * n)

    in_specs = [pl.BlockSpec((1, channels, L), lambda b: (b, 0, 0))]
    in_specs += [full_spec(a) for a in inputs[1:]]

    pooled = pl.pallas_call(
        _encoder_kernel,
        out_shape=jax.ShapeDtypeStruct((B, c_final, 1), jnp.float32),
        grid=(B,),
        in_specs=in_specs,
        out_specs=pl.BlockSpec((1, c_final, 1), lambda b: (b, 0, 0)),
        compiler_params=pltpu.CompilerParams(dimension_semantics=("parallel",)),
    )(*inputs)

    mu = pooled[:, :z_dim]
    log_var = pooled[:, z_dim:]
    if training:
        std = jnp.exp(0.5 * log_var)
        eps = jax.random.normal(key, std.shape, std.dtype)
        z = mu + eps * std
    else:  # eval: output mu as the encoding
        z = mu
    return z, mu, log_var


# ----------------------------- parameter setup ------------------------------ #

def _init_conv(key, c_out, c_in, k):
    kw, kb = jax.random.split(key)
    return {
        "w": 0.1 * jax.random.normal(kw, (c_out, c_in, k), jnp.float32),
        "b": 0.1 * jax.random.normal(kb, (c_out,), jnp.float32),
    }


def _init_bn(key, c, eps=1e-4):
    k1, k2, k3, k4 = jax.random.split(key, 4)
    gamma = 1.0 + 0.1 * jax.random.normal(k1, (c,), jnp.float32)
    beta = 0.1 * jax.random.normal(k2, (c,), jnp.float32)
    r_mean = 0.1 * jax.random.normal(k3, (c,), jnp.float32)
    r_var = 1.0 + 0.1 * jnp.abs(jax.random.normal(k4, (c,), jnp.float32))
    scale = gamma / jnp.sqrt(r_var + eps)  # eval-mode BN folded to affine
    shift = beta - r_mean * scale
    return {"scale": scale, "shift": shift}


def _init_resdown(key, c_in, c_out, k=3):
    ks = jax.random.split(key, 5)
    return {
        "conv1": _init_conv(ks[0], c_out // 2, c_in, k),
        "bn1": _init_bn(ks[1], c_out // 2),
        "conv2": _init_conv(ks[2], c_out, c_out // 2, k),
        "bn2": _init_bn(ks[3], c_out),
        "conv3": _init_conv(ks[4], c_out, c_in, k),
    }


def init_encoder_params(key, channels, ch, z_dim):
    assert ch * 8 == z_dim, f"z_dim must be 8 * {ch}"
    ks = jax.random.split(key, 5)
    return {
        "conv_in": _init_conv(ks[0], ch, channels, 7),
        "rd1": _init_resdown(ks[1], ch, 2 * ch),
        "rd2": _init_resdown(ks[2], 2 * ch, 4 * ch),
        "rd3": _init_resdown(ks[3], 4 * ch, 8 * ch),
        "rd4": _init_resdown(ks[4], 8 * ch, 16 * ch),
    }


# ------------------------- plain-JAX reference check ------------------------ #

def _ref_conv1d(x, w, b, stride, padding, circular):
    mode = "wrap" if circular else "constant"
    xp = jnp.pad(x, ((0, 0), (0, 0), (padding, padding)), mode=mode)
    out = jax.lax.conv_general_dilated(
        xp, w, window_strides=(stride,), padding="VALID",
        dimension_numbers=("NCH", "OIH", "NCH"))
    return out + b[None, :, None]


def _ref_elu(x):
    return jnp.where(x > 0, x, jnp.exp(x) - 1.0)


def _ref_affine(x, s, t):
    return x * s[None, :, None] + t[None, :, None]


def _ref_forward(x, params, z_dim):
    x = _ref_elu(_ref_conv1d(x, params["conv_in"]["w"], params["conv_in"]["b"], 1, 3, False))
    for name in ("rd1", "rd2", "rd3", "rd4"):
        p = params[name]
        skip = _ref_conv1d(x, p["conv3"]["w"], p["conv3"]["b"], 2, 1, True)
        h = _ref_elu(_ref_affine(_ref_conv1d(x, p["conv1"]["w"], p["conv1"]["b"], 2, 1, True),
                                 p["bn1"]["scale"], p["bn1"]["shift"]))
        h = _ref_conv1d(h, p["conv2"]["w"], p["conv2"]["b"], 1, 1, True)
        x = _ref_elu(_ref_affine(h + skip, p["bn2"]["scale"], p["bn2"]["shift"]))
    pooled = jnp.mean(x, axis=-1, keepdims=True)
    return pooled[:, :z_dim], pooled[:, z_dim:]


# ----------------------------------- main ------------------------------------ #

if __name__ == "__main__":
    B, channels, L = 2, 4, 64          # input: (batch, channels, length), NCL
    ch, z_dim = 2, 16                  # ch * 8 == z_dim as required by Encoder

    key = jax.random.PRNGKey(0)
    k_x, k_p = jax.random.split(key)
    x = jax.random.normal(k_x, (B, channels, L), jnp.float32)
    params = init_encoder_params(k_p, channels, ch, z_dim)

    fwd = jax.jit(functools.partial(encoder_forward, z_dim=z_dim, training=False))
    z, mu, log_var = fwd(x, params)
    jax.block_until_ready((z, mu, log_var))

    assert z.shape == (B, z_dim, 1)
    assert mu.shape == (B, z_dim, 1)
    assert log_var.shape == (B, z_dim, 1)

    mu_ref, lv_ref = _ref_forward(x, params, z_dim)
    np.testing.assert_allclose(np.asarray(mu), np.asarray(mu_ref), atol=1e-2, rtol=1e-2)
    np.testing.assert_allclose(np.asarray(log_var), np.asarray(lv_ref), atol=1e-2, rtol=1e-2)

    print("KERNEL_OK")
</pallas_src>

<mosaic_0001>
module attributes {stable_mosaic.version = 11 : i64} {
  func.func @_encoder_kernel(%arg0: i32, %arg1: memref<1x4x64xf32, #tpu.memory_space<vmem>>, %arg2: memref<7x64x64xf32, #tpu.memory_space<vmem>>, %arg3: memref<7x2x4xf32, #tpu.memory_space<vmem>>, %arg4: memref<2x1xf32, #tpu.memory_space<vmem>>, %arg5: memref<3x64x32xf32, #tpu.memory_space<vmem>>, %arg6: memref<3x32x32xf32, #tpu.memory_space<vmem>>, %arg7: memref<3x2x2xf32, #tpu.memory_space<vmem>>, %arg8: memref<2x1xf32, #tpu.memory_space<vmem>>, %arg9: memref<2x1xf32, #tpu.memory_space<vmem>>, %arg10: memref<3x4x2xf32, #tpu.memory_space<vmem>>, %arg11: memref<3x4x2xf32, #tpu.memory_space<vmem>>, %arg12: memref<4x1xf32, #tpu.memory_space<vmem>>, %arg13: memref<4x1xf32, #tpu.memory_space<vmem>>, %arg14: memref<3x32x16xf32, #tpu.memory_space<vmem>>, %arg15: memref<3x16x16xf32, #tpu.memory_space<vmem>>, %arg16: memref<3x4x4xf32, #tpu.memory_space<vmem>>, %arg17: memref<4x1xf32, #tpu.memory_space<vmem>>, %arg18: memref<4x1xf32, #tpu.memory_space<vmem>>, %arg19: memref<3x8x4xf32, #tpu.memory_space<vmem>>, %arg20: memref<3x8x4xf32, #tpu.memory_space<vmem>>, %arg21: memref<8x1xf32, #tpu.memory_space<vmem>>, %arg22: memref<8x1xf32, #tpu.memory_space<vmem>>, %arg23: memref<3x16x8xf32, #tpu.memory_space<vmem>>, %arg24: memref<3x8x8xf32, #tpu.memory_space<vmem>>, %arg25: memref<3x8x8xf32, #tpu.memory_space<vmem>>, %arg26: memref<8x1xf32, #tpu.memory_space<vmem>>, %arg27: memref<8x1xf32, #tpu.memory_space<vmem>>, %arg28: memref<3x16x8xf32, #tpu.memory_space<vmem>>, %arg29: memref<3x16x8xf32, #tpu.memory_space<vmem>>, %arg30: memref<16x1xf32, #tpu.memory_space<vmem>>, %arg31: memref<16x1xf32, #tpu.memory_space<vmem>>, %arg32: memref<3x8x4xf32, #tpu.memory_space<vmem>>, %arg33: memref<3x4x4xf32, #tpu.memory_space<vmem>>, %arg34: memref<3x16x16xf32, #tpu.memory_space<vmem>>, %arg35: memref<16x1xf32, #tpu.memory_space<vmem>>, %arg36: memref<16x1xf32, #tpu.memory_space<vmem>>, %arg37: memref<3x32x16xf32, #tpu.memory_space<vmem>>, %arg38: memref<3x32x16xf32, #tpu.memory_space<vmem>>, %arg39: memref<32x1xf32, #tpu.memory_space<vmem>>, %arg40: memref<32x1xf32, #tpu.memory_space<vmem>>, %arg41: memref<1x32x1xf32, #tpu.memory_space<vmem>>) attributes {dimension_semantics = [#tpu.dimension_semantics<parallel>], iteration_bounds = array<i64: 2>, scalar_prefetch = 0 : i64, scratch_operands = 0 : i64, tpu.core_type = #tpu.core_type<tc>, window_params = [{transform_indices = @transform_0, window_bounds = array<i64: 1, 4, 64>}, {pipeline_mode = #tpu.pipeline_mode<synchronous>, transform_indices = @transform_1, window_bounds = array<i64: 7, 64, 64>}, {pipeline_mode = #tpu.pipeline_mode<synchronous>, transform_indices = @transform_2, window_bounds = array<i64: 7, 2, 4>}, {pipeline_mode = #tpu.pipeline_mode<synchronous>, transform_indices = @transform_3, window_bounds = array<i64: 2, 1>}, {pipeline_mode = #tpu.pipeline_mode<synchronous>, transform_indices = @transform_4, window_bounds = array<i64: 3, 64, 32>}, {pipeline_mode = #tpu.pipeline_mode<synchronous>, transform_indices = @transform_5, window_bounds = array<i64: 3, 32, 32>}, {pipeline_mode = #tpu.pipeline_mode<synchronous>, transform_indices = @transform_6, window_bounds = array<i64: 3, 2, 2>}, {pipeline_mode = #tpu.pipeline_mode<synchronous>, transform_indices = @transform_7, window_bounds = array<i64: 2, 1>}, {pipeline_mode = #tpu.pipeline_mode<synchronous>, transform_indices = @transform_8, window_bounds = array<i64: 2, 1>}, {pipeline_mode = #tpu.pipeline_mode<synchronous>, transform_indices = @transform_9, window_bounds = array<i64: 3, 4, 2>}, {pipeline_mode = #tpu.pipeline_mode<synchronous>, transform_indices = @transform_10, window_bounds = array<i64: 3, 4, 2>}, {pipeline_mode = #tpu.pipeline_mode<synchronous>, transform_indices = @transform_11, window_bounds = array<i64: 4, 1>}, {pipeline_mode = #tpu.pipeline_mode<synchronous>, transform_indices = @transform_12, window_bounds = array<i64: 4, 1>}, {pipeline_mode = #tpu.pipeline_mode<synchronous>, transform_indices = @transform_13, window_bounds = array<i64: 3, 32, 16>}, {pipeline_mode = #tpu.pipeline_mode<synchronous>, transform_indices = @transform_14, window_bounds = array<i64: 3, 16, 16>}, {pipeline_mode = #tpu.pipeline_mode<synchronous>, transform_indices = @transform_15, window_bounds = array<i64: 3, 4, 4>}, {pipeline_mode = #tpu.pipeline_mode<synchronous>, transform_indices = @transform_16, window_bounds = array<i64: 4, 1>}, {pipeline_mode = #tpu.pipeline_mode<synchronous>, transform_indices = @transform_17, window_bounds = array<i64: 4, 1>}, {pipeline_mode = #tpu.pipeline_mode<synchronous>, transform_indices = @transform_18, window_bounds = array<i64: 3, 8, 4>}, {pipeline_mode = #tpu.pipeline_mode<synchronous>, transform_indices = @transform_19, window_bounds = array<i64: 3, 8, 4>}, {pipeline_mode = #tpu.pipeline_mode<synchronous>, transform_indices = @transform_20, window_bounds = array<i64: 8, 1>}, {pipeline_mode = #tpu.pipeline_mode<synchronous>, transform_indices = @transform_21, window_bounds = array<i64: 8, 1>}, {pipeline_mode = #tpu.pipeline_mode<synchronous>, transform_indices = @transform_22, window_bounds = array<i64: 3, 16, 8>}, {pipeline_mode = #tpu.pipeline_mode<synchronous>, transform_indices = @transform_23, window_bounds = array<i64: 3, 8, 8>}, {pipeline_mode = #tpu.pipeline_mode<synchronous>, transform_indices = @transform_24, window_bounds = array<i64: 3, 8, 8>}, {pipeline_mode = #tpu.pipeline_mode<synchronous>, transform_indices = @transform_25, window_bounds = array<i64: 8, 1>}, {pipeline_mode = #tpu.pipeline_mode<synchronous>, transform_indices = @transform_26, window_bounds = array<i64: 8, 1>}, {pipeline_mode = #tpu.pipeline_mode<synchronous>, transform_indices = @transform_27, window_bounds = array<i64: 3, 16, 8>}, {pipeline_mode = #tpu.pipeline_mode<synchronous>, transform_indices = @transform_28, window_bounds = array<i64: 3, 16, 8>}, {pipeline_mode = #tpu.pipeline_mode<synchronous>, transform_indices = @transform_29, window_bounds = array<i64: 16, 1>}, {pipeline_mode = #tpu.pipeline_mode<synchronous>, transform_indices = @transform_30, window_bounds = array<i64: 16, 1>}, {pipeline_mode = #tpu.pipeline_mode<synchronous>, transform_indices = @transform_31, window_bounds = array<i64: 3, 8, 4>}, {pipeline_mode = #tpu.pipeline_mode<synchronous>, transform_indices = @transform_32, window_bounds = array<i64: 3, 4, 4>}, {pipeline_mode = #tpu.pipeline_mode<synchronous>, transform_indices = @transform_33, window_bounds = array<i64: 3, 16, 16>}, {pipeline_mode = #tpu.pipeline_mode<synchronous>, transform_indices = @transform_34, window_bounds = array<i64: 16, 1>}, {pipeline_mode = #tpu.pipeline_mode<synchronous>, transform_indices = @transform_35, window_bounds = array<i64: 16, 1>}, {pipeline_mode = #tpu.pipeline_mode<synchronous>, transform_indices = @transform_36, window_bounds = array<i64: 3, 32, 16>}, {pipeline_mode = #tpu.pipeline_mode<synchronous>, transform_indices = @transform_37, window_bounds = array<i64: 3, 32, 16>}, {pipeline_mode = #tpu.pipeline_mode<synchronous>, transform_indices = @transform_38, window_bounds = array<i64: 32, 1>}, {pipeline_mode = #tpu.pipeline_mode<synchronous>, transform_indices = @transform_39, window_bounds = array<i64: 32, 1>}, {transform_indices = @transform_40, window_bounds = array<i64: 1, 32, 1>}]} {
    %c0 = arith.constant 0 : index
    %c0_0 = arith.constant 0 : index
    %c0_1 = arith.constant 0 : index
    %0 = vector.load %arg1[%c0, %c0_0, %c0_1] : memref<1x4x64xf32, #tpu.memory_space<vmem>>, vector<1x4x64xf32>
    %1 = vector.shape_cast %0 : vector<1x4x64xf32> to vector<4x64xf32>
    %cst = arith.constant 0.000000e+00 : f32
    %2 = vector.broadcast %cst : f32 to vector<2x64xf32>
    %c0_2 = arith.constant 0 : index
    %c0_3 = arith.constant 0 : index
    %c0_4 = arith.constant 0 : index
    %3 = vector.load %arg2[%c0_2, %c0_3, %c0_4] : memref<7x64x64xf32, #tpu.memory_space<vmem>>, vector<1x64x64xf32>
    %4 = vector.shape_cast %3 : vector<1x64x64xf32> to vector<64x64xf32>
    %cst_5 = arith.constant dense<0.000000e+00> : vector<4x64xf32>
    %5 = tpu.matmul %1, %4, %cst_5 {dimension_numbers = #tpu.dot_dimension_numbers<[1], [0], [0], [1], [0, 0, 1, 1], [], []>} : vector<4x64xf32>, vector<64x64xf32>, vector<4x64xf32> -> vector<4x64xf32>
    %c0_6 = arith.constant 0 : index
    %c0_7 = arith.constant 0 : index
    %c0_8 = arith.constant 0 : index
    %6 = vector.load %arg3[%c0_6, %c0_7, %c0_8] : memref<7x2x4xf32, #tpu.memory_space<vmem>>, vector<1x2x4xf32>
    %7 = vector.shape_cast %6 : vector<1x2x4xf32> to vector<2x4xf32>
    %cst_9 = arith.constant dense<0.000000e+00> : vector<2x64xf32>
    %8 = tpu.matmul %7, %5, %cst_9 {dimension_numbers = #tpu.dot_dimension_numbers<[1], [0], [0], [1], [0, 0, 1, 1], [], []>} : vector<2x4xf32>, vector<4x64xf32>, vector<2x64xf32> -> vector<2x64xf32>
    %9 = arith.addf %2, %8 : vector<2x64xf32>
    %c1 = arith.constant 1 : index
    %c0_10 = arith.constant 0 : index
    %c0_11 = arith.constant 0 : index
    %10 = vector.load %arg2[%c1, %c0_10, %c0_11] : memref<7x64x64xf32, #tpu.memory_space<vmem>>, vector<1x64x64xf32>
    %11 = vector.shape_cast %10 : vector<1x64x64xf32> to vector<64x64xf32>
    %cst_12 = arith.constant dense<0.000000e+00> : vector<4x64xf32>
    %12 = tpu.matmul %1, %11, %cst_12 {dimension_numbers = #tpu.dot_dimension_numbers<[1], [0], [0], [1], [0, 0, 1, 1], [], []>} : vector<4x64xf32>, vector<64x64xf32>, vector<4x64xf32> -> vector<4x64xf32>
    %c1_13 = arith.constant 1 : index
    %c0_14 = arith.constant 0 : index
    %c0_15 = arith.constant 0 : index
    %13 = vector.load %arg3[%c1_13, %c0_14, %c0_15] : memref<7x2x4xf32, #tpu.memory_space<vmem>>, vector<1x2x4xf32>
    %14 = vector.shape_cast %13 : vector<1x2x4xf32> to vector<2x4xf32>
    %cst_16 = arith.constant dense<0.000000e+00> : vector<2x64xf32>
    %15 = tpu.matmul %14, %12, %cst_16 {dimension_numbers = #tpu.dot_dimension_numbers<[1], [0], [0], [1], [0, 0, 1, 1], [], []>} : vector<2x4xf32>, vector<4x64xf32>, vector<2x64xf32> -> vector<2x64xf32>
    %16 = arith.addf %9, %15 : vector<2x64xf32>
    %c2 = arith.constant 2 : index
    %c0_17 = arith.constant 0 : index
    %c0_18 = arith.constant 0 : index
    %17 = vector.load %arg2[%c2, %c0_17, %c0_18] : memref<7x64x64xf32, #tpu.memory_space<vmem>>, vector<1x64x64xf32>
    %18 = vector.shape_cast %17 : vector<1x64x64xf32> to vector<64x64xf32>
    %cst_19 = arith.constant dense<0.000000e+00> : vector<4x64xf32>
    %19 = tpu.matmul %1, %18, %cst_19 {dimension_numbers = #tpu.dot_dimension_numbers<[1], [0], [0], [1], [0, 0, 1, 1], [], []>} : vector<4x64xf32>, vector<64x64xf32>, vector<4x64xf32> -> vector<4x64xf32>
    %c2_20 = arith.constant 2 : index
    %c0_21 = arith.constant 0 : index
    %c0_22 = arith.constant 0 : index
    %20 = vector.load %arg3[%c2_20, %c0_21, %c0_22] : memref<7x2x4xf32, #tpu.memory_space<vmem>>, vector<1x2x4xf32>
    %21 = vector.shape_cast %20 : vector<1x2x4xf32> to vector<2x4xf32>
    %cst_23 = arith.constant dense<0.000000e+00> : vector<2x64xf32>
    %22 = tpu.matmul %21, %19, %cst_23 {dimension_numbers = #tpu.dot_dimension_numbers<[1], [0], [0], [1], [0, 0, 1, 1], [], []>} : vector<2x4xf32>, vector<4x64xf32>, vector<2x64xf32> -> vector<2x64xf32>
    %23 = arith.addf %16, %22 : vector<2x64xf32>
    %c3 = arith.constant 3 : index
    %c0_24 = arith.constant 0 : index
    %c0_25 = arith.constant 0 : index
    %24 = vector.load %arg2[%c3, %c0_24, %c0_25] : memref<7x64x64xf32, #tpu.memory_space<vmem>>, vector<1x64x64xf32>
    %25 = vector.shape_cast %24 : vector<1x64x64xf32> to vector<64x64xf32>
    %cst_26 = arith.constant dense<0.000000e+00> : vector<4x64xf32>
    %26 = tpu.matmul %1, %25, %cst_26 {dimension_numbers = #tpu.dot_dimension_numbers<[1], [0], [0], [1], [0, 0, 1, 1], [], []>} : vector<4x64xf32>, vector<64x64xf32>, vector<4x64xf32> -> vector<4x64xf32>
    %c3_27 = arith.constant 3 : index
    %c0_28 = arith.constant 0 : index
    %c0_29 = arith.constant 0 : index
    %27 = vector.load %arg3[%c3_27, %c0_28, %c0_29] : memref<7x2x4xf32, #tpu.memory_space<vmem>>, vector<1x2x4xf32>
    %28 = vector.shape_cast %27 : vector<1x2x4xf32> to vector<2x4xf32>
    %cst_30 = arith.constant dense<0.000000e+00> : vector<2x64xf32>
    %29 = tpu.matmul %28, %26, %cst_30 {dimension_numbers = #tpu.dot_dimension_numbers<[1], [0], [0], [1], [0, 0, 1, 1], [], []>} : vector<2x4xf32>, vector<4x64xf32>, vector<2x64xf32> -> vector<2x64xf32>
    %30 = arith.addf %23, %29 : vector<2x64xf32>
    %c4 = arith.constant 4 : index
    %c0_31 = arith.constant 0 : index
    %c0_32 = arith.constant 0 : index
    %31 = vector.load %arg2[%c4, %c0_31, %c0_32] : memref<7x64x64xf32, #tpu.memory_space<vmem>>, vector<1x64x64xf32>
    %32 = vector.shape_cast %31 : vector<1x64x64xf32> to vector<64x64xf32>
    %cst_33 = arith.constant dense<0.000000e+00> : vector<4x64xf32>
    %33 = tpu.matmul %1, %32, %cst_33 {dimension_numbers = #tpu.dot_dimension_numbers<[1], [0], [0], [1], [0, 0, 1, 1], [], []>} : vector<4x64xf32>, vector<64x64xf32>, vector<4x64xf32> -> vector<4x64xf32>
    %c4_34 = arith.constant 4 : index
    %c0_35 = arith.constant 0 : index
    %c0_36 = arith.constant 0 : index
    %34 = vector.load %arg3[%c4_34, %c0_35, %c0_36] : memref<7x2x4xf32, #tpu.memory_space<vmem>>, vector<1x2x4xf32>
    %35 = vector.shape_cast %34 : vector<1x2x4xf32> to vector<2x4xf32>
    %cst_37 = arith.constant dense<0.000000e+00> : vector<2x64xf32>
    %36 = tpu.matmul %35, %33, %cst_37 {dimension_numbers = #tpu.dot_dimension_numbers<[1], [0], [0], [1], [0, 0, 1, 1], [], []>} : vector<2x4xf32>, vector<4x64xf32>, vector<2x64xf32> -> vector<2x64xf32>
    %37 = arith.addf %30, %36 : vector<2x64xf32>
    %c5 = arith.constant 5 : index
    %c0_38 = arith.constant 0 : index
    %c0_39 = arith.constant 0 : index
    %38 = vector.load %arg2[%c5, %c0_38, %c0_39] : memref<7x64x64xf32, #tpu.memory_space<vmem>>, vector<1x64x64xf32>
    %39 = vector.shape_cast %38 : vector<1x64x64xf32> to vector<64x64xf32>
    %cst_40 = arith.constant dense<0.000000e+00> : vector<4x64xf32>
    %40 = tpu.matmul %1, %39, %cst_40 {dimension_numbers = #tpu.dot_dimension_numbers<[1], [0], [0], [1], [0, 0, 1, 1], [], []>} : vector<4x64xf32>, vector<64x64xf32>, vector<4x64xf32> -> vector<4x64xf32>
    %c5_41 = arith.constant 5 : index
    %c0_42 = arith.constant 0 : index
    %c0_43 = arith.constant 0 : index
    %41 = vector.load %arg3[%c5_41, %c0_42, %c0_43] : memref<7x2x4xf32, #tpu.memory_space<vmem>>, vector<1x2x4xf32>
    %42 = vector.shape_cast %41 : vector<1x2x4xf32> to vector<2x4xf32>
    %cst_44 = arith.constant dense<0.000000e+00> : vector<2x64xf32>
    %43 = tpu.matmul %42, %40, %cst_44 {dimension_numbers = #tpu.dot_dimension_numbers<[1], [0], [0], [1], [0, 0, 1, 1], [], []>} : vector<2x4xf32>, vector<4x64xf32>, vector<2x64xf32> -> vector<2x64xf32>
    %44 = arith.addf %37, %43 : vector<2x64xf32>
    %c6 = arith.constant 6 : index
    %c0_45 = arith.constant 0 : index
    %c0_46 = arith.constant 0 : index
    %45 = vector.load %arg2[%c6, %c0_45, %c0_46] : memref<7x64x64xf32, #tpu.memory_space<vmem>>, vector<1x64x64xf32>
    %46 = vector.shape_cast %45 : vector<1x64x64xf32> to vector<64x64xf32>
    %cst_47 = arith.constant dense<0.000000e+00> : vector<4x64xf32>
    %47 = tpu.matmul %1, %46, %cst_47 {dimension_numbers = #tpu.dot_dimension_numbers<[1], [0], [0], [1], [0, 0, 1, 1], [], []>} : vector<4x64xf32>, vector<64x64xf32>, vector<4x64xf32> -> vector<4x64xf32>
    %c6_48 = arith.constant 6 : index
    %c0_49 = arith.constant 0 : index
    %c0_50 = arith.constant 0 : index
    %48 = vector.load %arg3[%c6_48, %c0_49, %c0_50] : memref<7x2x4xf32, #tpu.memory_space<vmem>>, vector<1x2x4xf32>
    %49 = vector.shape_cast %48 : vector<1x2x4xf32> to vector<2x4xf32>
    %cst_51 = arith.constant dense<0.000000e+00> : vector<2x64xf32>
    %50 = tpu.matmul %49, %47, %cst_51 {dimension_numbers = #tpu.dot_dimension_numbers<[1], [0], [0], [1], [0, 0, 1, 1], [], []>} : vector<2x4xf32>, vector<4x64xf32>, vector<2x64xf32> -> vector<2x64xf32>
    %51 = arith.addf %44, %50 : vector<2x64xf32>
    %c0_52 = arith.constant 0 : index
    %c0_53 = arith.constant 0 : index
    %52 = vector.load %arg4[%c0_52, %c0_53] : memref<2x1xf32, #tpu.memory_space<vmem>>, vector<2x1xf32>
    %53 = vector.broadcast %52 : vector<2x1xf32> to vector<2x64xf32>
    %54 = arith.addf %51, %53 : vector<2x64xf32>
    %cst_54 = arith.constant 0.000000e+00 : f32
    %55 = vector.broadcast %cst_54 : f32 to vector<2x64xf32>
    %56 = arith.cmpf ogt, %54, %55 : vector<2x64xf32>
    %cst_55 = arith.constant 0.000000e+00 : f32
    %57 = vector.broadcast %cst_55 : f32 to vector<2x64xf32>
    %58 = arith.minimumf %54, %57 : vector<2x64xf32>
    %59 = math.exp %58 : vector<2x64xf32>
    %cst_56 = arith.constant 1.000000e+00 : f32
    %60 = vector.broadcast %cst_56 : f32 to vector<2x64xf32>
    %61 = arith.subf %59, %60 : vector<2x64xf32>
    %62 = arith.select %56, %54, %61 : vector<2x64xi1>, vector<2x64xf32>
    %cst_57 = arith.constant 0.000000e+00 : f32
    %63 = vector.broadcast %cst_57 : f32 to vector<4x32xf32>
    %c0_58 = arith.constant 0 : index
    %c0_59 = arith.constant 0 : index
    %c0_60 = arith.constant 0 : index
    %64 = vector.load %arg5[%c0_58, %c0_59, %c0_60] : memref<3x64x32xf32, #tpu.memory_space<vmem>>, vector<1x64x32xf32>
    %65 = vector.shape_cast %64 : vector<1x64x32xf32> to vector<64x32xf32>
    %cst_61 = arith.constant dense<0.000000e+00> : vector<2x32xf32>
    %66 = tpu.matmul %62, %65, %cst_61 {dimension_numbers = #tpu.dot_dimension_numbers<[1], [0], [0], [1], [0, 0, 1, 1], [], []>} : vector<2x64xf32>, vector<64x32xf32>, vector<2x32xf32> -> vector<2x32xf32>
    %c0_62 = arith.constant 0 : index
    %c0_63 = arith.constant 0 : index
    %c0_64 = arith.constant 0 : index
    %67 = vector.load %arg11[%c0_62, %c0_63, %c0_64] : memref<3x4x2xf32, #tpu.memory_space<vmem>>, vector<1x4x2xf32>
    %68 = vector.shape_cast %67 : vector<1x4x2xf32> to vector<4x2xf32>
    %cst_65 = arith.constant dense<0.000000e+00> : vector<4x32xf32>
    %69 = tpu.matmul %68, %66, %cst_65 {dimension_numbers = #tpu.dot_dimension_numbers<[1], [0], [0], [1], [0, 0, 1, 1], [], []>} : vector<4x2xf32>, vector<2x32xf32>, vector<4x32xf32> -> vector<4x32xf32>
    %70 = arith.addf %63, %69 : vector<4x32xf32>
    %c1_66 = arith.constant 1 : index
    %c0_67 = arith.constant 0 : index
    %c0_68 = arith.constant 0 : index
    %71 = vector.load %arg5[%c1_66, %c0_67, %c0_68] : memref<3x64x32xf32, #tpu.memory_space<vmem>>, vector<1x64x32xf32>
    %72 = vector.shape_cast %71 : vector<1x64x32xf32> to vector<64x32xf32>
    %cst_69 = arith.constant dense<0.000000e+00> : vector<2x32xf32>
    %73 = tpu.matmul %62, %72, %cst_69 {dimension_numbers = #tpu.dot_dimension_numbers<[1], [0], [0], [1], [0, 0, 1, 1], [], []>} : vector<2x64xf32>, vector<64x32xf32>, vector<2x32xf32> -> vector<2x32xf32>
    %c1_70 = arith.constant 1 : index
    %c0_71 = arith.constant 0 : index
    %c0_72 = arith.constant 0 : index
    %74 = vector.load %arg11[%c1_70, %c0_71, %c0_72] : memref<3x4x2xf32, #tpu.memory_space<vmem>>, vector<1x4x2xf32>
    %75 = vector.shape_cast %74 : vector<1x4x2xf32> to vector<4x2xf32>
    %cst_73 = arith.constant dense<0.000000e+00> : vector<4x32xf32>
    %76 = tpu.matmul %75, %73, %cst_73 {dimension_numbers = #tpu.dot_dimension_numbers<[1], [0], [0], [1], [0, 0, 1, 1], [], []>} : vector<4x2xf32>, vector<2x32xf32>, vector<4x32xf32> -> vector<4x32xf32>
    %77 = arith.addf %70, %76 : vector<4x32xf32>
    %c2_74 = arith.constant 2 : index
    %c0_75 = arith.constant 0 : index
    %c0_76 = arith.constant 0 : index
    %78 = vector.load %arg5[%c2_74, %c0_75, %c0_76] : memref<3x64x32xf32, #tpu.memory_space<vmem>>, vector<1x64x32xf32>
    %79 = vector.shape_cast %78 : vector<1x64x32xf32> to vector<64x32xf32>
    %cst_77 = arith.constant dense<0.000000e+00> : vector<2x32xf32>
    %80 = tpu.matmul %62, %79, %cst_77 {dimension_numbers = #tpu.dot_dimension_numbers<[1], [0], [0], [1], [0, 0, 1, 1], [], []>} : vector<2x64xf32>, vector<64x32xf32>, vector<2x32xf32> -> vector<2x32xf32>
    %c2_78 = arith.constant 2 : index
    %c0_79 = arith.constant 0 : index
    %c0_80 = arith.constant 0 : index
    %81 = vector.load %arg11[%c2_78, %c0_79, %c0_80] : memref<3x4x2xf32, #tpu.memory_space<vmem>>, vector<1x4x2xf32>
    %82 = vector.shape_cast %81 : vector<1x4x2xf32> to vector<4x2xf32>
    %cst_81 = arith.constant dense<0.000000e+00> : vector<4x32xf32>
    %83 = tpu.matmul %82, %80, %cst_81 {dimension_numbers = #tpu.dot_dimension_numbers<[1], [0], [0], [1], [0, 0, 1, 1], [], []>} : vector<4x2xf32>, vector<2x32xf32>, vector<4x32xf32> -> vector<4x32xf32>
    %84 = arith.addf %77, %83 : vector<4x32xf32>
    %cst_82 = arith.constant 0.000000e+00 : f32
    %85 = vector.broadcast %cst_82 : f32 to vector<2x32xf32>
    %c0_83 = arith.constant 0 : index
    %c0_84 = arith.constant 0 : index
    %c0_85 = arith.constant 0 : index
    %86 = vector.load %arg5[%c0_83, %c0_84, %c0_85] : memref<3x64x32xf32, #tpu.memory_space<vmem>>, vector<1x64x32xf32>
    %87 = vector.shape_cast %86 : vector<1x64x32xf32> to vector<64x32xf32>
    %cst_86 = arith.constant dense<0.000000e+00> : vector<2x32xf32>
    %88 = tpu.matmul %62, %87, %cst_86 {dimension_numbers = #tpu.dot_dimension_numbers<[1], [0], [0], [1], [0, 0, 1, 1], [], []>} : vector<2x64xf32>, vector<64x32xf32>, vector<2x32xf32> -> vector<2x32xf32>
    %c0_87 = arith.constant 0 : index
    %c0_88 = arith.constant 0 : index
    %c0_89 = arith.constant 0 : index
    %89 = vector.load %arg7[%c0_87, %c0_88, %c0_89] : memref<3x2x2xf32, #tpu.memory_space<vmem>>, vector<1x2x2xf32>
    %90 = vector.shape_cast %89 : vector<1x2x2xf32> to vector<2x2xf32>
    %cst_90 = arith.constant dense<0.000000e+00> : vector<2x32xf32>
    %91 = tpu.matmul %90, %88, %cst_90 {dimension_numbers = #tpu.dot_dimension_numbers<[1], [0], [0], [1], [0, 0, 1, 1], [], []>} : vector<2x2xf32>, vector<2x32xf32>, vector<2x32xf32> -> vector<2x32xf32>
    %92 = arith.addf %85, %91 : vector<2x32xf32>
    %c1_91 = arith.constant 1 : index
    %c0_92 = arith.constant 0 : index
    %c0_93 = arith.constant 0 : index
    %93 = vector.load %arg5[%c1_91, %c0_92, %c0_93] : memref<3x64x32xf32, #tpu.memory_space<vmem>>, vector<1x64x32xf32>
    %94 = vector.shape_cast %93 : vector<1x64x32xf32> to vector<64x32xf32>
    %cst_94 = arith.constant dense<0.000000e+00> : vector<2x32xf32>
    %95 = tpu.matmul %62, %94, %cst_94 {dimension_numbers = #tpu.dot_dimension_numbers<[1], [0], [0], [1], [0, 0, 1, 1], [], []>} : vector<2x64xf32>, vector<64x32xf32>, vector<2x32xf32> -> vector<2x32xf32>
    %c1_95 = arith.constant 1 : index
    %c0_96 = arith.constant 0 : index
    %c0_97 = arith.constant 0 : index
    %96 = vector.load %arg7[%c1_95, %c0_96, %c0_97] : memref<3x2x2xf32, #tpu.memory_space<vmem>>, vector<1x2x2xf32>
    %97 = vector.shape_cast %96 : vector<1x2x2xf32> to vector<2x2xf32>
    %cst_98 = arith.constant dense<0.000000e+00> : vector<2x32xf32>
    %98 = tpu.matmul %97, %95, %cst_98 {dimension_numbers = #tpu.dot_dimension_numbers<[1], [0], [0], [1], [0, 0, 1, 1], [], []>} : vector<2x2xf32>, vector<2x32xf32>, vector<2x32xf32> -> vector<2x32xf32>
    %99 = arith.addf %92, %98 : vector<2x32xf32>
    %c2_99 = arith.constant 2 : index
    %c0_100 = arith.constant 0 : index
    %c0_101 = arith.constant 0 : index
    %100 = vector.load %arg5[%c2_99, %c0_100, %c0_101] : memref<3x64x32xf32, #tpu.memory_space<vmem>>, vector<1x64x32xf32>
    %101 = vector.shape_cast %100 : vector<1x64x32xf32> to vector<64x32xf32>
    %cst_102 = arith.constant dense<0.000000e+00> : vector<2x32xf32>
    %102 = tpu.matmul %62, %101, %cst_102 {dimension_numbers = #tpu.dot_dimension_numbers<[1], [0], [0], [1], [0, 0, 1, 1], [], []>} : vector<2x64xf32>, vector<64x32xf32>, vector<2x32xf32> -> vector<2x32xf32>
    %c2_103 = arith.constant 2 : index
    %c0_104 = arith.constant 0 : index
    %c0_105 = arith.constant 0 : index
    %103 = vector.load %arg7[%c2_103, %c0_104, %c0_105] : memref<3x2x2xf32, #tpu.memory_space<vmem>>, vector<1x2x2xf32>
    %104 = vector.shape_cast %103 : vector<1x2x2xf32> to vector<2x2xf32>
    %cst_106 = arith.constant dense<0.000000e+00> : vector<2x32xf32>
    %105 = tpu.matmul %104, %102, %cst_106 {dimension_numbers = #tpu.dot_dimension_numbers<[1], [0], [0], [1], [0, 0, 1, 1], [], []>} : vector<2x2xf32>, vector<2x32xf32>, vector<2x32xf32> -> vector<2x32xf32>
    %106 = arith.addf %99, %105 : vector<2x32xf32>
    %c0_107 = arith.constant 0 : index
    %c0_108 = arith.constant 0 : index
    %107 = vector.load %arg8[%c0_107, %c0_108] : memref<2x1xf32, #tpu.memory_space<vmem>>, vector<2x1xf32>
    %108 = vector.broadcast %107 : vector<2x1xf32> to vector<2x32xf32>
    %109 = arith.mulf %106, %108 : vector<2x32xf32>
    %c0_109 = arith.constant 0 : index
    %c0_110 = arith.constant 0 : index
    %110 = vector.load %arg9[%c0_109, %c0_110] : memref<2x1xf32, #tpu.memory_space<vmem>>, vector<2x1xf32>
    %111 = vector.broadcast %110 : vector<2x1xf32> to vector<2x32xf32>
    %112 = arith.addf %109, %111 : vector<2x32xf32>
    %cst_111 = arith.constant 0.000000e+00 : f32
    %113 = vector.broadcast %cst_111 : f32 to vector<2x32xf32>
    %114 = arith.cmpf ogt, %112, %113 : vector<2x32xf32>
    %cst_112 = arith.constant 0.000000e+00 : f32
    %115 = vector.broadcast %cst_112 : f32 to vector<2x32xf32>
    %116 = arith.minimumf %112, %115 : vector<2x32xf32>
    %117 = math.exp %116 : vector<2x32xf32>
    %cst_113 = arith.constant 1.000000e+00 : f32
    %118 = vector.broadcast %cst_113 : f32 to vector<2x32xf32>
    %119 = arith.subf %117, %118 : vector<2x32xf32>
    %120 = arith.select %114, %112, %119 : vector<2x32xi1>, vector<2x32xf32>
    %cst_114 = arith.constant 0.000000e+00 : f32
    %121 = vector.broadcast %cst_114 : f32 to vector<4x32xf32>
    %c0_115 = arith.constant 0 : index
    %c0_116 = arith.constant 0 : index
    %c0_117 = arith.constant 0 : index
    %122 = vector.load %arg6[%c0_115, %c0_116, %c0_117] : memref<3x32x32xf32, #tpu.memory_space<vmem>>, vector<1x32x32xf32>
    %123 = vector.shape_cast %122 : vector<1x32x32xf32> to vector<32x32xf32>
    %cst_118 = arith.constant dense<0.000000e+00> : vector<2x32xf32>
    %124 = tpu.matmul %120, %123, %cst_118 {dimension_numbers = #tpu.dot_dimension_numbers<[1], [0], [0], [1], [0, 0, 1, 1], [], []>} : vector<2x32xf32>, vector<32x32xf32>, vector<2x32xf32> -> vector<2x32xf32>
    %c0_119 = arith.constant 0 : index
    %c0_120 = arith.constant 0 : index
    %c0_121 = arith.constant 0 : index
    %125 = vector.load %arg10[%c0_119, %c0_120, %c0_121] : memref<3x4x2xf32, #tpu.memory_space<vmem>>, vector<1x4x2xf32>
    %126 = vector.shape_cast %125 : vector<1x4x2xf32> to vector<4x2xf32>
    %cst_122 = arith.constant dense<0.000000e+00> : vector<4x32xf32>
    %127 = tpu.matmul %126, %124, %cst_122 {dimension_numbers = #tpu.dot_dimension_numbers<[1], [0], [0], [1], [0, 0, 1, 1], [], []>} : vector<4x2xf32>, vector<2x32xf32>, vector<4x32xf32> -> vector<4x32xf32>
    %128 = arith.addf %121, %127 : vector<4x32xf32>
    %c1_123 = arith.constant 1 : index
    %c0_124 = arith.constant 0 : index
    %c0_125 = arith.constant 0 : index
    %129 = vector.load %arg6[%c1_123, %c0_124, %c0_125] : memref<3x32x32xf32, #tpu.memory_space<vmem>>, vector<1x32x32xf32>
    %130 = vector.shape_cast %129 : vector<1x32x32xf32> to vector<32x32xf32>
    %cst_126 = arith.constant dense<0.000000e+00> : vector<2x32xf32>
    %131 = tpu.matmul %120, %130, %cst_126 {dimension_numbers = #tpu.dot_dimension_numbers<[1], [0], [0], [1], [0, 0, 1, 1], [], []>} : vector<2x32xf32>, vector<32x32xf32>, vector<2x32xf32> -> vector<2x32xf32>
    %c1_127 = arith.constant 1 : index
    %c0_128 = arith.constant 0 : index
    %c0_129 = arith.constant 0 : index
    %132 = vector.load %arg10[%c1_127, %c0_128, %c0_129] : memref<3x4x2xf32, #tpu.memory_space<vmem>>, vector<1x4x2xf32>
    %133 = vector.shape_cast %132 : vector<1x4x2xf32> to vector<4x2xf32>
    %cst_130 = arith.constant dense<0.000000e+00> : vector<4x32xf32>
    %134 = tpu.matmul %133, %131, %cst_130 {dimension_numbers = #tpu.dot_dimension_numbers<[1], [0], [0], [1], [0, 0, 1, 1], [], []>} : vector<4x2xf32>, vector<2x32xf32>, vector<4x32xf32> -> vector<4x32xf32>
    %135 = arith.addf %128, %134 : vector<4x32xf32>
    %c2_131 = arith.constant 2 : index
    %c0_132 = arith.constant 0 : index
    %c0_133 = arith.constant 0 : index
    %136 = vector.load %arg6[%c2_131, %c0_132, %c0_133] : memref<3x32x32xf32, #tpu.memory_space<vmem>>, vector<1x32x32xf32>
    %137 = vector.shape_cast %136 : vector<1x32x32xf32> to vector<32x32xf32>
    %cst_134 = arith.constant dense<0.000000e+00> : vector<2x32xf32>
    %138 = tpu.matmul %120, %137, %cst_134 {dimension_numbers = #tpu.dot_dimension_numbers<[1], [0], [0], [1], [0, 0, 1, 1], [], []>} : vector<2x32xf32>, vector<32x32xf32>, vector<2x32xf32> -> vector<2x32xf32>
    %c2_135 = arith.constant 2 : index
    %c0_136 = arith.constant 0 : index
    %c0_137 = arith.constant 0 : index
    %139 = vector.load %arg10[%c2_135, %c0_136, %c0_137] : memref<3x4x2xf32, #tpu.memory_space<vmem>>, vector<1x4x2xf32>
    %140 = vector.shape_cast %139 : vector<1x4x2xf32> to vector<4x2xf32>
    %cst_138 = arith.constant dense<0.000000e+00> : vector<4x32xf32>
    %141 = tpu.matmul %140, %138, %cst_138 {dimension_numbers = #tpu.dot_dimension_numbers<[1], [0], [0], [1], [0, 0, 1, 1], [], []>} : vector<4x2xf32>, vector<2x32xf32>, vector<4x32xf32> -> vector<4x32xf32>
    %142 = arith.addf %135, %141 : vector<4x32xf32>
    %143 = arith.addf %142, %84 : vector<4x32xf32>
    %c0_139 = arith.constant 0 : index
    %c0_140 = arith.constant 0 : index
    %144 = vector.load %arg12[%c0_139, %c0_140] : memref<4x1xf32, #tpu.memory_space<vmem>>, vector<4x1xf32>
    %145 = vector.broadcast %144 : vector<4x1xf32> to vector<4x32xf32>
    %146 = arith.mulf %143, %145 : vector<4x32xf32>
    %c0_141 = arith.constant 0 : index
    %c0_142 = arith.constant 0 : index
    %147 = vector.load %arg13[%c0_141, %c0_142] : memref<4x1xf32, #tpu.memory_space<vmem>>, vector<4x1xf32>
    %148 = vector.broadcast %147 : vector<4x1xf32> to vector<4x32xf32>
    %149 = arith.addf %146, %148 : vector<4x32xf32>
    %cst_143 = arith.constant 0.000000e+00 : f32
    %150 = vector.broadcast %cst_143 : f32 to vector<4x32xf32>
    %151 = arith.cmpf ogt, %149, %150 : vector<4x32xf32>
    %cst_144 = arith.constant 0.000000e+00 : f32
    %152 = vector.broadcast %cst_144 : f32 to vector<4x32xf32>
    %153 = arith.minimumf %149, %152 : vector<4x32xf32>
    %154 = math.exp %153 : vector<4x32xf32>
    %cst_145 = arith.constant 1.000000e+00 : f32
    %155 = vector.broadcast %cst_145 : f32 to vector<4x32xf32>
    %156 = arith.subf %154, %155 : vector<4x32xf32>
    %157 = arith.select %151, %149, %156 : vector<4x32xi1>, vector<4x32xf32>
    %cst_146 = arith.constant 0.000000e+00 : f32
    %158 = vector.broadcast %cst_146 : f32 to vector<8x16xf32>
    %c0_147 = arith.constant 0 : index
    %c0_148 = arith.constant 0 : index
    %c0_149 = arith.constant 0 : index
    %159 = vector.load %arg14[%c0_147, %c0_148, %c0_149] : memref<3x32x16xf32, #tpu.memory_space<vmem>>, vector<1x32x16xf32>
    %160 = vector.shape_cast %159 : vector<1x32x16xf32> to vector<32x16xf32>
    %cst_150 = arith.constant dense<0.000000e+00> : vector<4x16xf32>
    %161 = tpu.matmul %157, %160, %cst_150 {dimension_numbers = #tpu.dot_dimension_numbers<[1], [0], [0], [1], [0, 0, 1, 1], [], []>} : vector<4x32xf32>, vector<32x16xf32>, vector<4x16xf32> -> vector<4x16xf32>
    %c0_151 = arith.constant 0 : index
    %c0_152 = arith.constant 0 : index
    %c0_153 = arith.constant 0 : index
    %162 = vector.load %arg20[%c0_151, %c0_152, %c0_153] : memref<3x8x4xf32, #tpu.memory_space<vmem>>, vector<1x8x4xf32>
    %163 = vector.shape_cast %162 : vector<1x8x4xf32> to vector<8x4xf32>
    %cst_154 = arith.constant dense<0.000000e+00> : vector<8x16xf32>
    %164 = tpu.matmul %163, %161, %cst_154 {dimension_numbers = #tpu.dot_dimension_numbers<[1], [0], [0], [1], [0, 0, 1, 1], [], []>} : vector<8x4xf32>, vector<4x16xf32>, vector<8x16xf32> -> vector<8x16xf32>
    %165 = arith.addf %158, %164 : vector<8x16xf32>
    %c1_155 = arith.constant 1 : index
    %c0_156 = arith.constant 0 : index
    %c0_157 = arith.constant 0 : index
    %166 = vector.load %arg14[%c1_155, %c0_156, %c0_157] : memref<3x32x16xf32, #tpu.memory_space<vmem>>, vector<1x32x16xf32>
    %167 = vector.shape_cast %166 : vector<1x32x16xf32> to vector<32x16xf32>
    %cst_158 = arith.constant dense<0.000000e+00> : vector<4x16xf32>
    %168 = tpu.matmul %157, %167, %cst_158 {dimension_numbers = #tpu.dot_dimension_numbers<[1], [0], [0], [1], [0, 0, 1, 1], [], []>} : vector<4x32xf32>, vector<32x16xf32>, vector<4x16xf32> -> vector<4x16xf32>
    %c1_159 = arith.constant 1 : index
    %c0_160 = arith.constant 0 : index
    %c0_161 = arith.constant 0 : index
    %169 = vector.load %arg20[%c1_159, %c0_160, %c0_161] : memref<3x8x4xf32, #tpu.memory_space<vmem>>, vector<1x8x4xf32>
    %170 = vector.shape_cast %169 : vector<1x8x4xf32> to vector<8x4xf32>
    %cst_162 = arith.constant dense<0.000000e+00> : vector<8x16xf32>
    %171 = tpu.matmul %170, %168, %cst_162 {dimension_numbers = #tpu.dot_dimension_numbers<[1], [0], [0], [1], [0, 0, 1, 1], [], []>} : vector<8x4xf32>, vector<4x16xf32>, vector<8x16xf32> -> vector<8x16xf32>
    %172 = arith.addf %165, %171 : vector<8x16xf32>
    %c2_163 = arith.constant 2 : index
    %c0_164 = arith.constant 0 : index
    %c0_165 = arith.constant 0 : index
    %173 = vector.load %arg14[%c2_163, %c0_164, %c0_165] : memref<3x32x16xf32, #tpu.memory_space<vmem>>, vector<1x32x16xf32>
    %174 = vector.shape_cast %173 : vector<1x32x16xf32> to vector<32x16xf32>
    %cst_166 = arith.constant dense<0.000000e+00> : vector<4x16xf32>
    %175 = tpu.matmul %157, %174, %cst_166 {dimension_numbers = #tpu.dot_dimension_numbers<[1], [0], [0], [1], [0, 0, 1, 1], [], []>} : vector<4x32xf32>, vector<32x16xf32>, vector<4x16xf32> -> vector<4x16xf32>
    %c2_167 = arith.constant 2 : index
    %c0_168 = arith.constant 0 : index
    %c0_169 = arith.constant 0 : index
    %176 = vector.load %arg20[%c2_167, %c0_168, %c0_169] : memref<3x8x4xf32, #tpu.memory_space<vmem>>, vector<1x8x4xf32>
    %177 = vector.shape_cast %176 : vector<1x8x4xf32> to vector<8x4xf32>
    %cst_170 = arith.constant dense<0.000000e+00> : vector<8x16xf32>
    %178 = tpu.matmul %177, %175, %cst_170 {dimension_numbers = #tpu.dot_dimension_numbers<[1], [0], [0], [1], [0, 0, 1, 1], [], []>} : vector<8x4xf32>, vector<4x16xf32>, vector<8x16xf32> -> vector<8x16xf32>
    %179 = arith.addf %172, %178 : vector<8x16xf32>
    %cst_171 = arith.constant 0.000000e+00 : f32
    %180 = vector.broadcast %cst_171 : f32 to vector<4x16xf32>
    %c0_172 = arith.constant 0 : index
    %c0_173 = arith.constant 0 : index
    %c0_174 = arith.constant 0 : index
    %181 = vector.load %arg14[%c0_172, %c0_173, %c0_174] : memref<3x32x16xf32, #tpu.memory_space<vmem>>, vector<1x32x16xf32>
    %182 = vector.shape_cast %181 : vector<1x32x16xf32> to vector<32x16xf32>
    %cst_175 = arith.constant dense<0.000000e+00> : vector<4x16xf32>
    %183 = tpu.matmul %157, %182, %cst_175 {dimension_numbers = #tpu.dot_dimension_numbers<[1], [0], [0], [1], [0, 0, 1, 1], [], []>} : vector<4x32xf32>, vector<32x16xf32>, vector<4x16xf32> -> vector<4x16xf32>
    %c0_176 = arith.constant 0 : index
    %c0_177 = arith.constant 0 : index
    %c0_178 = arith.constant 0 : index
    %184 = vector.load %arg16[%c0_176, %c0_177, %c0_178] : memref<3x4x4xf32, #tpu.memory_space<vmem>>, vector<1x4x4xf32>
    %185 = vector.shape_cast %184 : vector<1x4x4xf32> to vector<4x4xf32>
    %cst_179 = arith.constant dense<0.000000e+00> : vector<4x16xf32>
    %186 = tpu.matmul %185, %183, %cst_179 {dimension_numbers = #tpu.dot_dimension_numbers<[1], [0], [0], [1], [0, 0, 1, 1], [], []>} : vector<4x4xf32>, vector<4x16xf32>, vector<4x16xf32> -> vector<4x16xf32>
    %187 = arith.addf %180, %186 : vector<4x16xf32>
    %c1_180 = arith.constant 1 : index
    %c0_181 = arith.constant 0 : index
    %c0_182 = arith.constant 0 : index
    %188 = vector.load %arg14[%c1_180, %c0_181, %c0_182] : memref<3x32x16xf32, #tpu.memory_space<vmem>>, vector<1x32x16xf32>
    %189 = vector.shape_cast %188 : vector<1x32x16xf32> to vector<32x16xf32>
    %cst_183 = arith.constant dense<0.000000e+00> : vector<4x16xf32>
    %190 = tpu.matmul %157, %189, %cst_183 {dimension_numbers = #tpu.dot_dimension_numbers<[1], [0], [0], [1], [0, 0, 1, 1], [], []>} : vector<4x32xf32>, vector<32x16xf32>, vector<4x16xf32> -> vector<4x16xf32>
    %c1_184 = arith.constant 1 : index
    %c0_185 = arith.constant 0 : index
    %c0_186 = arith.constant 0 : index
    %191 = vector.load %arg16[%c1_184, %c0_185, %c0_186] : memref<3x4x4xf32, #tpu.memory_space<vmem>>, vector<1x4x4xf32>
    %192 = vector.shape_cast %191 : vector<1x4x4xf32> to vector<4x4xf32>
    %cst_187 = arith.constant dense<0.000000e+00> : vector<4x16xf32>
    %193 = tpu.matmul %192, %190, %cst_187 {dimension_numbers = #tpu.dot_dimension_numbers<[1], [0], [0], [1], [0, 0, 1, 1], [], []>} : vector<4x4xf32>, vector<4x16xf32>, vector<4x16xf32> -> vector<4x16xf32>
    %194 = arith.addf %187, %193 : vector<4x16xf32>
    %c2_188 = arith.constant 2 : index
    %c0_189 = arith.constant 0 : index
    %c0_190 = arith.constant 0 : index
    %195 = vector.load %arg14[%c2_188, %c0_189, %c0_190] : memref<3x32x16xf32, #tpu.memory_space<vmem>>, vector<1x32x16xf32>
    %196 = vector.shape_cast %195 : vector<1x32x16xf32> to vector<32x16xf32>
    %cst_191 = arith.constant dense<0.000000e+00> : vector<4x16xf32>
    %197 = tpu.matmul %157, %196, %cst_191 {dimension_numbers = #tpu.dot_dimension_numbers<[1], [0], [0], [1], [0, 0, 1, 1], [], []>} : vector<4x32xf32>, vector<32x16xf32>, vector<4x16xf32> -> vector<4x16xf32>
    %c2_192 = arith.constant 2 : index
    %c0_193 = arith.constant 0 : index
    %c0_194 = arith.constant 0 : index
    %198 = vector.load %arg16[%c2_192, %c0_193, %c0_194] : memref<3x4x4xf32, #tpu.memory_space<vmem>>, vector<1x4x4xf32>
    %199 = vector.shape_cast %198 : vector<1x4x4xf32> to vector<4x4xf32>
    %cst_195 = arith.constant dense<0.000000e+00> : vector<4x16xf32>
    %200 = tpu.matmul %199, %197, %cst_195 {dimension_numbers = #tpu.dot_dimension_numbers<[1], [0], [0], [1], [0, 0, 1, 1], [], []>} : vector<4x4xf32>, vector<4x16xf32>, vector<4x16xf32> -> vector<4x16xf32>
    %201 = arith.addf %194, %200 : vector<4x16xf32>
    %c0_196 = arith.constant 0 : index
    %c0_197 = arith.constant 0 : index
    %202 = vector.load %arg17[%c0_196, %c0_197] : memref<4x1xf32, #tpu.memory_space<vmem>>, vector<4x1xf32>
    %203 = vector.broadcast %202 : vector<4x1xf32> to vector<4x16xf32>
    %204 = arith.mulf %201, %203 : vector<4x16xf32>
    %c0_198 = arith.constant 0 : index
    %c0_199 = arith.constant 0 : index
    %205 = vector.load %arg18[%c0_198, %c0_199] : memref<4x1xf32, #tpu.memory_space<vmem>>, vector<4x1xf32>
    %206 = vector.broadcast %205 : vector<4x1xf32> to vector<4x16xf32>
    %207 = arith.addf %204, %206 : vector<4x16xf32>
    %cst_200 = arith.constant 0.000000e+00 : f32
    %208 = vector.broadcast %cst_200 : f32 to vector<4x16xf32>
    %209 = arith.cmpf ogt, %207, %208 : vector<4x16xf32>
    %cst_201 = arith.constant 0.000000e+00 : f32
    %210 = vector.broadcast %cst_201 : f32 to vector<4x16xf32>
    %211 = arith.minimumf %207, %210 : vector<4x16xf32>
    %212 = math.exp %211 : vector<4x16xf32>
    %cst_202 = arith.constant 1.000000e+00 : f32
    %213 = vector.broadcast %cst_202 : f32 to vector<4x16xf32>
    %214 = arith.subf %212, %213 : vector<4x16xf32>
    %215 = arith.select %209, %207, %214 : vector<4x16xi1>, vector<4x16xf32>
    %cst_203 = arith.constant 0.000000e+00 : f32
    %216 = vector.broadcast %cst_203 : f32 to vector<8x16xf32>
    %c0_204 = arith.constant 0 : index
    %c0_205 = arith.constant 0 : index
    %c0_206 = arith.constant 0 : index
    %217 = vector.load %arg15[%c0_204, %c0_205, %c0_206] : memref<3x16x16xf32, #tpu.memory_space<vmem>>, vector<1x16x16xf32>
    %218 = vector.shape_cast %217 : vector<1x16x16xf32> to vector<16x16xf32>
    %cst_207 = arith.constant dense<0.000000e+00> : vector<4x16xf32>
    %219 = tpu.matmul %215, %218, %cst_207 {dimension_numbers = #tpu.dot_dimension_numbers<[1], [0], [0], [1], [0, 0, 1, 1], [], []>} : vector<4x16xf32>, vector<16x16xf32>, vector<4x16xf32> -> vector<4x16xf32>
    %c0_208 = arith.constant 0 : index
    %c0_209 = arith.constant 0 : index
    %c0_210 = arith.constant 0 : index
    %220 = vector.load %arg19[%c0_208, %c0_209, %c0_210] : memref<3x8x4xf32, #tpu.memory_space<vmem>>, vector<1x8x4xf32>
    %221 = vector.shape_cast %220 : vector<1x8x4xf32> to vector<8x4xf32>
    %cst_211 = arith.constant dense<0.000000e+00> : vector<8x16xf32>
    %222 = tpu.matmul %221, %219, %cst_211 {dimension_numbers = #tpu.dot_dimension_numbers<[1], [0], [0], [1], [0, 0, 1, 1], [], []>} : vector<8x4xf32>, vector<4x16xf32>, vector<8x16xf32> -> vector<8x16xf32>
    %223 = arith.addf %216, %222 : vector<8x16xf32>
    %c1_212 = arith.constant 1 : index
    %c0_213 = arith.constant 0 : index
    %c0_214 = arith.constant 0 : index
    %224 = vector.load %arg15[%c1_212, %c0_213, %c0_214] : memref<3x16x16xf32, #tpu.memory_space<vmem>>, vector<1x16x16xf32>
    %225 = vector.shape_cast %224 : vector<1x16x16xf32> to vector<16x16xf32>
    %cst_215 = arith.constant dense<0.000000e+00> : vector<4x16xf32>
    %226 = tpu.matmul %215, %225, %cst_215 {dimension_numbers = #tpu.dot_dimension_numbers<[1], [0], [0], [1], [0, 0, 1, 1], [], []>} : vector<4x16xf32>, vector<16x16xf32>, vector<4x16xf32> -> vector<4x16xf32>
    %c1_216 = arith.constant 1 : index
    %c0_217 = arith.constant 0 : index
    %c0_218 = arith.constant 0 : index
    %227 = vector.load %arg19[%c1_216, %c0_217, %c0_218] : memref<3x8x4xf32, #tpu.memory_space<vmem>>, vector<1x8x4xf32>
    %228 = vector.shape_cast %227 : vector<1x8x4xf32> to vector<8x4xf32>
    %cst_219 = arith.constant dense<0.000000e+00> : vector<8x16xf32>
    %229 = tpu.matmul %228, %226, %cst_219 {dimension_numbers = #tpu.dot_dimension_numbers<[1], [0], [0], [1], [0, 0, 1, 1], [], []>} : vector<8x4xf32>, vector<4x16xf32>, vector<8x16xf32> -> vector<8x16xf32>
    %230 = arith.addf %223, %229 : vector<8x16xf32>
    %c2_220 = arith.constant 2 : index
    %c0_221 = arith.constant 0 : index
    %c0_222 = arith.constant 0 : index
    %231 = vector.load %arg15[%c2_220, %c0_221, %c0_222] : memref<3x16x16xf32, #tpu.memory_space<vmem>>, vector<1x16x16xf32>
    %232 = vector.shape_cast %231 : vector<1x16x16xf32> to vector<16x16xf32>
    %cst_223 = arith.constant dense<0.000000e+00> : vector<4x16xf32>
    %233 = tpu.matmul %215, %232, %cst_223 {dimension_numbers = #tpu.dot_dimension_numbers<[1], [0], [0], [1], [0, 0, 1, 1], [], []>} : vector<4x16xf32>, vector<16x16xf32>, vector<4x16xf32> -> vector<4x16xf32>
    %c2_224 = arith.constant 2 : index
    %c0_225 = arith.constant 0 : index
    %c0_226 = arith.constant 0 : index
    %234 = vector.load %arg19[%c2_224, %c0_225, %c0_226] : memref<3x8x4xf32, #tpu.memory_space<vmem>>, vector<1x8x4xf32>
    %235 = vector.shape_cast %234 : vector<1x8x4xf32> to vector<8x4xf32>
    %cst_227 = arith.constant dense<0.000000e+00> : vector<8x16xf32>
    %236 = tpu.matmul %235, %233, %cst_227 {dimension_numbers = #tpu.dot_dimension_numbers<[1], [0], [0], [1], [0, 0, 1, 1], [], []>} : vector<8x4xf32>, vector<4x16xf32>, vector<8x16xf32> -> vector<8x16xf32>
    %237 = arith.addf %230, %236 : vector<8x16xf32>
    %238 = arith.addf %237, %179 : vector<8x16xf32>
    %c0_228 = arith.constant 0 : index
    %c0_229 = arith.constant 0 : index
    %239 = vector.load %arg21[%c0_228, %c0_229] : memref<8x1xf32, #tpu.memory_space<vmem>>, vector<8x1xf32>
    %240 = vector.broadcast %239 : vector<8x1xf32> to vector<8x16xf32>
    %241 = arith.mulf %238, %240 : vector<8x16xf32>
    %c0_230 = arith.constant 0 : index
    %c0_231 = arith.constant 0 : index
    %242 = vector.load %arg22[%c0_230, %c0_231] : memref<8x1xf32, #tpu.memory_space<vmem>>, vector<8x1xf32>
    %243 = vector.broadcast %242 : vector<8x1xf32> to vector<8x16xf32>
    %244 = arith.addf %241, %243 : vector<8x16xf32>
    %cst_232 = arith.constant 0.000000e+00 : f32
    %245 = vector.broadcast %cst_232 : f32 to vector<8x16xf32>
    %246 = arith.cmpf ogt, %244, %245 : vector<8x16xf32>
    %cst_233 = arith.constant 0.000000e+00 : f32
    %247 = vector.broadcast %cst_233 : f32 to vector<8x16xf32>
    %248 = arith.minimumf %244, %247 : vector<8x16xf32>
    %249 = math.exp %248 : vector<8x16xf32>
    %cst_234 = arith.constant 1.000000e+00 : f32
    %250 = vector.broadcast %cst_234 : f32 to vector<8x16xf32>
    %251 = arith.subf %249, %250 : vector<8x16xf32>
    %252 = arith.select %246, %244, %251 : vector<8x16xi1>, vector<8x16xf32>
    %cst_235 = arith.constant 0.000000e+00 : f32
    %253 = vector.broadcast %cst_235 : f32 to vector<16x8xf32>
    %c0_236 = arith.constant 0 : index
    %c0_237 = arith.constant 0 : index
    %c0_238 = arith.constant 0 : index
    %254 = vector.load %arg23[%c0_236, %c0_237, %c0_238] : memref<3x16x8xf32, #tpu.memory_space<vmem>>, vector<1x16x8xf32>
    %255 = vector.shape_cast %254 : vector<1x16x8xf32> to vector<16x8xf32>
    %cst_239 = arith.constant dense<0.000000e+00> : vector<8x8xf32>
    %256 = tpu.matmul %252, %255, %cst_239 {dimension_numbers = #tpu.dot_dimension_numbers<[1], [0], [0], [1], [0, 0, 1, 1], [], []>} : vector<8x16xf32>, vector<16x8xf32>, vector<8x8xf32> -> vector<8x8xf32>
    %c0_240 = arith.constant 0 : index
    %c0_241 = arith.constant 0 : index
    %c0_242 = arith.constant 0 : index
    %257 = vector.load %arg29[%c0_240, %c0_241, %c0_242] : memref<3x16x8xf32, #tpu.memory_space<vmem>>, vector<1x16x8xf32>
    %258 = vector.shape_cast %257 : vector<1x16x8xf32> to vector<16x8xf32>
    %cst_243 = arith.constant dense<0.000000e+00> : vector<16x8xf32>
    %259 = tpu.matmul %258, %256, %cst_243 {dimension_numbers = #tpu.dot_dimension_numbers<[1], [0], [0], [1], [0, 0, 1, 1], [], []>} : vector<16x8xf32>, vector<8x8xf32>, vector<16x8xf32> -> vector<16x8xf32>
    %260 = arith.addf %253, %259 : vector<16x8xf32>
    %c1_244 = arith.constant 1 : index
    %c0_245 = arith.constant 0 : index
    %c0_246 = arith.constant 0 : index
    %261 = vector.load %arg23[%c1_244, %c0_245, %c0_246] : memref<3x16x8xf32, #tpu.memory_space<vmem>>, vector<1x16x8xf32>
    %262 = vector.shape_cast %261 : vector<1x16x8xf32> to vector<16x8xf32>
    %cst_247 = arith.constant dense<0.000000e+00> : vector<8x8xf32>
    %263 = tpu.matmul %252, %262, %cst_247 {dimension_numbers = #tpu.dot_dimension_numbers<[1], [0], [0], [1], [0, 0, 1, 1], [], []>} : vector<8x16xf32>, vector<16x8xf32>, vector<8x8xf32> -> vector<8x8xf32>
    %c1_248 = arith.constant 1 : index
    %c0_249 = arith.constant 0 : index
    %c0_250 = arith.constant 0 : index
    %264 = vector.load %arg29[%c1_248, %c0_249, %c0_250] : memref<3x16x8xf32, #tpu.memory_space<vmem>>, vector<1x16x8xf32>
    %265 = vector.shape_cast %264 : vector<1x16x8xf32> to vector<16x8xf32>
    %cst_251 = arith.constant dense<0.000000e+00> : vector<16x8xf32>
    %266 = tpu.matmul %265, %263, %cst_251 {dimension_numbers = #tpu.dot_dimension_numbers<[1], [0], [0], [1], [0, 0, 1, 1], [], []>} : vector<16x8xf32>, vector<8x8xf32>, vector<16x8xf32> -> vector<16x8xf32>
    %267 = arith.addf %260, %266 : vector<16x8xf32>
    %c2_252 = arith.constant 2 : index
    %c0_253 = arith.constant 0 : index
    %c0_254 = arith.constant 0 : index
    %268 = vector.load %arg23[%c2_252, %c0_253, %c0_254] : memref<3x16x8xf32, #tpu.memory_space<vmem>>, vector<1x16x8xf32>
    %269 = vector.shape_cast %268 : vector<1x16x8xf32> to vector<16x8xf32>
    %cst_255 = arith.constant dense<0.000000e+00> : vector<8x8xf32>
    %270 = tpu.matmul %252, %269, %cst_255 {dimension_numbers = #tpu.dot_dimension_numbers<[1], [0], [0], [1], [0, 0, 1, 1], [], []>} : vector<8x16xf32>, vector<16x8xf32>, vector<8x8xf32> -> vector<8x8xf32>
    %c2_256 = arith.constant 2 : index
    %c0_257 = arith.constant 0 : index
    %c0_258 = arith.constant 0 : index
    %271 = vector.load %arg29[%c2_256, %c0_257, %c0_258] : memref<3x16x8xf32, #tpu.memory_space<vmem>>, vector<1x16x8xf32>
    %272 = vector.shape_cast %271 : vector<1x16x8xf32> to vector<16x8xf32>
    %cst_259 = arith.constant dense<0.000000e+00> : vector<16x8xf32>
    %273 = tpu.matmul %272, %270, %cst_259 {dimension_numbers = #tpu.dot_dimension_numbers<[1], [0], [0], [1], [0, 0, 1, 1], [], []>} : vector<16x8xf32>, vector<8x8xf32>, vector<16x8xf32> -> vector<16x8xf32>
    %274 = arith.addf %267, %273 : vector<16x8xf32>
    %cst_260 = arith.constant 0.000000e+00 : f32
    %275 = vector.broadcast %cst_260 : f32 to vector<8x8xf32>
    %c0_261 = arith.constant 0 : index
    %c0_262 = arith.constant 0 : index
    %c0_263 = arith.constant 0 : index
    %276 = vector.load %arg23[%c0_261, %c0_262, %c0_263] : memref<3x16x8xf32, #tpu.memory_space<vmem>>, vector<1x16x8xf32>
    %277 = vector.shape_cast %276 : vector<1x16x8xf32> to vector<16x8xf32>
    %cst_264 = arith.constant dense<0.000000e+00> : vector<8x8xf32>
    %278 = tpu.matmul %252, %277, %cst_264 {dimension_numbers = #tpu.dot_dimension_numbers<[1], [0], [0], [1], [0, 0, 1, 1], [], []>} : vector<8x16xf32>, vector<16x8xf32>, vector<8x8xf32> -> vector<8x8xf32>
    %c0_265 = arith.constant 0 : index
    %c0_266 = arith.constant 0 : index
    %c0_267 = arith.constant 0 : index
    %279 = vector.load %arg25[%c0_265, %c0_266, %c0_267] : memref<3x8x8xf32, #tpu.memory_space<vmem>>, vector<1x8x8xf32>
    %280 = vector.shape_cast %279 : vector<1x8x8xf32> to vector<8x8xf32>
    %cst_268 = arith.constant dense<0.000000e+00> : vector<8x8xf32>
    %281 = tpu.matmul %280, %278, %cst_268 {dimension_numbers = #tpu.dot_dimension_numbers<[1], [0], [0], [1], [0, 0, 1, 1], [], []>} : vector<8x8xf32>, vector<8x8xf32>, vector<8x8xf32> -> vector<8x8xf32>
    %282 = arith.addf %275, %281 : vector<8x8xf32>
    %c1_269 = arith.constant 1 : index
    %c0_270 = arith.constant 0 : index
    %c0_271 = arith.constant 0 : index
    %283 = vector.load %arg23[%c1_269, %c0_270, %c0_271] : memref<3x16x8xf32, #tpu.memory_space<vmem>>, vector<1x16x8xf32>
    %284 = vector.shape_cast %283 : vector<1x16x8xf32> to vector<16x8xf32>
    %cst_272 = arith.constant dense<0.000000e+00> : vector<8x8xf32>
    %285 = tpu.matmul %252, %284, %cst_272 {dimension_numbers = #tpu.dot_dimension_numbers<[1], [0], [0], [1], [0, 0, 1, 1], [], []>} : vector<8x16xf32>, vector<16x8xf32>, vector<8x8xf32> -> vector<8x8xf32>
    %c1_273 = arith.constant 1 : index
    %c0_274 = arith.constant 0 : index
    %c0_275 = arith.constant 0 : index
    %286 = vector.load %arg25[%c1_273, %c0_274, %c0_275] : memref<3x8x8xf32, #tpu.memory_space<vmem>>, vector<1x8x8xf32>
    %287 = vector.shape_cast %286 : vector<1x8x8xf32> to vector<8x8xf32>
    %cst_276 = arith.constant dense<0.000000e+00> : vector<8x8xf32>
    %288 = tpu.matmul %287, %285, %cst_276 {dimension_numbers = #tpu.dot_dimension_numbers<[1], [0], [0], [1], [0, 0, 1, 1], [], []>} : vector<8x8xf32>, vector<8x8xf32>, vector<8x8xf32> -> vector<8x8xf32>
    %289 = arith.addf %282, %288 : vector<8x8xf32>
    %c2_277 = arith.constant 2 : index
    %c0_278 = arith.constant 0 : index
    %c0_279 = arith.constant 0 : index
    %290 = vector.load %arg23[%c2_277, %c0_278, %c0_279] : memref<3x16x8xf32, #tpu.memory_space<vmem>>, vector<1x16x8xf32>
    %291 = vector.shape_cast %290 : vector<1x16x8xf32> to vector<16x8xf32>
    %cst_280 = arith.constant dense<0.000000e+00> : vector<8x8xf32>
    %292 = tpu.matmul %252, %291, %cst_280 {dimension_numbers = #tpu.dot_dimension_numbers<[1], [0], [0], [1], [0, 0, 1, 1], [], []>} : vector<8x16xf32>, vector<16x8xf32>, vector<8x8xf32> -> vector<8x8xf32>
    %c2_281 = arith.constant 2 : index
    %c0_282 = arith.constant 0 : index
    %c0_283 = arith.constant 0 : index
    %293 = vector.load %arg25[%c2_281, %c0_282, %c0_283] : memref<3x8x8xf32, #tpu.memory_space<vmem>>, vector<1x8x8xf32>
    %294 = vector.shape_cast %293 : vector<1x8x8xf32> to vector<8x8xf32>
    %cst_284 = arith.constant dense<0.000000e+00> : vector<8x8xf32>
    %295 = tpu.matmul %294, %292, %cst_284 {dimension_numbers = #tpu.dot_dimension_numbers<[1], [0], [0], [1], [0, 0, 1, 1], [], []>} : vector<8x8xf32>, vector<8x8xf32>, vector<8x8xf32> -> vector<8x8xf32>
    %296 = arith.addf %289, %295 : vector<8x8xf32>
    %c0_285 = arith.constant 0 : index
    %c0_286 = arith.constant 0 : index
    %297 = vector.load %arg26[%c0_285, %c0_286] : memref<8x1xf32, #tpu.memory_space<vmem>>, vector<8x1xf32>
    %298 = vector.broadcast %297 : vector<8x1xf32> to vector<8x8xf32>
    %299 = arith.mulf %296, %298 : vector<8x8xf32>
    %c0_287 = arith.constant 0 : index
    %c0_288 = arith.constant 0 : index
    %300 = vector.load %arg27[%c0_287, %c0_288] : memref<8x1xf32, #tpu.memory_space<vmem>>, vector<8x1xf32>
    %301 = vector.broadcast %300 : vector<8x1xf32> to vector<8x8xf32>
    %302 = arith.addf %299, %301 : vector<8x8xf32>
    %cst_289 = arith.constant 0.000000e+00 : f32
    %303 = vector.broadcast %cst_289 : f32 to vector<8x8xf32>
    %304 = arith.cmpf ogt, %302, %303 : vector<8x8xf32>
    %cst_290 = arith.constant 0.000000e+00 : f32
    %305 = vector.broadcast %cst_290 : f32 to vector<8x8xf32>
    %306 = arith.minimumf %302, %305 : vector<8x8xf32>
    %307 = math.exp %306 : vector<8x8xf32>
    %cst_291 = arith.constant 1.000000e+00 : f32
    %308 = vector.broadcast %cst_291 : f32 to vector<8x8xf32>
    %309 = arith.subf %307, %308 : vector<8x8xf32>
    %310 = arith.select %304, %302, %309 : vector<8x8xi1>, vector<8x8xf32>
    %cst_292 = arith.constant 0.000000e+00 : f32
    %311 = vector.broadcast %cst_292 : f32 to vector<16x8xf32>
    %c0_293 = arith.constant 0 : index
    %c0_294 = arith.constant 0 : index
    %c0_295 = arith.constant 0 : index
    %312 = vector.load %arg24[%c0_293, %c0_294, %c0_295] : memref<3x8x8xf32, #tpu.memory_space<vmem>>, vector<1x8x8xf32>
    %313 = vector.shape_cast %312 : vector<1x8x8xf32> to vector<8x8xf32>
    %cst_296 = arith.constant dense<0.000000e+00> : vector<8x8xf32>
    %314 = tpu.matmul %310, %313, %cst_296 {dimension_numbers = #tpu.dot_dimension_numbers<[1], [0], [0], [1], [0, 0, 1, 1], [], []>} : vector<8x8xf32>, vector<8x8xf32>, vector<8x8xf32> -> vector<8x8xf32>
    %c0_297 = arith.constant 0 : index
    %c0_298 = arith.constant 0 : index
    %c0_299 = arith.constant 0 : index
    %315 = vector.load %arg28[%c0_297, %c0_298, %c0_299] : memref<3x16x8xf32, #tpu.memory_space<vmem>>, vector<1x16x8xf32>
    %316 = vector.shape_cast %315 : vector<1x16x8xf32> to vector<16x8xf32>
    %cst_300 = arith.constant dense<0.000000e+00> : vector<16x8xf32>
    %317 = tpu.matmul %316, %314, %cst_300 {dimension_numbers = #tpu.dot_dimension_numbers<[1], [0], [0], [1], [0, 0, 1, 1], [], []>} : vector<16x8xf32>, vector<8x8xf32>, vector<16x8xf32> -> vector<16x8xf32>
    %318 = arith.addf %311, %317 : vector<16x8xf32>
    %c1_301 = arith.constant 1 : index
    %c0_302 = arith.constant 0 : index
    %c0_303 = arith.constant 0 : index
    %319 = vector.load %arg24[%c1_301, %c0_302, %c0_303] : memref<3x8x8xf32, #tpu.memory_space<vmem>>, vector<1x8x8xf32>
    %320 = vector.shape_cast %319 : vector<1x8x8xf32> to vector<8x8xf32>
    %cst_304 = arith.constant dense<0.000000e+00> : vector<8x8xf32>
    %321 = tpu.matmul %310, %320, %cst_304 {dimension_numbers = #tpu.dot_dimension_numbers<[1], [0], [0], [1], [0, 0, 1, 1], [], []>} : vector<8x8xf32>, vector<8x8xf32>, vector<8x8xf32> -> vector<8x8xf32>
    %c1_305 = arith.constant 1 : index
    %c0_306 = arith.constant 0 : index
    %c0_307 = arith.constant 0 : index
    %322 = vector.load %arg28[%c1_305, %c0_306, %c0_307] : memref<3x16x8xf32, #tpu.memory_space<vmem>>, vector<1x16x8xf32>
    %323 = vector.shape_cast %322 : vector<1x16x8xf32> to vector<16x8xf32>
    %cst_308 = arith.constant dense<0.000000e+00> : vector<16x8xf32>
    %324 = tpu.matmul %323, %321, %cst_308 {dimension_numbers = #tpu.dot_dimension_numbers<[1], [0], [0], [1], [0, 0, 1, 1], [], []>} : vector<16x8xf32>, vector<8x8xf32>, vector<16x8xf32> -> vector<16x8xf32>
    %325 = arith.addf %318, %324 : vector<16x8xf32>
    %c2_309 = arith.constant 2 : index
    %c0_310 = arith.constant 0 : index
    %c0_311 = arith.constant 0 : index
    %326 = vector.load %arg24[%c2_309, %c0_310, %c0_311] : memref<3x8x8xf32, #tpu.memory_space<vmem>>, vector<1x8x8xf32>
    %327 = vector.shape_cast %326 : vector<1x8x8xf32> to vector<8x8xf32>
    %cst_312 = arith.constant dense<0.000000e+00> : vector<8x8xf32>
    %328 = tpu.matmul %310, %327, %cst_312 {dimension_numbers = #tpu.dot_dimension_numbers<[1], [0], [0], [1], [0, 0, 1, 1], [], []>} : vector<8x8xf32>, vector<8x8xf32>, vector<8x8xf32> -> vector<8x8xf32>
    %c2_313 = arith.constant 2 : index
    %c0_314 = arith.constant 0 : index
    %c0_315 = arith.constant 0 : index
    %329 = vector.load %arg28[%c2_313, %c0_314, %c0_315] : memref<3x16x8xf32, #tpu.memory_space<vmem>>, vector<1x16x8xf32>
    %330 = vector.shape_cast %329 : vector<1x16x8xf32> to vector<16x8xf32>
    %cst_316 = arith.constant dense<0.000000e+00> : vector<16x8xf32>
    %331 = tpu.matmul %330, %328, %cst_316 {dimension_numbers = #tpu.dot_dimension_numbers<[1], [0], [0], [1], [0, 0, 1, 1], [], []>} : vector<16x8xf32>, vector<8x8xf32>, vector<16x8xf32> -> vector<16x8xf32>
    %332 = arith.addf %325, %331 : vector<16x8xf32>
    %333 = arith.addf %332, %274 : vector<16x8xf32>
    %c0_317 = arith.constant 0 : index
    %c0_318 = arith.constant 0 : index
    %334 = vector.load %arg30[%c0_317, %c0_318] : memref<16x1xf32, #tpu.memory_space<vmem>>, vector<16x1xf32>
    %335 = vector.broadcast %334 : vector<16x1xf32> to vector<16x8xf32>
    %336 = arith.mulf %333, %335 : vector<16x8xf32>
    %c0_319 = arith.constant 0 : index
    %c0_320 = arith.constant 0 : index
    %337 = vector.load %arg31[%c0_319, %c0_320] : memref<16x1xf32, #tpu.memory_space<vmem>>, vector<16x1xf32>
    %338 = vector.broadcast %337 : vector<16x1xf32> to vector<16x8xf32>
    %339 = arith.addf %336, %338 : vector<16x8xf32>
    %cst_321 = arith.constant 0.000000e+00 : f32
    %340 = vector.broadcast %cst_321 : f32 to vector<16x8xf32>
    %341 = arith.cmpf ogt, %339, %340 : vector<16x8xf32>
    %cst_322 = arith.constant 0.000000e+00 : f32
    %342 = vector.broadcast %cst_322 : f32 to vector<16x8xf32>
    %343 = arith.minimumf %339, %342 : vector<16x8xf32>
    %344 = math.exp %343 : vector<16x8xf32>
    %cst_323 = arith.constant 1.000000e+00 : f32
    %345 = vector.broadcast %cst_323 : f32 to vector<16x8xf32>
    %346 = arith.subf %344, %345 : vector<16x8xf32>
    %347 = arith.select %341, %339, %346 : vector<16x8xi1>, vector<16x8xf32>
    %cst_324 = arith.constant 0.000000e+00 : f32
    %348 = vector.broadcast %cst_324 : f32 to vector<32x4xf32>
    %c0_325 = arith.constant 0 : index
    %c0_326 = arith.constant 0 : index
    %c0_327 = arith.constant 0 : index
    %349 = vector.load %arg32[%c0_325, %c0_326, %c0_327] : memref<3x8x4xf32, #tpu.memory_space<vmem>>, vector<1x8x4xf32>
    %350 = vector.shape_cast %349 : vector<1x8x4xf32> to vector<8x4xf32>
    %cst_328 = arith.constant dense<0.000000e+00> : vector<16x4xf32>
    %351 = tpu.matmul %347, %350, %cst_328 {dimension_numbers = #tpu.dot_dimension_numbers<[1], [0], [0], [1], [0, 0, 1, 1], [], []>} : vector<16x8xf32>, vector<8x4xf32>, vector<16x4xf32> -> vector<16x4xf32>
    %c0_329 = arith.constant 0 : index
    %c0_330 = arith.constant 0 : index
    %c0_331 = arith.constant 0 : index
    %352 = vector.load %arg38[%c0_329, %c0_330, %c0_331] : memref<3x32x16xf32, #tpu.memory_space<vmem>>, vector<1x32x16xf32>
    %353 = vector.shape_cast %352 : vector<1x32x16xf32> to vector<32x16xf32>
    %cst_332 = arith.constant dense<0.000000e+00> : vector<32x4xf32>
    %354 = tpu.matmul %353, %351, %cst_332 {dimension_numbers = #tpu.dot_dimension_numbers<[1], [0], [0], [1], [0, 0, 1, 1], [], []>} : vector<32x16xf32>, vector<16x4xf32>, vector<32x4xf32> -> vector<32x4xf32>
    %355 = arith.addf %348, %354 : vector<32x4xf32>
    %c1_333 = arith.constant 1 : index
    %c0_334 = arith.constant 0 : index
    %c0_335 = arith.constant 0 : index
    %356 = vector.load %arg32[%c1_333, %c0_334, %c0_335] : memref<3x8x4xf32, #tpu.memory_space<vmem>>, vector<1x8x4xf32>
    %357 = vector.shape_cast %356 : vector<1x8x4xf32> to vector<8x4xf32>
    %cst_336 = arith.constant dense<0.000000e+00> : vector<16x4xf32>
    %358 = tpu.matmul %347, %357, %cst_336 {dimension_numbers = #tpu.dot_dimension_numbers<[1], [0], [0], [1], [0, 0, 1, 1], [], []>} : vector<16x8xf32>, vector<8x4xf32>, vector<16x4xf32> -> vector<16x4xf32>
    %c1_337 = arith.constant 1 : index
    %c0_338 = arith.constant 0 : index
    %c0_339 = arith.constant 0 : index
    %359 = vector.load %arg38[%c1_337, %c0_338, %c0_339] : memref<3x32x16xf32, #tpu.memory_space<vmem>>, vector<1x32x16xf32>
    %360 = vector.shape_cast %359 : vector<1x32x16xf32> to vector<32x16xf32>
    %cst_340 = arith.constant dense<0.000000e+00> : vector<32x4xf32>
    %361 = tpu.matmul %360, %358, %cst_340 {dimension_numbers = #tpu.dot_dimension_numbers<[1], [0], [0], [1], [0, 0, 1, 1], [], []>} : vector<32x16xf32>, vector<16x4xf32>, vector<32x4xf32> -> vector<32x4xf32>
    %362 = arith.addf %355, %361 : vector<32x4xf32>
    %c2_341 = arith.constant 2 : index
    %c0_342 = arith.constant 0 : index
    %c0_343 = arith.constant 0 : index
    %363 = vector.load %arg32[%c2_341, %c0_342, %c0_343] : memref<3x8x4xf32, #tpu.memory_space<vmem>>, vector<1x8x4xf32>
    %364 = vector.shape_cast %363 : vector<1x8x4xf32> to vector<8x4xf32>
    %cst_344 = arith.constant dense<0.000000e+00> : vector<16x4xf32>
    %365 = tpu.matmul %347, %364, %cst_344 {dimension_numbers = #tpu.dot_dimension_numbers<[1], [0], [0], [1], [0, 0, 1, 1], [], []>} : vector<16x8xf32>, vector<8x4xf32>, vector<16x4xf32> -> vector<16x4xf32>
    %c2_345 = arith.constant 2 : index
    %c0_346 = arith.constant 0 : index
    %c0_347 = arith.constant 0 : index
    %366 = vector.load %arg38[%c2_345, %c0_346, %c0_347] : memref<3x32x16xf32, #tpu.memory_space<vmem>>, vector<1x32x16xf32>
    %367 = vector.shape_cast %366 : vector<1x32x16xf32> to vector<32x16xf32>
    %cst_348 = arith.constant dense<0.000000e+00> : vector<32x4xf32>
    %368 = tpu.matmul %367, %365, %cst_348 {dimension_numbers = #tpu.dot_dimension_numbers<[1], [0], [0], [1], [0, 0, 1, 1], [], []>} : vector<32x16xf32>, vector<16x4xf32>, vector<32x4xf32> -> vector<32x4xf32>
    %369 = arith.addf %362, %368 : vector<32x4xf32>
    %cst_349 = arith.constant 0.000000e+00 : f32
    %370 = vector.broadcast %cst_349 : f32 to vector<16x4xf32>
    %c0_350 = arith.constant 0 : index
    %c0_351 = arith.constant 0 : index
    %c0_352 = arith.constant 0 : index
    %371 = vector.load %arg32[%c0_350, %c0_351, %c0_352] : memref<3x8x4xf32, #tpu.memory_space<vmem>>, vector<1x8x4xf32>
    %372 = vector.shape_cast %371 : vector<1x8x4xf32> to vector<8x4xf32>
    %cst_353 = arith.constant dense<0.000000e+00> : vector<16x4xf32>
    %373 = tpu.matmul %347, %372, %cst_353 {dimension_numbers = #tpu.dot_dimension_numbers<[1], [0], [0], [1], [0, 0, 1, 1], [], []>} : vector<16x8xf32>, vector<8x4xf32>, vector<16x4xf32> -> vector<16x4xf32>
    %c0_354 = arith.constant 0 : index
    %c0_355 = arith.constant 0 : index
    %c0_356 = arith.constant 0 : index
    %374 = vector.load %arg34[%c0_354, %c0_355, %c0_356] : memref<3x16x16xf32, #tpu.memory_space<vmem>>, vector<1x16x16xf32>
    %375 = vector.shape_cast %374 : vector<1x16x16xf32> to vector<16x16xf32>
    %cst_357 = arith.constant dense<0.000000e+00> : vector<16x4xf32>
    %376 = tpu.matmul %375, %373, %cst_357 {dimension_numbers = #tpu.dot_dimension_numbers<[1], [0], [0], [1], [0, 0, 1, 1], [], []>} : vector<16x16xf32>, vector<16x4xf32>, vector<16x4xf32> -> vector<16x4xf32>
    %377 = arith.addf %370, %376 : vector<16x4xf32>
    %c1_358 = arith.constant 1 : index
    %c0_359 = arith.constant 0 : index
    %c0_360 = arith.constant 0 : index
    %378 = vector.load %arg32[%c1_358, %c0_359, %c0_360] : memref<3x8x4xf32, #tpu.memory_space<vmem>>, vector<1x8x4xf32>
    %379 = vector.shape_cast %378 : vector<1x8x4xf32> to vector<8x4xf32>
    %cst_361 = arith.constant dense<0.000000e+00> : vector<16x4xf32>
    %380 = tpu.matmul %347, %379, %cst_361 {dimension_numbers = #tpu.dot_dimension_numbers<[1], [0], [0], [1], [0, 0, 1, 1], [], []>} : vector<16x8xf32>, vector<8x4xf32>, vector<16x4xf32> -> vector<16x4xf32>
    %c1_362 = arith.constant 1 : index
    %c0_363 = arith.constant 0 : index
    %c0_364 = arith.constant 0 : index
    %381 = vector.load %arg34[%c1_362, %c0_363, %c0_364] : memref<3x16x16xf32, #tpu.memory_space<vmem>>, vector<1x16x16xf32>
    %382 = vector.shape_cast %381 : vector<1x16x16xf32> to vector<16x16xf32>
    %cst_365 = arith.constant dense<0.000000e+00> : vector<16x4xf32>
    %383 = tpu.matmul %382, %380, %cst_365 {dimension_numbers = #tpu.dot_dimension_numbers<[1], [0], [0], [1], [0, 0, 1, 1], [], []>} : vector<16x16xf32>, vector<16x4xf32>, vector<16x4xf32> -> vector<16x4xf32>
    %384 = arith.addf %377, %383 : vector<16x4xf32>
    %c2_366 = arith.constant 2 : index
    %c0_367 = arith.constant 0 : index
    %c0_368 = arith.constant 0 : index
    %385 = vector.load %arg32[%c2_366, %c0_367, %c0_368] : memref<3x8x4xf32, #tpu.memory_space<vmem>>, vector<1x8x4xf32>
    %386 = vector.shape_cast %385 : vector<1x8x4xf32> to vector<8x4xf32>
    %cst_369 = arith.constant dense<0.000000e+00> : vector<16x4xf32>
    %387 = tpu.matmul %347, %386, %cst_369 {dimension_numbers = #tpu.dot_dimension_numbers<[1], [0], [0], [1], [0, 0, 1, 1], [], []>} : vector<16x8xf32>, vector<8x4xf32>, vector<16x4xf32> -> vector<16x4xf32>
    %c2_370 = arith.constant 2 : index
    %c0_371 = arith.constant 0 : index
    %c0_372 = arith.constant 0 : index
    %388 = vector.load %arg34[%c2_370, %c0_371, %c0_372] : memref<3x16x16xf32, #tpu.memory_space<vmem>>, vector<1x16x16xf32>
    %389 = vector.shape_cast %388 : vector<1x16x16xf32> to vector<16x16xf32>
    %cst_373 = arith.constant dense<0.000000e+00> : vector<16x4xf32>
    %390 = tpu.matmul %389, %387, %cst_373 {dimension_numbers = #tpu.dot_dimension_numbers<[1], [0], [0], [1], [0, 0, 1, 1], [], []>} : vector<16x16xf32>, vector<16x4xf32>, vector<16x4xf32> -> vector<16x4xf32>
    %391 = arith.addf %384, %390 : vector<16x4xf32>
    %c0_374 = arith.constant 0 : index
    %c0_375 = arith.constant 0 : index
    %392 = vector.load %arg35[%c0_374, %c0_375] : memref<16x1xf32, #tpu.memory_space<vmem>>, vector<16x1xf32>
    %393 = vector.broadcast %392 : vector<16x1xf32> to vector<16x4xf32>
    %394 = arith.mulf %391, %393 : vector<16x4xf32>
    %c0_376 = arith.constant 0 : index
    %c0_377 = arith.constant 0 : index
    %395 = vector.load %arg36[%c0_376, %c0_377] : memref<16x1xf32, #tpu.memory_space<vmem>>, vector<16x1xf32>
    %396 = vector.broadcast %395 : vector<16x1xf32> to vector<16x4xf32>
    %397 = arith.addf %394, %396 : vector<16x4xf32>
    %cst_378 = arith.constant 0.000000e+00 : f32
    %398 = vector.broadcast %cst_378 : f32 to vector<16x4xf32>
    %399 = arith.cmpf ogt, %397, %398 : vector<16x4xf32>
    %cst_379 = arith.constant 0.000000e+00 : f32
    %400 = vector.broadcast %cst_379 : f32 to vector<16x4xf32>
    %401 = arith.minimumf %397, %400 : vector<16x4xf32>
    %402 = math.exp %401 : vector<16x4xf32>
    %cst_380 = arith.constant 1.000000e+00 : f32
    %403 = vector.broadcast %cst_380 : f32 to vector<16x4xf32>
    %404 = arith.subf %402, %403 : vector<16x4xf32>
    %405 = arith.select %399, %397, %404 : vector<16x4xi1>, vector<16x4xf32>
    %cst_381 = arith.constant 0.000000e+00 : f32
    %406 = vector.broadcast %cst_381 : f32 to vector<32x4xf32>
    %c0_382 = arith.constant 0 : index
    %c0_383 = arith.constant 0 : index
    %c0_384 = arith.constant 0 : index
    %407 = vector.load %arg33[%c0_382, %c0_383, %c0_384] : memref<3x4x4xf32, #tpu.memory_space<vmem>>, vector<1x4x4xf32>
    %408 = vector.shape_cast %407 : vector<1x4x4xf32> to vector<4x4xf32>
    %cst_385 = arith.constant dense<0.000000e+00> : vector<16x4xf32>
    %409 = tpu.matmul %405, %408, %cst_385 {dimension_numbers = #tpu.dot_dimension_numbers<[1], [0], [0], [1], [0, 0, 1, 1], [], []>} : vector<16x4xf32>, vector<4x4xf32>, vector<16x4xf32> -> vector<16x4xf32>
    %c0_386 = arith.constant 0 : index
    %c0_387 = arith.constant 0 : index
    %c0_388 = arith.constant 0 : index
    %410 = vector.load %arg37[%c0_386, %c0_387, %c0_388] : memref<3x32x16xf32, #tpu.memory_space<vmem>>, vector<1x32x16xf32>
    %411 = vector.shape_cast %410 : vector<1x32x16xf32> to vector<32x16xf32>
    %cst_389 = arith.constant dense<0.000000e+00> : vector<32x4xf32>
    %412 = tpu.matmul %411, %409, %cst_389 {dimension_numbers = #tpu.dot_dimension_numbers<[1], [0], [0], [1], [0, 0, 1, 1], [], []>} : vector<32x16xf32>, vector<16x4xf32>, vector<32x4xf32> -> vector<32x4xf32>
    %413 = arith.addf %406, %412 : vector<32x4xf32>
    %c1_390 = arith.constant 1 : index
    %c0_391 = arith.constant 0 : index
    %c0_392 = arith.constant 0 : index
    %414 = vector.load %arg33[%c1_390, %c0_391, %c0_392] : memref<3x4x4xf32, #tpu.memory_space<vmem>>, vector<1x4x4xf32>
    %415 = vector.shape_cast %414 : vector<1x4x4xf32> to vector<4x4xf32>
    %cst_393 = arith.constant dense<0.000000e+00> : vector<16x4xf32>
    %416 = tpu.matmul %405, %415, %cst_393 {dimension_numbers = #tpu.dot_dimension_numbers<[1], [0], [0], [1], [0, 0, 1, 1], [], []>} : vector<16x4xf32>, vector<4x4xf32>, vector<16x4xf32> -> vector<16x4xf32>
    %c1_394 = arith.constant 1 : index
    %c0_395 = arith.constant 0 : index
    %c0_396 = arith.constant 0 : index
    %417 = vector.load %arg37[%c1_394, %c0_395, %c0_396] : memref<3x32x16xf32, #tpu.memory_space<vmem>>, vector<1x32x16xf32>
    %418 = vector.shape_cast %417 : vector<1x32x16xf32> to vector<32x16xf32>
    %cst_397 = arith.constant dense<0.000000e+00> : vector<32x4xf32>
    %419 = tpu.matmul %418, %416, %cst_397 {dimension_numbers = #tpu.dot_dimension_numbers<[1], [0], [0], [1], [0, 0, 1, 1], [], []>} : vector<32x16xf32>, vector<16x4xf32>, vector<32x4xf32> -> vector<32x4xf32>
    %420 = arith.addf %413, %419 : vector<32x4xf32>
    %c2_398 = arith.constant 2 : index
    %c0_399 = arith.constant 0 : index
    %c0_400 = arith.constant 0 : index
    %421 = vector.load %arg33[%c2_398, %c0_399, %c0_400] : memref<3x4x4xf32, #tpu.memory_space<vmem>>, vector<1x4x4xf32>
    %422 = vector.shape_cast %421 : vector<1x4x4xf32> to vector<4x4xf32>
    %cst_401 = arith.constant dense<0.000000e+00> : vector<16x4xf32>
    %423 = tpu.matmul %405, %422, %cst_401 {dimension_numbers = #tpu.dot_dimension_numbers<[1], [0], [0], [1], [0, 0, 1, 1], [], []>} : vector<16x4xf32>, vector<4x4xf32>, vector<16x4xf32> -> vector<16x4xf32>
    %c2_402 = arith.constant 2 : index
    %c0_403 = arith.constant 0 : index
    %c0_404 = arith.constant 0 : index
    %424 = vector.load %arg37[%c2_402, %c0_403, %c0_404] : memref<3x32x16xf32, #tpu.memory_space<vmem>>, vector<1x32x16xf32>
    %425 = vector.shape_cast %424 : vector<1x32x16xf32> to vector<32x16xf32>
    %cst_405 = arith.constant dense<0.000000e+00> : vector<32x4xf32>
    %426 = tpu.matmul %425, %423, %cst_405 {dimension_numbers = #tpu.dot_dimension_numbers<[1], [0], [0], [1], [0, 0, 1, 1], [], []>} : vector<32x16xf32>, vector<16x4xf32>, vector<32x4xf32> -> vector<32x4xf32>
    %427 = arith.addf %420, %426 : vector<32x4xf32>
    %428 = arith.addf %427, %369 : vector<32x4xf32>
    %c0_406 = arith.constant 0 : index
    %c0_407 = arith.constant 0 : index
    %429 = vector.load %arg39[%c0_406, %c0_407] : memref<32x1xf32, #tpu.memory_space<vmem>>, vector<32x1xf32>
    %430 = vector.broadcast %429 : vector<32x1xf32> to vector<32x4xf32>
    %431 = arith.mulf %428, %430 : vector<32x4xf32>
    %c0_408 = arith.constant 0 : index
    %c0_409 = arith.constant 0 : index
    %432 = vector.load %arg40[%c0_408, %c0_409] : memref<32x1xf32, #tpu.memory_space<vmem>>, vector<32x1xf32>
    %433 = vector.broadcast %432 : vector<32x1xf32> to vector<32x4xf32>
    %434 = arith.addf %431, %433 : vector<32x4xf32>
    %cst_410 = arith.constant 0.000000e+00 : f32
    %435 = vector.broadcast %cst_410 : f32 to vector<32x4xf32>
    %436 = arith.cmpf ogt, %434, %435 : vector<32x4xf32>
    %cst_411 = arith.constant 0.000000e+00 : f32
    %437 = vector.broadcast %cst_411 : f32 to vector<32x4xf32>
    %438 = arith.minimumf %434, %437 : vector<32x4xf32>
    %439 = math.exp %438 : vector<32x4xf32>
    %cst_412 = arith.constant 1.000000e+00 : f32
    %440 = vector.broadcast %cst_412 : f32 to vector<32x4xf32>
    %441 = arith.subf %439, %440 : vector<32x4xf32>
    %442 = arith.select %436, %434, %441 : vector<32x4xi1>, vector<32x4xf32>
    %cst_413 = arith.constant dense<0.000000e+00> : vector<32xf32>
    %443 = vector.multi_reduction <add>, %442, %cst_413 [1] : vector<32x4xf32> to vector<32xf32>
    %444 = vector.shape_cast %443 : vector<32xf32> to vector<32x1xf32>
    %cst_414 = arith.constant 4.000000e+00 : f32
    %445 = vector.broadcast %cst_414 : f32 to vector<32x1xf32>
    %446 = arith.divf %444, %445 : vector<32x1xf32>
    %c0_415 = arith.constant 0 : index
    %c0_416 = arith.constant 0 : index
    %c0_417 = arith.constant 0 : index
    %447 = vector.load %arg41[%c0_415, %c0_416, %c0_417] : memref<1x32x1xf32, #tpu.memory_space<vmem>>, vector<1x32x1xf32>
    %448 = vector.shape_cast %447 : vector<1x32x1xf32> to vector<32x1xf32>
    %449 = vector.shape_cast %446 : vector<32x1xf32> to vector<1x32x1xf32>
    tpu.vector_store %arg41[%c0_415, %c0_416, %c0_417], %449 {strides = array<i32>} : memref<1x32x1xf32, #tpu.memory_space<vmem>>, vector<1x32x1xf32>,
    return
  }
  func.func @transform_0(%arg0: i32) -> (i32, i32, i32) {
    %c0_i32 = arith.constant 0 : i32
    %c0_i32_0 = arith.constant 0 : i32
    %c0_i32_1 = arith.constant 0 : i32
    return %arg0, %c0_i32, %c0_i32_0 : i32, i32, i32
  }
  func.func @transform_1(%arg0: i32) -> (i32, i32, i32) {
    %c0_i32 = arith.constant 0 : i32
    %c0_i32_0 = arith.constant 0 : i32
    %c0_i32_1 = arith.constant 0 : i32
    %c0_i32_2 = arith.constant 0 : i32
    return %c0_i32, %c0_i32_0, %c0_i32_1 : i32, i32, i32
  }
  func.func @transform_2(%arg0: i32) -> (i32, i32, i32) {
    %c0_i32 = arith.constant 0 : i32
    %c0_i32_0 = arith.constant 0 : i32
    %c0_i32_1 = arith.constant 0 : i32
    %c0_i32_2 = arith.constant 0 : i32
    return %c0_i32, %c0_i32_0, %c0_i32_1 : i32, i32, i32
  }
  func.func @transform_3(%arg0: i32) -> (i32, i32) {
    %c0_i32 = arith.constant 0 : i32
    %c0_i32_0 = arith.constant 0 : i32
    %c0_i32_1 = arith.constant 0 : i32
    return %c0_i32, %c0_i32_0 : i32, i32
  }
  func.func @transform_4(%arg0: i32) -> (i32, i32, i32) {
    %c0_i32 = arith.constant 0 : i32
    %c0_i32_0 = arith.constant 0 : i32
    %c0_i32_1 = arith.constant 0 : i32
    %c0_i32_2 = arith.constant 0 : i32
    return %c0_i32, %c0_i32_0, %c0_i32_1 : i32, i32, i32
  }
  func.func @transform_5(%arg0: i32) -> (i32, i32, i32) {
    %c0_i32 = arith.constant 0 : i32
    %c0_i32_0 = arith.constant 0 : i32
    %c0_i32_1 = arith.constant 0 : i32
    %c0_i32_2 = arith.constant 0 : i32
    return %c0_i32, %c0_i32_0, %c0_i32_1 : i32, i32, i32
  }
  func.func @transform_6(%arg0: i32) -> (i32, i32, i32) {
    %c0_i32 = arith.constant 0 : i32
    %c0_i32_0 = arith.constant 0 : i32
    %c0_i32_1 = arith.constant 0 : i32
    %c0_i32_2 = arith.constant 0 : i32
    return %c0_i32, %c0_i32_0, %c0_i32_1 : i32, i32, i32
  }
  func.func @transform_7(%arg0: i32) -> (i32, i32) {
    %c0_i32 = arith.constant 0 : i32
    %c0_i32_0 = arith.constant 0 : i32
    %c0_i32_1 = arith.constant 0 : i32
    return %c0_i32, %c0_i32_0 : i32, i32
  }
  func.func @transform_8(%arg0: i32) -> (i32, i32) {
    %c0_i32 = arith.constant 0 : i32
    %c0_i32_0 = arith.constant 0 : i32
    %c0_i32_1 = arith.constant 0 : i32
    return %c0_i32, %c0_i32_0 : i32, i32
  }
  func.func @transform_9(%arg0: i32) -> (i32, i32, i32) {
    %c0_i32 = arith.constant 0 : i32
    %c0_i32_0 = arith.constant 0 : i32
    %c0_i32_1 = arith.constant 0 : i32
    %c0_i32_2 = arith.constant 0 : i32
    return %c0_i32, %c0_i32_0, %c0_i32_1 : i32, i32, i32
  }
  func.func @transform_10(%arg0: i32) -> (i32, i32, i32) {
    %c0_i32 = arith.constant 0 : i32
    %c0_i32_0 = arith.constant 0 : i32
    %c0_i32_1 = arith.constant 0 : i32
    %c0_i32_2 = arith.constant 0 : i32
    return %c0_i32, %c0_i32_0, %c0_i32_1 : i32, i32, i32
  }
  func.func @transform_11(%arg0: i32) -> (i32, i32) {
    %c0_i32 = arith.constant 0 : i32
    %c0_i32_0 = arith.constant 0 : i32
    %c0_i32_1 = arith.constant 0 : i32
    return %c0_i32, %c0_i32_0 : i32, i32
  }
  func.func @transform_12(%arg0: i32) -> (i32, i32) {
    %c0_i32 = arith.constant 0 : i32
    %c0_i32_0 = arith.constant 0 : i32
    %c0_i32_1 = arith.constant 0 : i32
    return %c0_i32, %c0_i32_0 : i32, i32
  }
  func.func @transform_13(%arg0: i32) -> (i32, i32, i32) {
    %c0_i32 = arith.constant 0 : i32
    %c0_i32_0 = arith.constant 0 : i32
    %c0_i32_1 = arith.constant 0 : i32
    %c0_i32_2 = arith.constant 0 : i32
    return %c0_i32, %c0_i32_0, %c0_i32_1 : i32, i32, i32
  }
  func.func @transform_14(%arg0: i32) -> (i32, i32, i32) {
    %c0_i32 = arith.constant 0 : i32
    %c0_i32_0 = arith.constant 0 : i32
    %c0_i32_1 = arith.constant 0 : i32
    %c0_i32_2 = arith.constant 0 : i32
    return %c0_i32, %c0_i32_0, %c0_i32_1 : i32, i32, i32
  }
  func.func @transform_15(%arg0: i32) -> (i32, i32, i32) {
    %c0_i32 = arith.constant 0 : i32
    %c0_i32_0 = arith.constant 0 : i32
    %c0_i32_1 = arith.constant 0 : i32
    %c0_i32_2 = arith.constant 0 : i32
    return %c0_i32, %c0_i32_0, %c0_i32_1 : i32, i32, i32
  }
  func.func @transform_16(%arg0: i32) -> (i32, i32) {
    %c0_i32 = arith.constant 0 : i32
    %c0_i32_0 = arith.constant 0 : i32
    %c0_i32_1 = arith.constant 0 : i32
    return %c0_i32, %c0_i32_0 : i32, i32
  }
  func.func @transform_17(%arg0: i32) -> (i32, i32) {
    %c0_i32 = arith.constant 0 : i32
    %c0_i32_0 = arith.constant 0 : i32
    %c0_i32_1 = arith.constant 0 : i32
    return %c0_i32, %c0_i32_0 : i32, i32
  }
  func.func @transform_18(%arg0: i32) -> (i32, i32, i32) {
    %c0_i32 = arith.constant 0 : i32
    %c0_i32_0 = arith.constant 0 : i32
    %c0_i32_1 = arith.constant 0 : i32
    %c0_i32_2 = arith.constant 0 : i32
    return %c0_i32, %c0_i32_0, %c0_i32_1 : i32, i32, i32
  }
  func.func @transform_19(%arg0: i32) -> (i32, i32, i32) {
    %c0_i32 = arith.constant 0 : i32
    %c0_i32_0 = arith.constant 0 : i32
    %c0_i32_1 = arith.constant 0 : i32
    %c0_i32_2 = arith.constant 0 : i32
    return %c0_i32, %c0_i32_0, %c0_i32_1 : i32, i32, i32
  }
  func.func @transform_20(%arg0: i32) -> (i32, i32) {
    %c0_i32 = arith.constant 0 : i32
    %c0_i32_0 = arith.constant 0 : i32
    %c0_i32_1 = arith.constant 0 : i32
    return %c0_i32, %c0_i32_0 : i32, i32
  }
  func.func @transform_21(%arg0: i32) -> (i32, i32) {
    %c0_i32 = arith.constant 0 : i32
    %c0_i32_0 = arith.constant 0 : i32
    %c0_i32_1 = arith.constant 0 : i32
    return %c0_i32, %c0_i32_0 : i32, i32
  }
  func.func @transform_22(%arg0: i32) -> (i32, i32, i32) {
    %c0_i32 = arith.constant 0 : i32
    %c0_i32_0 = arith.constant 0 : i32
    %c0_i32_1 = arith.constant 0 : i32
    %c0_i32_2 = arith.constant 0 : i32
    return %c0_i32, %c0_i32_0, %c0_i32_1 : i32, i32, i32
  }
  func.func @transform_23(%arg0: i32) -> (i32, i32, i32) {
    %c0_i32 = arith.constant 0 : i32
    %c0_i32_0 = arith.constant 0 : i32
    %c0_i32_1 = arith.constant 0 : i32
    %c0_i32_2 = arith.constant 0 : i32
    return %c0_i32, %c0_i32_0, %c0_i32_1 : i32, i32, i32
  }
  func.func @transform_24(%arg0: i32) -> (i32, i32, i32) {
    %c0_i32 = arith.constant 0 : i32
    %c0_i32_0 = arith.constant 0 : i32
    %c0_i32_1 = arith.constant 0 : i32
    %c0_i32_2 = arith.constant 0 : i32
    return %c0_i32, %c0_i32_0, %c0_i32_1 : i32, i32, i32
  }
  func.func @transform_25(%arg0: i32) -> (i32, i32) {
    %c0_i32 = arith.constant 0 : i32
    %c0_i32_0 = arith.constant 0 : i32
    %c0_i32_1 = arith.constant 0 : i32
    return %c0_i32, %c0_i32_0 : i32, i32
  }
  func.func @transform_26(%arg0: i32) -> (i32, i32) {
    %c0_i32 = arith.constant 0 : i32
    %c0_i32_0 = arith.constant 0 : i32
    %c0_i32_1 = arith.constant 0 : i32
    return %c0_i32, %c0_i32_0 : i32, i32
  }
  func.func @transform_27(%arg0: i32) -> (i32, i32, i32) {
    %c0_i32 = arith.constant 0 : i32
    %c0_i32_0 = arith.constant 0 : i32
    %c0_i32_1 = arith.constant 0 : i32
    %c0_i32_2 = arith.constant 0 : i32
    return %c0_i32, %c0_i32_0, %c0_i32_1 : i32, i32, i32
  }
  func.func @transform_28(%arg0: i32) -> (i32, i32, i32) {
    %c0_i32 = arith.constant 0 : i32
    %c0_i32_0 = arith.constant 0 : i32
    %c0_i32_1 = arith.constant 0 : i32
    %c0_i32_2 = arith.constant 0 : i32
    return %c0_i32, %c0_i32_0, %c0_i32_1 : i32, i32, i32
  }
  func.func @transform_29(%arg0: i32) -> (i32, i32) {
    %c0_i32 = arith.constant 0 : i32
    %c0_i32_0 = arith.constant 0 : i32
    %c0_i32_1 = arith.constant 0 : i32
    return %c0_i32, %c0_i32_0 : i32, i32
  }
  func.func @transform_30(%arg0: i32) -> (i32, i32) {
    %c0_i32 = arith.constant 0 : i32
    %c0_i32_0 = arith.constant 0 : i32
    %c0_i32_1 = arith.constant 0 : i32
    return %c0_i32, %c0_i32_0 : i32, i32
  }
  func.func @transform_31(%arg0: i32) -> (i32, i32, i32) {
    %c0_i32 = arith.constant 0 : i32
    %c0_i32_0 = arith.constant 0 : i32
    %c0_i32_1 = arith.constant 0 : i32
    %c0_i32_2 = arith.constant 0 : i32
    return %c0_i32, %c0_i32_0, %c0_i32_1 : i32, i32, i32
  }
  func.func @transform_32(%arg0: i32) -> (i32, i32, i32) {
    %c0_i32 = arith.constant 0 : i32
    %c0_i32_0 = arith.constant 0 : i32
    %c0_i32_1 = arith.constant 0 : i32
    %c0_i32_2 = arith.constant 0 : i32
    return %c0_i32, %c0_i32_0, %c0_i32_1 : i32, i32, i32
  }
  func.func @transform_33(%arg0: i32) -> (i32, i32, i32) {
    %c0_i32 = arith.constant 0 : i32
    %c0_i32_0 = arith.constant 0 : i32
    %c0_i32_1 = arith.constant 0 : i32
    %c0_i32_2 = arith.constant 0 : i32
    return %c0_i32, %c0_i32_0, %c0_i32_1 : i32, i32, i32
  }
  func.func @transform_34(%arg0: i32) -> (i32, i32) {
    %c0_i32 = arith.constant 0 : i32
    %c0_i32_0 = arith.constant 0 : i32
    %c0_i32_1 = arith.constant 0 : i32
    return %c0_i32, %c0_i32_0 : i32, i32
  }
  func.func @transform_35(%arg0: i32) -> (i32, i32) {
    %c0_i32 = arith.constant 0 : i32
    %c0_i32_0 = arith.constant 0 : i32
    %c0_i32_1 = arith.constant 0 : i32
    return %c0_i32, %c0_i32_0 : i32, i32
  }
  func.func @transform_36(%arg0: i32) -> (i32, i32, i32) {
    %c0_i32 = arith.constant 0 : i32
    %c0_i32_0 = arith.constant 0 : i32
    %c0_i32_1 = arith.constant 0 : i32
    %c0_i32_2 = arith.constant 0 : i32
    return %c0_i32, %c0_i32_0, %c0_i32_1 : i32, i32, i32
  }
  func.func @transform_37(%arg0: i32) -> (i32, i32, i32) {
    %c0_i32 = arith.constant 0 : i32
    %c0_i32_0 = arith.constant 0 : i32
    %c0_i32_1 = arith.constant 0 : i32
    %c0_i32_2 = arith.constant 0 : i32
    return %c0_i32, %c0_i32_0, %c0_i32_1 : i32, i32, i32
  }
  func.func @transform_38(%arg0: i32) -> (i32, i32) {
    %c0_i32 = arith.constant 0 : i32
    %c0_i32_0 = arith.constant 0 : i32
    %c0_i32_1 = arith.constant 0 : i32
    return %c0_i32, %c0_i32_0 : i32, i32
  }
  func.func @transform_39(%arg0: i32) -> (i32, i32) {
    %c0_i32 = arith.constant 0 : i32
    %c0_i32_0 = arith.constant 0 : i32
    %c0_i32_1 = arith.constant 0 : i32
    return %c0_i32, %c0_i32_0 : i32, i32
  }
  func.func @transform_40(%arg0: i32) -> (i32, i32, i32) {
    %c0_i32 = arith.constant 0 : i32
    %c0_i32_0 = arith.constant 0 : i32
    %c0_i32_1 = arith.constant 0 : i32
    return %arg0, %c0_i32, %c0_i32_0 : i32, i32, i32
  }
}

</mosaic_0001>

<bundles_post_ra>
// kernel: encoder_forward.1
= control target key start
LH: loop header
LB: loop body
LE: loop exit
PB: predicated region body
PF: predicated region fallthrough
CT: control target
= control target key end

     0   :  { %s9302_s6 = smov 1   ;;  %s9303_s10 = smov 2   ;;  %s10383_s0 = inlined_call_operand.smem [shape: u32[41], index: -1, kind: input, shape index: {}] }
   0x1   :  { %s9364_s5 = sld [smem:[%s10383_s0]]   ;;  %s9304_s14 = smov 3  }
   0x2   :  { %s9369_s9 = sld [smem:[%s10383_s0 + %s9302_s6]]   ;;  %s9305_s18 = smov 4  }
   0x3   :  { %s9374_s13 = sld [smem:[%s10383_s0 + %s9303_s10]]   ;;  %s9306_s22 = smov 5  }
   0x4   :  { %s9379_s17 = sld [smem:[%s10383_s0 + %s9304_s14]]   ;;  %s9307_s26 = smov 6  }
   0x5   :  { %s9384_s21 = sld [smem:[%s10383_s0 + %s9305_s18]]   ;;  %s9308_s30 = smov 7  }
   0x6   :  { %s9389_s25 = sld [smem:[%s10383_s0 + %s9306_s22]]   ;;  %s9309_s4 = smov 8  }
   0x7   :  { %10418 = sst [smem:[#allocation17_spill]] %s9364_s5  ;;  %s9310_s10 = smov 9  }
   0x8   :  { %s9394_s29 = sld [smem:[%s10383_s0 + %s9307_s26]]   ;;  %s9311_s15 = smov 10  }
   0x9   :  { %s9399_s3 = sld [smem:[%s10383_s0 + %s9308_s30]]   ;;  %s9312_s20 = smov 11  }
   0xa   :  { %s9404_s8 = sld [smem:[%s10383_s0 + %s9309_s4]]   ;;  %s9313_s26 = smov 12  }
   0xb   :  { %10419 = sst [smem:[#allocation18_spill]] %s9384_s21  ;;  %s9314_s1 = smov 13  }
   0xc   :  { %10420 = sst [smem:[#allocation19_spill]] %s9389_s25  ;;  %s9315_s7 = smov 14  }
   0xd   :  { %s9409_s14 = sld [smem:[%s10383_s0 + %s9310_s10]]   ;;  %s9317_s22 = smov 16  }
   0xe   :  { %10421 = sst [smem:[#allocation20_spill]] %s9394_s29  ;;  %s9318_s28 = smov 17  }
   0xf   :  { %10422 = sst [smem:[#allocation21_spill]] %s9399_s3 }
  0x10   :  { %10423 = sst [smem:[#allocation22_spill]] %s9404_s8 }
  0x11   :  { %s9414_s19 = sld [smem:[%s10383_s0 + %s9311_s15]]   ;;  %s9316_s15 = smov 15  }
  0x12   :  { %s9419_s24 = sld [smem:[%s10383_s0 + %s9312_s20]]  }
  0x13   :  { %10424 = sst [smem:[#allocation23_spill]] %s9409_s14 }
  0x14   :  { %s9424_s30 = sld [smem:[%s10383_s0 + %s9313_s26]]  }
  0x15   :  { %s9429_s6 = sld [smem:[%s10383_s0 + %s9314_s1]]  }
  0x16   :  { %s9434_s12 = sld [smem:[%s10383_s0 + %s9315_s7]]   ;;  %s9319_s7 = smov 18  }
  0x17   :  { %10425 = sst [smem:[#allocation24_spill]] %s9414_s19 }
  0x18   :  { %10426 = sst [smem:[#allocation25_spill]] %s9419_s24 }
  0x19   :  { %s9439_s20 = sld [smem:[%s10383_s0 + %s9316_s15]]   ;;  %s9320_s15 = smov 19  }
  0x1a   :  { %s9444_s27 = sld [smem:[%s10383_s0 + %s9317_s22]]   ;;  %s9321_s22 = smov 20  }
  0x1b   :  { %10427 = sst [smem:[#allocation26_spill]] %s9429_s6 }
  0x1c   :  { %10428 = sst [smem:[#allocation27_spill]] %s9434_s12 }
  0x1d   :  { %s9449_s4 = sld [smem:[%s10383_s0 + %s9318_s28]]   ;;  %s9322_s28 = smov 21  }
  0x1e   :  { %s9454_s6 = sld [smem:[%s10383_s0 + %s9319_s7]]   ;;  %s9323_s7 = smov 22  }
  0x1f   :  { %s9459_s14 = sld [smem:[%s10383_s0 + %s9320_s15]]   ;;  %s9324_s15 = smov 23  }
  0x20   :  { %10429 = sst [smem:[#allocation28_spill]] %s9444_s27 }
  0x21   :  { %s9464_s25 = sld [smem:[%s10383_s0 + %s9321_s22]]   ;;  %s9325_s22 = smov 24  }
  0x22   :  { %s9469_s29 = sld [smem:[%s10383_s0 + %s9322_s28]]   ;;  %s9326_s28 = smov 25  }
  0x23   :  { %s9489_s27 = sld [smem:[%s10383_s0 + %s9326_s28]]   ;;  %s9330_s28 = smov 29  }
  0x24   :  { %10430 = sst [smem:[#allocation29_spill]] %s9454_s6 }
  0x25   :  { %10431 = sst [smem:[#allocation30_spill]] %s9459_s14 }
  0x26   :  { %s9474_s6 = sld [smem:[%s10383_s0 + %s9323_s7]]   ;;  %s9327_s7 = smov 26  }
  0x27   :  { %10432 = sst [smem:[#allocation31_spill]] %s9464_s25 }
  0x28   :  { %s9479_s14 = sld [smem:[%s10383_s0 + %s9324_s15]]   ;;  %s9328_s15 = smov 27  }
  0x29   :  { %s9484_s25 = sld [smem:[%s10383_s0 + %s9325_s22]]   ;;  %s9329_s22 = smov 28  }
  0x2a   :  { %10434 = sst [smem:[#allocation33_spill]] %s9489_s27 }
  0x2b   :  { %s9494_s24 = sld [smem:[%s10383_s0 + %s9327_s7]]   ;;  %s9331_s7 = smov 30  }
  0x2c   :  { %10433 = sst [smem:[#allocation32_spill]] %s9474_s6 }
  0x2d   :  { %s9499_s8 = sld [smem:[%s10383_s0 + %s9328_s15]]   ;;  %s9332_s15 = smov 31  }
  0x2e   :  { %s9504_s19 = sld [smem:[%s10383_s0 + %s9329_s22]]   ;;  %s9333_s22 = smov 32  }
  0x2f   :  { %s9509_s27 = sld [smem:[%s10383_s0 + %s9330_s28]]   ;;  %s9334_s28 = smov 33  }
  0x30   :  { %s9514_s21 = sld [smem:[%s10383_s0 + %s9331_s7]]   ;;  %s9335_s7 = smov 34  }
  0x31   :  { %10435 = sst [smem:[#allocation34_spill]] %s9494_s24 }
  0x33   :  { %10436 = sst [smem:[#allocation35_spill]] %s9499_s8 }
  0x34   :  { %10437 = sst [smem:[#allocation36_spill]] %s9504_s19 }
  0x35   :  { %10438 = sst [smem:[#allocation37_spill]] %s9509_s27 }
  0x36   :  { %10439 = sst [smem:[#allocation38_spill]] %s9514_s21 }
  0x37   :  { %s9519_s8 = sld [smem:[%s10383_s0 + %s9332_s15]]   ;;  %s9336_s15 = smov 35  }
  0x38   :  { %s9524_s19 = sld [smem:[%s10383_s0 + %s9333_s22]]   ;;  %s9337_s22 = smov 36  }
  0x39   :  { %s9529_s27 = sld [smem:[%s10383_s0 + %s9334_s28]]   ;;  %s9338_s28 = smov 37  }
  0x3a   :  { %s9534_s21 = sld [smem:[%s10383_s0 + %s9335_s7]]   ;;  %s9339_s7 = smov 38  }
  0x3b   :  { %s9549_s24 = sld [smem:[%s10383_s0 + %s9338_s28]]  }
  0x3d   :  { %10440 = sst [smem:[#allocation39_spill]] %s9519_s8 }
  0x3e   :  { %10441 = sst [smem:[#allocation40_spill]] %s9524_s19 }
  0x3f   :  { %s9539_s8 = sld [smem:[%s10383_s0 + %s9336_s15]]   ;;  %s9340_s15 = smov 39  }
  0x40   :  { %10442 = sst [smem:[#allocation41_spill]] %s9534_s21 }
  0x41   :  { %s9544_s19 = sld [smem:[%s10383_s0 + %s9337_s22]]   ;;  %s9341_s22 = smov 40  }
  0x42   :  { %10445 = sst [smem:[#allocation44_spill]] %s9549_s24 }
  0x43   :  { %s9554_s21 = sld [smem:[%s10383_s0 + %s9339_s7]]  }
  0x45   :  { %10443 = sst [smem:[#allocation42_spill]] %s9539_s8 }
  0x46   :  { %s9559_s8 = sld [smem:[%s10383_s0 + %s9340_s15]]  }
  0x47   :  { %10444 = sst [smem:[#allocation43_spill]] %s9544_s19 }
  0x48   :  { %s9564_s19 = sld [smem:[%s10383_s0 + %s9341_s22]]  }
  0x4e   :  { %10446 = sst [smem:[#allocation45_spill]] %s9564_s19 }
  0x4f   :  { %86 = vsyncpa [#allocation3], 0 }
  0x50   :  { %88 = vsyncpa [#allocation3 + $0x1], 0 }
  0x51   :  { %89 = vsyncpa [#allocation5], 0 }
  0x52   :  { %90 = vsyncpa [#allocation8], 0 }
  0x53   :  { %91 = vsyncpa [#allocation11], 0  ;;  %s9566_s28 = smov 0   ;;  %s9568_s1 = smov 0  }
  0x54   :  { %s9570_s2 = smov 0   ;;  %s9572_s7 = smov 0  }
  0x55 LB: > { %s10447_s5 = sld [smem:[#allocation17_spill]]  ;;  %s9342_s0 = smov [#allocation4]   ;;  %s9288_s28 = sphi %s9566_s28, %s10501_s28   ;;  %s9300_s7 = sphi %s9572_s7, %s10504_s7   ;;  %s9296_s2 = sphi %s9570_s2, %s10503_s2   ;;  %s9292_s1 = sphi %s9568_s1, %s10502_s1  }
  0x56   : > { %s1024_s10 = sshll.u32 %s9342_s0, 4  ;;  %s9587_s11 = sadd.s32 4294967295, %s9300_s7   ;;  %s1025_s10 = int_to_ptr.vmem [resolvable:$true] %s1024_s10 }
  0x57   : > { %p7719_p0 = scmp.ge.s32.totalorder %s9300_s7, 1  ;;  %p10406_p1 = scmp.eq.s32.totalorder %s9587_s11, 0 }
  0x58   : > { %p973_p2 = scmp.lt.s32.totalorder %s9300_s7, 3  ;;  %s9343_s16 = smov [#allocation7]  }
  0x59   : > { %s1068_s18 = sshll.u32 %s9343_s16, 4  ;;  %s9344_s23 = smov [#allocation10]   ;;  %s9604_s18 = int_to_ptr.vmem [resolvable:$true] %s1068_s18 }
  0x5a   : > { %p9592_p3 = pnand %p7719_p0, %p973_p2  ;;  %s1094_s26 = sshll.u32 %s9344_s23, 4  ;;  %s9606_s26 = int_to_ptr.vmem [resolvable:$true] %s1094_s26 }
  0x5b   : > { %s9081_s19 = scalar_lea.vmem %s1025_s10, 768  ;;  %p9089_p10 = scmp.lt.s32.totalorder %s1025_s10, %s1025_s10 }
  0x5c   : > { %s10448_s15 = scalar_select %p9592_p3, 1, 0 }
  0x5d   : > { %p8919_p4 = pneg %p9592_p3  ;;  %p9082_p7 = scmp.ne.s32.totalorder %s1025_s10, %s9081_s19 }
  0x5e   : > { %p9090_p11 = scmp.lt.s32.totalorder %s9081_s19, %s9081_s19 }
  0x5f   : > { %p9600_p5 = pnand %p8919_p4, %p10406_p1 }
  0x60   : > { %p9091_p12 = por %p9090_p11, %p9089_p10 }
  0x61   : > { %p9610_p6 = pneg %p9600_p5 }
  0x63   : > { %p9084_p8 = pnand %p9082_p7, %p9610_p6 }
  0x65   : > { %p9085_p9 = pneg %p9084_p8 }
  0x67   : > { %p9092_p13 = pnand %p9091_p12, %p9085_p9 }
  0x69   : > { %9095 = shalt.err (!%p9092_p13)
}
  0x6a   : > { %s10402_s16 = smov 128   ;;  %s10451_s12 = sld [smem:[#allocation27_spill]] }
  0x6b   : > { %s10404_s23 = smov 8   ;;  %s9107_s24 = scalar_lea.vmem %s9604_s18, 768 }
  0x6c   : > { %p9108_p0 = scmp.ne.s32.totalorder %s9604_s18, %s9107_s24  ;;  %p9115_p7 = scmp.lt.s32.totalorder %s9604_s18, %s9604_s18 }
  0x6d   : > { %p9116_p8 = scmp.lt.s32.totalorder %s9107_s24, %s9107_s24 }
  0x6e   : > { %p9110_p2 = pnand %p9108_p0, %p9610_p6 }
  0x6f   : > { %p9117_p9 = por %p9116_p8, %p9115_p7 }
  0x70   : > { %8922 = dma.hbm_to_vmem [thread:$0]  (!%p9600_p5), %s10451_s12, 768, %s1025_s10, [#allocation5], %s10402_s16, %s10402_s16, %s10404_s23  }
  0x71   : > { %p9111_p4 = pneg %p9110_p2 }
  0x73   : > { %p9118_p10 = pnand %p9117_p9, %p9111_p4 }
  0x75   : > { %9121 = shalt.err (!%p9118_p10)
}
  0x76   : > { %s10452_s6 = sld [smem:[#allocation32_spill]]  ;;  %s9133_s19 = scalar_lea.vmem %s9606_s26, 384 }
  0x77   : > { %p9134_p11 = scmp.ne.s32.totalorder %s9606_s26, %s9133_s19  ;;  %p9141_p0 = scmp.lt.s32.totalorder %s9606_s26, %s9606_s26 }
  0x78   : > { %p9142_p2 = scmp.lt.s32.totalorder %s9133_s19, %s9133_s19 }
  0x79   : > { %p9136_p12 = pnand %p9134_p11, %p9610_p6 }
  0x7a   : > { %p9143_p4 = por %p9142_p2, %p9141_p0 }
  0x7b   : > { %p9137_p13 = pneg %p9136_p12 }
  0x7c   : > { %8928 = dma.hbm_to_vmem [thread:$0]  (!%p9600_p5), %s10452_s6, 768, %s9604_s18, [#allocation8], %s10402_s16, %s10402_s16, %s10404_s23  }
  0x7d   : > { %p9144_p7 = pnand %p9143_p4, %p9137_p13 }
  0x7f   : > { %9147 = shalt.err (!%p9144_p7)
}
  0x80   : > { %8934 = dma.hbm_to_vmem [thread:$0]  (!%p9600_p5), %s9484_s25, 384, %s9606_s26, [#allocation11], %s10402_s16, %s10402_s16, %s10404_s23  }
  0x81   : > { %s9347_s24 = smov [#allocation6]  }
  0x82   : > { %s1037_s10 = sshll.u32 %s9347_s24, 4  ;;  %s1038_s10 = int_to_ptr.vmem [resolvable:$true] %s1037_s10 }
  0x83   : > { %s9159_s18 = scalar_lea.vmem %s1038_s10, 192  ;;  %p9167_p11 = scmp.lt.s32.totalorder %s1038_s10, %s1038_s10 }
  0x84   : > { %p9160_p8 = scmp.ne.s32.totalorder %s1038_s10, %s9159_s18  ;;  %p9168_p12 = scmp.lt.s32.totalorder %s9159_s18, %s9159_s18 }
  0x86   : > { %p9162_p9 = pnand %p9160_p8, %p9610_p6  ;;  %p9169_p13 = por %p9168_p12, %p9167_p11 }
  0x88   : > { %p9163_p10 = pneg %p9162_p9 }
  0x8a   : > { %p9170_p0 = pnand %p9169_p13, %p9163_p10 }
  0x8c   : > { %9173 = shalt.err (!%p9170_p0)
}
  0x8d   : > { %s9348_s19 = smov 64   ;;  %s9349_s6 = smov 4  }
  0x8e   : > { %8925 = dma.hbm_to_vmem [thread:$0]  (!%p9600_p5), %s9439_s20, 192, %s1038_s10, [#allocation5], %s9348_s19, %s9348_s19, %s9349_s6  }
  0x8f   : > { %s9350_s26 = smov [#allocation9]   ;;  %s9351_s16 = smov [#allocation12]  }
  0x90   : > { %s1081_s24 = sshll.u32 %s9350_s26, 4  ;;  %s1131_s23 = sshll.u32 %s9351_s16, 4  ;;  %s1082_s24 = int_to_ptr.vmem [resolvable:$true] %s1081_s24  ;;  %s1132_s23 = int_to_ptr.vmem [resolvable:$true] %s1131_s23 }
  0x91   : > { %s9185_s12 = scalar_lea.vmem %s1082_s24, 384  ;;  %p9193_p8 = scmp.lt.s32.totalorder %s1082_s24, %s1082_s24 }
  0x92   : > { %p9186_p2 = scmp.ne.s32.totalorder %s1082_s24, %s9185_s12  ;;  %p9194_p9 = scmp.lt.s32.totalorder %s9185_s12, %s9185_s12 }
  0x94   : > { %p9188_p4 = pnand %p9186_p2, %p9610_p6  ;;  %p9195_p10 = por %p9194_p9, %p9193_p8 }
  0x96   : > { %p9189_p7 = pneg %p9188_p4 }
  0x98   : > { %p9196_p11 = pnand %p9195_p10, %p9189_p7 }
  0x9a   : > { %9199 = shalt.err (!%p9196_p11)
}
  0x9b   : > { %s10453_s18 = smov 8   ;;  %s10454_s6 = smov 128  }
  0x9c   : > { %8931 = dma.hbm_to_vmem [thread:$0]  (!%p9600_p5), %s9479_s14, 384, %s1082_s24, [#allocation8], %s10454_s6, %s10454_s6, %s10453_s18  }
  0x9d   : > { %s9211_s16 = scalar_lea.vmem %s1132_s23, 768  ;;  %p9219_p2 = scmp.lt.s32.totalorder %s1132_s23, %s1132_s23 }
  0x9e   : > { %p9212_p12 = scmp.ne.s32.totalorder %s1132_s23, %s9211_s16  ;;  %p9220_p4 = scmp.lt.s32.totalorder %s9211_s16, %s9211_s16 }
  0xa0   : > { %p9214_p13 = pnand %p9212_p12, %p9610_p6  ;;  %p9221_p1 = por %p9220_p4, %p9219_p2 }
  0xa2   : > { %p9215_p0 = pneg %p9214_p13 }
  0xa4   : > { %p9222_p3 = pnand %p9221_p1, %p9215_p0 }
  0xa6   : > { %9225 = shalt.err (!%p9222_p3)
}
  0xa7   : > { %8937 = dma.hbm_to_vmem [thread:$0]  (!%p9600_p5), %s9529_s27, 768, %s1132_s23, [#allocation11], %s10454_s6, %s10454_s6, %s10453_s18  }
  0xa8   : > { %s9670_s12 = sadd.s32 1, %s9300_s7   ;;  %s104_s22 = sadd.s32 1, %s9296_s2 }
  0xa9   : > { %s101_s0 = ssub.s32 %s9300_s7, %s9670_s12  ;;  %p111_p1 = scmp.ne.s32.totalorder %s9296_s2, %s9292_s1 }
  0xaa   : > { %p102_p3 = scmp.eq.s32.totalorder %s101_s0, 0  ;;  %p112_p6 = scmp.eq.s32.totalorder %s9300_s7, 0 }
  0xab   : > { %p117_p7 = scmp.ne.s32.totalorder %s9292_s1, %s9288_s28  ;;  %p8948_p8 = scmp.lt.s32.totalorder %s9300_s7, 2 }
  0xac   : > { %s9682_s10 = scalar_select %p102_p3, %s9296_s2, %s104_s22  }
  0xad   : > { %p113_p9 = por %p112_p6, %p111_p1  ;;  %p10455_p10 = scmp.eq.s32.totalorder %s9587_s11, 0 }
  0xae   : > { %s1163_s23 = sand.u32 1, %s9296_s2   ;;  %s7728_s26 = sshll.u32 %s9300_s7, 6 }
  0xaf   : > { %p9686_p11 = por %p10455_p10, %p117_p7  ;;  %s7727_s24 = sshll.u32 %s1163_s23, 2 }
  0xb0   : > { %s9693_s18 = scalar_lea.hbm %s10447_s5, %s7728_s26  ;;  %s1167_s28 = scalar_lea.vmem [#allocation2], %s7727_s24 }
  0xb1   : > { %s10456_s19 = scalar_select %p9686_p11, 1, 0 }
  0xb2   : > { %s1174_s6 = sshll.u32 %s1167_s28, 4  ;;  %p9695_p5 = pnand %p8948_p8, %p113_p9  ;;  %s1175_s6 = int_to_ptr.vmem [resolvable:$true] %s1174_s6 }
  0xb3   : > { %s1164_s22 = scalar_lea.sflag [#allocation3], %s1163_s23  ;;  %s9226_s0 = scalar_lea.hbm %s9693_s18, 64 }
  0xb4   : > { %s10457_s16 = scalar_select %p9695_p5, 1, 0 }
  0xb5   : > { %p9227_p12 = scmp.ne.s32.totalorder %s9693_s18, %s9226_s0  ;;  %p9228_p13 = pneg %p9695_p5 }
  0xb6   : > { %s9231_s7 = scalar_lea.hbm %s10447_s5, 128  ;;  %p9232_p4 = scmp.lt.s32.totalorder %s9693_s18, %s10447_s5 }
  0xb7   : > { %p9229_p0 = pnand %p9228_p13, %p9227_p12  ;;  %p9233_p1 = scmp.lt.s32.totalorder %s9231_s7, %s9226_s0 }
  0xb9   : > { %p9230_p2 = pneg %p9229_p0  ;;  %p9234_p3 = por %p9233_p1, %p9232_p4 }
  0xbb   : > { %p9235_p6 = pnand %p9234_p3, %p9230_p2 }
  0xbd   : > { %9238 = shalt.err (!%p9235_p6)
}
  0xbe   : > { %s9239_s26 = scalar_lea.vmem %s1175_s6, 64  ;;  %s9352_s24 = smov [#allocation2]  }
  0xbf   : > { %p9240_p7 = scmp.ne.s32.totalorder %s1175_s6, %s9239_s26  ;;  %s9244_s28 = sshll.u32 %s9352_s24, 4  ;;  %s9245_s28 = int_to_ptr.vmem [resolvable:$false] %s9244_s28 }
  0xc0   : > { %s9246_s23 = scalar_lea.vmem %s9245_s28, 128  ;;  %p9247_p10 = scmp.lt.s32.totalorder %s1175_s6, %s9245_s28 }
  0xc1   : > { %p9242_p8 = pnand %p9240_p7, %p9228_p13  ;;  %p9248_p11 = scmp.lt.s32.totalorder %s9246_s23, %s9239_s26 }
  0xc3   : > { %p9243_p9 = pneg %p9242_p8  ;;  %p9249_p5 = por %p9248_p11, %p9247_p10 }
  0xc5   : > { %p9250_p12 = pnand %p9249_p5, %p9243_p9 }
  0xc7   : > { %9253 = shalt.err (!%p9250_p12)
}
  0xc8   : > { %p10458_p0 = scmp.ne.s32.totalorder %s10457_s16, 0  ;;  %p10459_p2 = scmp.ne.s32.totalorder %s10448_s15, 0 }
  0xc9   : > { %s1185_s0 = sand.u32 (!%p10459_p2), 1, %s9292_s1   ;;  %p10460_p13 = scmp.ne.s32.totalorder (!%p10459_p2), %s10456_s19, 0 }
  0xca   : > { %8941 = dma.hbm_to_vmem [thread:$0]  (!%p10458_p0), %s9693_s18, 64, %s1175_s6, %s1164_s22  }
  0xcb   : > { %1183 = sbr.rel (%p10459_p2) target bundleno = 6649 (0x19f9), region = 180  ;;  %s9712_s7 = sshll.u32 (!%p10459_p2), %s1185_s0, 2 }
  0xcc   : > { %s1186_s24 = scalar_lea.sflag (!%p10459_p2), [#allocation3], %s1185_s0  ;;  %s1189_s5 = scalar_lea.vmem (!%p10459_p2), [#allocation2], %s9712_s7 }
  0xd0   : > { %9271 = dma.done.wait (%p10460_p13), %s1186_s24, 64  }
  0xd1   : > { %9273 = vsyncadd (%p10460_p13), %s1186_s24, 4294967232  ;;  %p10461_p11 = scmp.eq.s32.totalorder %s9587_s11, 0 }
  0xd3   : > { %9275 = dma.done.wait (%p10461_p11), [#allocation5], 960   ;;  %p10462_p5 = pmov %p10461_p11 }
  0xd5   : > { %9277 = vsyncadd (%p10462_p5), [#allocation5], 4294966336  ;;  %p10463_p4 = pmov %p10462_p5 }
  0xd7   : > { %9279 = dma.done.wait (%p10463_p4), [#allocation8], 1152   ;;  %p10464_p1 = pmov %p10463_p4 }
  0xd9   : > { %9281 = vsyncadd (%p10464_p1), [#allocation8], 4294966144  ;;  %p10465_p3 = pmov %p10464_p1 }
  0xda   : > { %p10466_p6 = pmov %p10464_p1 }
  0xdb   : > { %9283 = dma.done.wait (%p10465_p3), [#allocation11], 1152  }
  0xdc   : > { %9285 = vsyncadd (%p10466_p6), [#allocation11], 4294966144  ;;  %v9353_v0 = vmov 0.0   ;;  %vm9354_vm0 = vmmov 0   ;;  %v1323_v1 = vld [vmem:[%s9369_s9 + $0x38] sm:$0xff]  ;;  %v1322_v3 = vld [vmem:[%s9369_s9 + $0x30] sm:$0xff] }
  0xdd   : > { %8299 = vmatprep.subr.mxu0 %v9353_v0  ;;  %8318 = vmatprep.subr.mxu1 %v9353_v0  ;;  %v7747_v2 = vld [vmem:[%s9369_s9 + $0x78] sm:$0xff]  ;;  %v7746_v4 = vld [vmem:[%s9369_s9 + $0x70] sm:$0xff]  ;;  %v1321_v5 = vld [vmem:[%s9369_s9 + $0x28] sm:$0xff]  ;;  %vm1324_vm1 = vcmask 523264   ;;  %vm1484_vm2 = vcmask 1043456   ;;  %vm1480_vm3 = vcmask 31744  }
  0xde   : > { %8315 = vmatprep.mubr.msk.f32.mxu0 %vm9354_vm0, %v9353_v0  ;;  %8334 = vmatprep.mubr.msk.f32.mxu1 %vm9354_vm0, %v9353_v0  ;;  %v7745_v6 = vld [vmem:[%s9369_s9 + $0x68] sm:$0xff]  ;;  %v1320_v7 = vld [vmem:[%s9369_s9 + $0x20] sm:$0xff]  ;;  %v1319_v9 = vld [vmem:[%s9369_s9 + $0x18] sm:$0xff]  ;;  %s10467_s3 = sld [smem:[#allocation21_spill]]  ;;  %vm2604_vm5 = vcmask 1041408   ;;  %vm2600_vm6 = vcmask 15360  }
  0xdf   : > { %8300 = vmatpush3.msra.mxu0 %v1323_v1  ;;  %8319 = vmatpush3.msra.mxu1 %v7747_v2  ;;  %v7744_v8 = vld [vmem:[%s9369_s9 + $0x60] sm:$0xff]  ;;  %v7743_v10 = vld [vmem:[%s9369_s9 + $0x58] sm:$0xff]  ;;  %v1318_v11 = vld [vmem:[%s9369_s9 + $0x10] sm:$0xff]  ;;  %s10469_s15 = sld [smem:[#allocation37_spill]]  ;;  %vm3161_vm7 = vcmask 261120   ;;  %vm4348_vm10 = vcmask 130048  }
  0xe0   : > { %8301 = vmatprep.subr.mxu0 %v9353_v0  ;;  %8320 = vmatprep.subr.mxu1 %v9353_v0  ;;  %v7742_v12 = vld [vmem:[%s9369_s9 + $0x50] sm:$0xff]  ;;  %v1317_v13 = vld [vmem:[%s9369_s9 + $0x8] sm:$0xff]  ;;  %v1316_v15 = vld [vmem:[%s9369_s9] sm:$0xff]  ;;  %s10470_s19 = sld [smem:[#allocation38_spill]]  ;;  %vm4976_vm13 = vcmask 64512   ;;  %p1310_p7 = scmp.lt.s32.totalorder %s9587_s11, 1 }
  0xe1   : > { %8302 = vmatpush3.msra.mxu0 %v1322_v3  ;;  %8321 = vmatpush3.msra.mxu1 %v7746_v4  ;;  %v7741_v14 = vld [vmem:[%s9369_s9 + $0x48] sm:$0xff]  ;;  %v7740_v16 = vld [vmem:[%s9369_s9 + $0x40] sm:$0xff]  ;;  %v7761_v18 = vld [vmem:[%s9369_s9 + $0xb8] sm:$0xff]  ;;  %s10471_s18 = sld [smem:[#allocation41_spill]] }
  0xe2   : > { %8303 = vmatprep.subr.mxu0 %v9353_v0  ;;  %8322 = vmatprep.subr.mxu1 %v9353_v0  ;;  %v9767_v17 = vld [vmem:[%s1189_s5] sm:$0xf]  ;;  %v7760_v19 = vld [vmem:[%s9369_s9 + $0xb0] sm:$0xff]  ;;  %v7759_v20 = vld [vmem:[%s9369_s9 + $0xa8] sm:$0xff]  ;;  %s10468_s5 = sld [smem:[#allocation34_spill]]  ;;  %s10506_s11 = smov (!%p1310_p7, %s9587_s11), 1 }
  0xe3   : > { %8304 = vmatpush3.msra.mxu0 %v1321_v5  ;;  %8323 = vmatpush3.msra.mxu1 %v7745_v6  ;;  %v7758_v21 = vld [vmem:[%s9369_s9 + $0xa0] sm:$0xff]  ;;  %v7757_v22 = vld [vmem:[%s9369_s9 + $0x98] sm:$0xff]  ;;  %v7756_v23 = vld [vmem:[%s9369_s9 + $0x90] sm:$0xff]  ;;  %s10472_s6 = sld [smem:[#allocation42_spill]] }
  0xe4   : > { %8305 = vmatprep.subr.mxu0 %v9353_v0  ;;  %8324 = vmatprep.subr.mxu1 %v9353_v0  ;;  %v7755_v24 = vld [vmem:[%s9369_s9 + $0x88] sm:$0xff]  ;;  %v7754_v25 = vld [vmem:[%s9369_s9 + $0x80] sm:$0xff]  ;;  %v7773_v34 = vld [vmem:[%s9369_s9 + $0xf8] sm:$0xff]  ;;  %s10473_s16 = sld [smem:[#allocation18_spill]] }
  0xe5   : > { %8306 = vmatpush3.msra.mxu0 %v1320_v7  ;;  %8325 = vmatpush3.msra.mxu1 %v7744_v8  ;;  %v7749_v26 = vld [vmem:[%s9374_s13 + $0x2] sm:$0x3]  ;;  %v1398_v31 = vld [vmem:[%s9374_s13] sm:$0x3]  ;;  %v7763_v32 = vld [vmem:[%s9374_s13 + $0x4] sm:$0x3] }
  0xe6   : > { %8307 = vmatprep.subr.mxu0 %v9353_v0  ;;  %8326 = vmatprep.subr.mxu1 %v9353_v0  ;;  %v7772_v36 = vld [vmem:[%s9369_s9 + $0xf0] sm:$0xff]  ;;  %v7771_v37 = vld [vmem:[%s9369_s9 + $0xe8] sm:$0xff]  ;;  %v7770_v38 = vld [vmem:[%s9369_s9 + $0xe0] sm:$0xff]  ;;  %s10474_s22 = sld [smem:[#allocation24_spill]] }
  0xe7   : > { %8308 = vmatpush3.msra.mxu0 %v1319_v9  ;;  %8327 = vmatpush3.msra.mxu1 %v7743_v10  ;;  %v7769_v39 = vld [vmem:[%s9369_s9 + $0xd8] sm:$0xff]  ;;  %v7768_v40 = vld [vmem:[%s9369_s9 + $0xd0] sm:$0xff]  ;;  %v7767_v41 = vld [vmem:[%s9369_s9 + $0xc8] sm:$0xff]  ;;  %s10475_s26 = sld [smem:[#allocation22_spill]] }
  0xe8   : > { %8309 = vmatprep.subr.mxu0 %v9353_v0  ;;  %8328 = vmatprep.subr.mxu1 %v9353_v0  ;;  %v7766_v42 = vld [vmem:[%s9369_s9 + $0xc0] sm:$0xff]  ;;  %v7785_v53 = vld [vmem:[%s9369_s9 + $0x138] sm:$0xff]  ;;  %v7784_v55 = vld [vmem:[%s9369_s9 + $0x130] sm:$0xff]  ;;  %s10476_s28 = sld [smem:[#allocation25_spill]] }
  0xe9   : > { %8310 = vmatpush3.msra.mxu0 %v1318_v11  ;;  %8329 = vmatpush3.msra.mxu1 %v7742_v12  ;;  %v7775_v51 = vld [vmem:[%s9374_s13 + $0x6] sm:$0x3]  ;;  %v7783_v56 = vld [vmem:[%s9369_s9 + $0x128] sm:$0xff]  ;;  %v7781_v58 = vld [vmem:[%s9369_s9 + $0x118] sm:$0xff]  ;;  %s10477_s23 = sld [smem:[#allocation28_spill]] }
  0xea   : > { %8311 = vmatprep.subr.mxu0 %v9353_v0  ;;  %8330 = vmatprep.subr.mxu1 %v9353_v0  ;;  %v7782_v57 = vld [vmem:[%s9369_s9 + $0x120] sm:$0xff]  ;;  %v7780_v59 = vld [vmem:[%s9369_s9 + $0x110] sm:$0xff]  ;;  %v7779_v60 = vld [vmem:[%s9369_s9 + $0x108] sm:$0xff]  ;;  %s10478_s0 = sld [smem:[#allocation31_spill]] }
  0xeb   : > { %8312 = vmatpush3.msra.mxu0 %v1317_v13  ;;  %8331 = vmatpush3.msra.mxu1 %v7741_v14  ;;  %v7778_v61 = vld [vmem:[%s9369_s9 + $0x100] sm:$0xff]  ;;  %v7787_v2 = vld [vmem:[%s9374_s13 + $0x8] sm:$0x3]  ;;  %v7797_v4 = vld [vmem:[%s9369_s9 + $0x178] sm:$0xff]  ;;  %s10479_s7 = sld [smem:[#allocation33_spill]] }
  0xec   : > { %8313 = vmatprep.subr.mxu0 %v9353_v0  ;;  %8332 = vmatprep.subr.mxu1 %v9353_v0  ;;  %v7796_v6 = vld [vmem:[%s9369_s9 + $0x170] sm:$0xff]  ;;  %v7795_v7 = vld [vmem:[%s9369_s9 + $0x168] sm:$0xff]  ;;  %v7794_v8 = vld [vmem:[%s9369_s9 + $0x160] sm:$0xff]  ;;  %s10480_s24 = sld [smem:[#allocation20_spill]] }
  0xed   : > { %8314 = vmatpush3.msra.mxu0 %v1316_v15  ;;  %8333 = vmatpush3.msra.mxu1 %v7740_v16  ;;  %v7793_v9 = vld [vmem:[%s9369_s9 + $0x158] sm:$0xff]  ;;  %v7792_v10 = vld [vmem:[%s9369_s9 + $0x150] sm:$0xff]  ;;  %v7791_v11 = vld [vmem:[%s9369_s9 + $0x148] sm:$0xff] }
  0xee   : > { %8316 = vmatmul.mubr.msk.f32.vlgmr.msra.gmra.mxu0 %vm1324_vm1, %v9767_v17  ;;  %8335 = vmatmul.mubr.msk.f32.vlgmr.msra.gmra.mxu1 %vm1324_vm1, %v9767_v17  ;;  %v7790_v12 = vld [vmem:[%s9369_s9 + $0x140] sm:$0xff]  ;;  %v7799_v16 = vld [vmem:[%s9374_s13 + $0xa] sm:$0x3] }
  0xef   : > { %8347 = vmatprep.subr.mxu0 %v9353_v0  ;;  %8363 = vmatprep.mubr.msk.f32.mxu0 %vm9354_vm0, %v9353_v0 }
  0xf0   : > { %8348 = vmatpush3.msra.mxu0 %v7761_v18  ;;  %8337 = vmatprep.subr.mxu1 %v9353_v0 }
  0xf1   : > { %8349 = vmatprep.subr.mxu0 %v9353_v0  ;;  %8339 = vmatprep.mubr.msk.f32.mxu1 %vm9354_vm0, %v9353_v0 }
  0xf2   : > { %8350 = vmatpush3.msra.mxu0 %v7760_v19  ;;  %v7809_v19 = vld [vmem:[%s9369_s9 + $0x1b8] sm:$0xff] }
  0xf3   : > { %8351 = vmatprep.subr.mxu0 %v9353_v0 }
  0xf4   : > { %8352 = vmatpush3.msra.mxu0 %v7759_v20 }
  0xf5   : > { %8353 = vmatprep.subr.mxu0 %v9353_v0 }
  0xf6   : > { %8354 = vmatpush3.msra.mxu0 %v7758_v21  ;;  %v7808_v21 = vld [vmem:[%s9369_s9 + $0x1b0] sm:$0xff] }
  0xf7   : > { %8355 = vmatprep.subr.mxu0 %v9353_v0 }
  0xf8   : > { %8356 = vmatpush3.msra.mxu0 %v7757_v22  ;;  %v7807_v22 = vld [vmem:[%s9369_s9 + $0x1a8] sm:$0xff] }
  0xf9   : > { %8357 = vmatprep.subr.mxu0 %v9353_v0 }
  0xfa   : > { %8358 = vmatpush3.msra.mxu0 %v7756_v23  ;;  %v7806_v23 = vld [vmem:[%s9369_s9 + $0x1a0] sm:$0xff] }
  0xfb   : > { %8359 = vmatprep.subr.mxu0 %v9353_v0 }
  0xfc   : > { %8360 = vmatpush3.msra.mxu0 %v7755_v24  ;;  %v7805_v24 = vld [vmem:[%s9369_s9 + $0x198] sm:$0xff] }
  0xfd   : > { %8361 = vmatprep.subr.mxu0 %v9353_v0 }
  0xfe   : > { %8362 = vmatpush3.msra.mxu0 %v7754_v25  ;;  %v7804_v25 = vld [vmem:[%s9369_s9 + $0x190] sm:$0xff] }
  0xff   : > { %8364 = vmatmul.mubr.msk.f32.vlgmr.msra.gmra.mxu0 %vm1324_vm1, %v9767_v17  ;;  %8390 = vmatprep.subr.mxu0 %v9353_v0 }
 0x100   : > { %8392 = vmatprep.mubr.msk.f32.mxu0 %vm9354_vm0, %v9353_v0 }
 0x1ae   : > { %v1394_v27 = vpop.f32.mrf.mxu0  ;;  %v1474_v28 = vpop.f32.mrf.mxu1 }
 0x1af   : > { %8338 = vmatpush3.msk.msra.mxu1 %vm1484_vm2, %v1474_v28  ;;  %v2424_v28 = vld [vmem:[%s9379_s17] sm:$0x3] }
 0x1b0   : > { %v8317_v29 = vpop.f32.mrf.mxu0  ;;  %8342 = vmatprep.subr.mxu1 %v9353_v0  ;;  %8340 = vmatmul.mubr.msk.f32.vlgmr.msra.gmra.mxu1 %vm1480_vm3, %v7749_v26  ;;  %v8336_v30 = vpop.f32.mrf.mxu1  ;;  %v7803_v26 = vld [vmem:[%s9369_s9 + $0x188] sm:$0xff] }
 0x1b1   : > { %8343 = vmatpush3.msk.msra.mxu1 %vm1484_vm2, %v1394_v27  ;;  %8344 = vmatprep.mubr.msk.f32.mxu1 %vm9354_vm0, %v9353_v0  ;;  %v7802_v27 = vld [vmem:[%s9369_s9 + $0x180] sm:$0xff]  ;;  %v9355_v29 = vmov 0  }
 0x1b2   : > { %8366 = vmatprep.subr.mxu1 %v9353_v0  ;;  %9040 = vset.pattern.permute.xlu0 %v9355_v29  ;;  %v3137_v30 = vld [vmem:[%s10467_s3] sm:$0x3] }
 0x1b3   : > { %9041 = vset.pattern.permute.xlu1 %v9355_v29  ;;  %2427 = vperm.xlu0 %9040, %v2424_v28   ;;  %v4326_v28 = vld [vmem:[%s10477_s23] sm:$0xf] }
 0x1b4   : > { %8345 = vmatmul.mubr.msk.f32.vlgmr.msra.gmra.mxu1 %vm1480_vm3, %v1398_v31  ;;  %v3627_v31 = vld [vmem:[%s9424_s30] sm:$0xf] }
 0x1b5   : > { %8368 = vmatprep.mubr.msk.f32.mxu1 %vm9354_vm0, %v9353_v0  ;;  %v4803_v29 = vld [vmem:[%s10478_s0] sm:$0xff]  ;;  %s10485_s0 = sld [smem:[#allocation30_spill]] }
 0x1b7   : > { %3140 = vperm.xlu0 %9040, %v3137_v30   ;;  %v5523_v30 = vld [vmem:[%s10479_s7] sm:$0xff]  ;;  %s10486_s7 = sld [smem:[#allocation29_spill]] }
 0x1bb   : > { %3630 = vperm.xlu0 %9040, %v3627_v31   ;;  %v6016_v31 = vld [vmem:[%s10469_s15] sm:$0xff] }
 0x1bf   : > { %v1709_v33 = vpop.f32.mrf.mxu0 }
 0x1c0   : > { %8367 = vmatpush3.msk.msra.mxu1 %vm1484_vm2, %v1709_v33  ;;  %v5530_v33 = vld [vmem:[%s10468_s5] sm:$0xff]  ;;  %s10481_s5 = sld [smem:[#allocation19_spill]] }
 0x1c1   : > { %v8365_v35 = vpop.f32.mrf.mxu0  ;;  %8369 = vmatmul.mubr.msk.f32.vlgmr.msra.gmra.mxu1 %vm1480_vm3, %v7763_v32  ;;  %8371 = vmatprep.subr.mxu1 %v9353_v0  ;;  %v4810_v32 = vld [vmem:[%s9469_s29] sm:$0xff] }
 0x1c2   : > { %8372 = vmatpush3.msra.mxu1 %v7773_v34  ;;  %8387 = vmatprep.mubr.msk.f32.mxu1 %vm9354_vm0, %v9353_v0  ;;  %v6017_v34 = vld [vmem:[%s10469_s15 + $0x8] sm:$0xff] }
 0x1c3   : > { %8373 = vmatprep.subr.mxu1 %v9353_v0  ;;  %v6031_v35 = vld [vmem:[%s10470_s19 + $0x8] sm:$0xff] }
 0x1c4   : > { %8374 = vmatpush3.msra.mxu1 %v7772_v36  ;;  %v6855_v36 = vld [vmem:[%s10471_s18 + $0x8] sm:$0xff] }
 0x1c5   : > { %8375 = vmatprep.subr.mxu1 %v9353_v0 }
 0x1c6   : > { %8376 = vmatpush3.msra.mxu1 %v7771_v37  ;;  %v6869_v37 = vld [vmem:[%s10472_s6 + $0x8] sm:$0xff] }
 0x1c7   : > { %8377 = vmatprep.subr.mxu1 %v9353_v0 }
 0x1c8   : > { %8378 = vmatpush3.msra.mxu1 %v7770_v38  ;;  %v7453_v38 = vld [vmem:[%s9554_s21 + $0x8] sm:$0xff] }
 0x1c9   : > { %8379 = vmatprep.subr.mxu1 %v9353_v0 }
 0x1ca   : > { %8380 = vmatpush3.msra.mxu1 %v7769_v39  ;;  %v7455_v39 = vld [vmem:[%s9554_s21 + $0x18] sm:$0xff] }
 0x1cb   : > { %8381 = vmatprep.subr.mxu1 %v9353_v0 }
 0x1cc   : > { %8382 = vmatpush3.msra.mxu1 %v7768_v40  ;;  %v7481_v40 = vld [vmem:[%s9559_s8 + $0x8] sm:$0xff] }
 0x1cd   : > { %8383 = vmatprep.subr.mxu1 %v9353_v0 }
 0x1ce   : > { %8384 = vmatpush3.msra.mxu1 %v7767_v41  ;;  %v7483_v41 = vld [vmem:[%s9559_s8 + $0x18] sm:$0xff] }
 0x1cf   : > { %8385 = vmatprep.subr.mxu1 %v9353_v0 }
 0x1d0   : > { %8386 = vmatpush3.msra.mxu1 %v7766_v42 }
 0x1d1   : > { %8388 = vmatmul.mubr.msk.f32.vlgmr.msra.gmra.mxu1 %vm1324_vm1, %v9767_v17  ;;  %8414 = vmatprep.subr.mxu1 %v9353_v0 }
 0x1d2   : > { %8416 = vmatprep.mubr.msk.f32.mxu1 %vm9354_vm0, %v9353_v0 }
 0x270   : > { %v1554_v43 = vpop.f32.mrf.mxu1 }
 0x272   : > { %v8341_v44 = vpop.f32.mrf.mxu1 }
 0x274   : > { %v1630_v45 = vpop.f32.mrf.mxu1 }
 0x275   : > { %v1631_v46 = vadd.f32 %v1630_v45, %v1554_v43  ;;  %v7811_v45 = vld [vmem:[%s9374_s13 + $0xc] sm:$0x3] }
 0x276   : > { %v8346_v47 = vpop.f32.mrf.mxu1 }
 0x281   : > { %v1787_v48 = vpop.f32.mrf.mxu1 }
 0x282   : > { %v1791_v49 = vadd.f32 %v1787_v48, %v1631_v46  ;;  %v2444_v48 = vld [vmem:[%s10473_s16 + $0x38] sm:$0xff] }
 0x283   : > { %v8370_v50 = vpop.f32.mrf.mxu1 }
 0x284   : > { %v2443_v50 = vld [vmem:[%s10473_s16 + $0x30] sm:$0xff] }
 0x291   : > { %v1867_v52 = vpop.f32.mrf.mxu1 }
 0x292   : > { %8391 = vmatpush3.msk.msra.mxu0 %vm1484_vm2, %v1867_v52  ;;  %v2442_v52 = vld [vmem:[%s10473_s16 + $0x28] sm:$0xff] }
 0x293   : > { %v8389_v54 = vpop.f32.mrf.mxu1  ;;  %8393 = vmatmul.mubr.msk.f32.vlgmr.msra.gmra.mxu0 %vm1480_vm3, %v7775_v51  ;;  %8395 = vmatprep.subr.mxu0 %v9353_v0  ;;  %v7822_v51 = vld [vmem:[%s10473_s16 + $0x70] sm:$0xff] }
 0x294   : > { %8396 = vmatpush3.msra.mxu0 %v7785_v53  ;;  %8411 = vmatprep.mubr.msk.f32.mxu0 %vm9354_vm0, %v9353_v0  ;;  %v7821_v53 = vld [vmem:[%s10473_s16 + $0x68] sm:$0xff]  ;;  %v2441_v54 = vld [vmem:[%s10473_s16 + $0x20] sm:$0xff] }
 0x295   : > { %8397 = vmatprep.subr.mxu0 %v9353_v0 }
 0x296   : > { %8398 = vmatpush3.msra.mxu0 %v7784_v55  ;;  %v7820_v55 = vld [vmem:[%s10473_s16 + $0x60] sm:$0xff] }
 0x297   : > { %8399 = vmatprep.subr.mxu0 %v9353_v0 }
 0x298   : > { %8400 = vmatpush3.msra.mxu0 %v7783_v56  ;;  %v2440_v56 = vld [vmem:[%s10473_s16 + $0x18] sm:$0xff] }
 0x299   : > { %8401 = vmatprep.subr.mxu0 %v9353_v0 }
 0x29a   : > { %8402 = vmatpush3.msra.mxu0 %v7782_v57  ;;  %v7819_v57 = vld [vmem:[%s10473_s16 + $0x58] sm:$0xff] }
 0x29b   : > { %8403 = vmatprep.subr.mxu0 %v9353_v0 }
 0x29c   : > { %8404 = vmatpush3.msra.mxu0 %v7781_v58  ;;  %v2439_v58 = vld [vmem:[%s10473_s16 + $0x10] sm:$0xff] }
 0x29d   : > { %8405 = vmatprep.subr.mxu0 %v9353_v0 }
 0x29e   : > { %8406 = vmatpush3.msra.mxu0 %v7780_v59  ;;  %v7818_v59 = vld [vmem:[%s10473_s16 + $0x50] sm:$0xff] }
 0x29f   : > { %8407 = vmatprep.subr.mxu0 %v9353_v0 }
 0x2a0   : > { %8408 = vmatpush3.msra.mxu0 %v7779_v60  ;;  %v2438_v60 = vld [vmem:[%s10473_s16 + $0x8] sm:$0xff] }
 0x2a1   : > { %8409 = vmatprep.subr.mxu0 %v9353_v0 }
 0x2a2   : > { %8410 = vmatpush3.msra.mxu0 %v7778_v61  ;;  %v7817_v61 = vld [vmem:[%s10473_s16 + $0x48] sm:$0xff] }
 0x2a3   : > { %8412 = vmatmul.mubr.msk.f32.vlgmr.msra.gmra.mxu0 %vm1324_vm1, %v9767_v17  ;;  %8438 = vmatprep.subr.mxu0 %v9353_v0 }
 0x2a4   : > { %8440 = vmatprep.mubr.msk.f32.mxu0 %vm9354_vm0, %v9353_v0 }
 0x353   : > { %v1945_v62 = vpop.f32.mrf.mxu0 }
 0x354   : > { %v1949_v63 = vadd.f32 %v1945_v62, %v1791_v49  ;;  %v7823_v49 = vld [vmem:[%s10473_s16 + $0x78] sm:$0xff]  ;;  %v2437_v62 = vld [vmem:[%s10473_s16] sm:$0xff] }
 0x355   : > { %v8394_v1 = vpop.f32.mrf.mxu0 }
 0x363   : > { %v2025_v3 = vpop.f32.mrf.mxu0 }
 0x364   : > { %8415 = vmatpush3.msk.msra.mxu1 %vm1484_vm2, %v2025_v3  ;;  %v2428_v3 = vpop.permute.xlu0 %2427 }
 0x365   : > { %v8413_v5 = vpop.f32.mrf.mxu0  ;;  %8417 = vmatmul.mubr.msk.f32.vlgmr.msra.gmra.mxu1 %vm1480_vm3, %v7787_v2  ;;  %8419 = vmatprep.subr.mxu1 %v9353_v0 }
 0x366   : > { %8420 = vmatpush3.msra.mxu1 %v7797_v4  ;;  %8435 = vmatprep.mubr.msk.f32.mxu1 %vm9354_vm0, %v9353_v0 }
 0x367   : > { %8421 = vmatprep.subr.mxu1 %v9353_v0 }
 0x368   : > { %8422 = vmatpush3.msra.mxu1 %v7796_v6 }
 0x369   : > { %8423 = vmatprep.subr.mxu1 %v9353_v0 }
 0x36a   : > { %8424 = vmatpush3.msra.mxu1 %v7795_v7 }
 0x36b   : > { %8425 = vmatprep.subr.mxu1 %v9353_v0 }
 0x36c   : > { %8426 = vmatpush3.msra.mxu1 %v7794_v8 }
 0x36d   : > { %8427 = vmatprep.subr.mxu1 %v9353_v0 }
 0x36e   : > { %8428 = vmatpush3.msra.mxu1 %v7793_v9 }
 0x36f   : > { %8429 = vmatprep.subr.mxu1 %v9353_v0 }
 0x370   : > { %8430 = vmatpush3.msra.mxu1 %v7792_v10 }
 0x371   : > { %8431 = vmatprep.subr.mxu1 %v9353_v0 }
 0x372   : > { %8432 = vmatpush3.msra.mxu1 %v7791_v11  ;;  %v7825_v11 = vld [vmem:[%s10474_s22 + $0x4] sm:$0xf] }
 0x373   : > { %8433 = vmatprep.subr.mxu1 %v9353_v0 }
 0x374   : > { %8434 = vmatpush3.msra.mxu1 %v7790_v12 }
 0x375   : > { %8436 = vmatmul.mubr.msk.f32.vlgmr.msra.gmra.mxu1 %vm1324_vm1, %v9767_v17  ;;  %8462 = vmatprep.subr.mxu1 %v9353_v0 }
 0x376   : > { %8464 = vmatprep.mubr.msk.f32.mxu1 %vm9354_vm0, %v9353_v0 }
 0x425   : > { %v2103_v13 = vpop.f32.mrf.mxu1 }
 0x426   : > { %v9891_v14 = vadd.f32 %v2103_v13, %v1949_v63  ;;  %v7816_v63 = vld [vmem:[%s10473_s16 + $0x40] sm:$0xff] }
 0x427   : > { %v8418_v15 = vpop.f32.mrf.mxu1 }
 0x435   : > { %v2183_v18 = vpop.f32.mrf.mxu1 }
 0x436   : > { %8439 = vmatpush3.msk.msra.mxu0 %vm1484_vm2, %v2183_v18  ;;  %v7837_v18 = vld [vmem:[%s10473_s16 + $0xb8] sm:$0xff] }
 0x437   : > { %v8437_v20 = vpop.f32.mrf.mxu1  ;;  %8441 = vmatmul.mubr.msk.f32.vlgmr.msra.gmra.mxu0 %vm1480_vm3, %v7799_v16  ;;  %8443 = vmatprep.subr.mxu0 %v9353_v0  ;;  %v2518_v16 = vld [vmem:[%s10474_s22] sm:$0xf] }
 0x438   : > { %8444 = vmatpush3.msra.mxu0 %v7809_v19  ;;  %8459 = vmatprep.mubr.msk.f32.mxu0 %vm9354_vm0, %v9353_v0  ;;  %v7836_v19 = vld [vmem:[%s10473_s16 + $0xb0] sm:$0xff]  ;;  %v7835_v20 = vld [vmem:[%s10473_s16 + $0xa8] sm:$0xff] }
 0x439   : > { %8445 = vmatprep.subr.mxu0 %v9353_v0 }
 0x43a   : > { %8446 = vmatpush3.msra.mxu0 %v7808_v21  ;;  %v7834_v21 = vld [vmem:[%s10473_s16 + $0xa0] sm:$0xff] }
 0x43b   : > { %8447 = vmatprep.subr.mxu0 %v9353_v0 }
 0x43c   : > { %8448 = vmatpush3.msra.mxu0 %v7807_v22  ;;  %v7833_v22 = vld [vmem:[%s10473_s16 + $0x98] sm:$0xff] }
 0x43d   : > { %8449 = vmatprep.subr.mxu0 %v9353_v0 }
 0x43e   : > { %8450 = vmatpush3.msra.mxu0 %v7806_v23  ;;  %v7832_v23 = vld [vmem:[%s10473_s16 + $0x90] sm:$0xff] }
 0x43f   : > { %8451 = vmatprep.subr.mxu0 %v9353_v0 }
 0x440   : > { %8452 = vmatpush3.msra.mxu0 %v7805_v24  ;;  %v7831_v24 = vld [vmem:[%s10473_s16 + $0x88] sm:$0xff] }
 0x441   : > { %8453 = vmatprep.subr.mxu0 %v9353_v0 }
 0x442   : > { %8454 = vmatpush3.msra.mxu0 %v7804_v25  ;;  %v7830_v25 = vld [vmem:[%s10473_s16 + $0x80] sm:$0xff] }
 0x443   : > { %8455 = vmatprep.subr.mxu0 %v9353_v0 }
 0x444   : > { %8456 = vmatpush3.msra.mxu0 %v7803_v26  ;;  %v3144_v26 = vld [vmem:[%s10475_s26] sm:$0x3]  ;;  %s10482_s26 = sld [smem:[#allocation23_spill]] }
 0x445   : > { %8457 = vmatprep.subr.mxu0 %v9353_v0  ;;  %3147 = vperm.xlu1 %9041, %v3144_v26  }
 0x446   : > { %8458 = vmatpush3.msra.mxu0 %v7802_v27  ;;  %v3620_v27 = vld [vmem:[%s10476_s28] sm:$0xf]  ;;  %s10483_s28 = sld [smem:[#allocation26_spill]] }
 0x447   : > { %8460 = vmatmul.mubr.msk.f32.vlgmr.msra.gmra.mxu0 %vm1324_vm1, %v9767_v17  ;;  %8486 = vmatprep.subr.mxu0 %v9353_v0  ;;  %v4333_v17 = vld [vmem:[%s9449_s4] sm:$0xf] }
 0x448   : > { %8502 = vmatprep.mubr.msk.f32.mxu0 %vm9354_vm0, %v9353_v0  ;;  %4336 = vperm.xlu0 %9040, %v4333_v17   ;;  %v6030_v17 = vld [vmem:[%s10470_s19] sm:$0xff] }
 0x449   : > { %8487 = vmatpush3.msra.mxu0 %v7823_v49  ;;  %3623 = vperm.xlu1 %9041, %v3620_v27   ;;  %v3160_v49 = vld [vmem:[%s10481_s5 + $0x18] sm:$0xff] }
 0x44a   : > { %8488 = vmatprep.subr.mxu0 %v9353_v0 }
 0x44b   : > { %8489 = vmatpush3.msra.mxu0 %v7822_v51  ;;  %v3159_v51 = vld [vmem:[%s10481_s5 + $0x10] sm:$0xff] }
 0x44c   : > { %4813 = vperm.xlu0 %9040, %v4810_v32   ;;  %8490 = vmatprep.subr.mxu0 %v9353_v0  ;;  %v6854_v32 = vld [vmem:[%s10471_s18] sm:$0xff]  ;;  %s10484_s23 = smov %s10483_s28 }
 0x44d   : > { %8491 = vmatpush3.msra.mxu0 %v7821_v53  ;;  %4329 = vperm.xlu1 %9041, %v4326_v28   ;;  %v3158_v53 = vld [vmem:[%s10481_s5 + $0x8] sm:$0xff] }
 0x44e   : > { %8492 = vmatprep.subr.mxu0 %v9353_v0 }
 0x44f   : > { %8493 = vmatpush3.msra.mxu0 %v7820_v55  ;;  %v3157_v55 = vld [vmem:[%s10481_s5] sm:$0xff] }
 0x450   : > { %5533 = vperm.xlu0 %9040, %v5530_v33   ;;  %8494 = vmatprep.subr.mxu0 %v9353_v0  ;;  %v6868_v33 = vld [vmem:[%s10472_s6] sm:$0xff] }
 0x451   : > { %8495 = vmatpush3.msra.mxu0 %v7819_v57  ;;  %4806 = vperm.xlu1 %9041, %v4803_v29  }
 0x452   : > { %8496 = vmatprep.subr.mxu0 %v9353_v0 }
 0x453   : > { %8497 = vmatpush3.msra.mxu0 %v7818_v59 }
 0x454   : > { %6025 = vperm.xlu0 %9040, %v6017_v34   ;;  %8498 = vmatprep.subr.mxu0 %v9353_v0  ;;  %v7452_v34 = vld [vmem:[%s9554_s21] sm:$0xff] }
 0x455   : > { %8499 = vmatpush3.msra.mxu0 %v7817_v61  ;;  %5526 = vperm.xlu1 %9041, %v5523_v30   ;;  %v7867_v30 = vld [vmem:[%s10482_s26 + $0x8] sm:$0xf] }
 0x456   : > { %8500 = vmatprep.subr.mxu0 %v9353_v0 }
 0x457   : > { %8501 = vmatpush3.msra.mxu0 %v7816_v63 }
 0x458   : > { %6039 = vperm.xlu0 %9040, %v6031_v35   ;;  %8534 = vmatprep.subr.mxu0 %v9353_v0  ;;  %v7454_v35 = vld [vmem:[%s9554_s21 + $0x10] sm:$0xff] }
 0x459   : > { %6020 = vperm.xlu1 %9041, %v6016_v31  }
 0x45c   : > { %6863 = vperm.xlu0 %9040, %v6855_v36   ;;  %v7480_v36 = vld [vmem:[%s9559_s8] sm:$0xff] }
 0x45d   : > { %6034 = vperm.xlu1 %9041, %v6030_v17  }
 0x460   : > { %6877 = vperm.xlu0 %9040, %v6869_v37   ;;  %v7482_v37 = vld [vmem:[%s9559_s8 + $0x10] sm:$0xff] }
 0x461   : > { %6858 = vperm.xlu1 %9041, %v6854_v32   ;;  %v3643_v32 = vld [vmem:[%s10483_s28 + $0x18] sm:$0xff]  ;;  %s10488_s28 = sld [smem:[#allocation36_spill]] }
 0x464   : > { %7463 = vperm.xlu0 %9040, %v7453_v38  }
 0x465   : > { %6872 = vperm.xlu1 %9041, %v6868_v33   ;;  %v7875_v33 = vld [vmem:[%s10484_s23 + $0x38] sm:$0xff] }
 0x468   : > { %7473 = vperm.xlu0 %9040, %v7455_v39  }
 0x469   : > { %7458 = vperm.xlu1 %9041, %v7452_v34   ;;  %v3642_v34 = vld [vmem:[%s10484_s23 + $0x10] sm:$0xff] }
 0x46c   : > { %7491 = vperm.xlu0 %9040, %v7481_v40  }
 0x46d   : > { %7468 = vperm.xlu1 %9041, %v7454_v35   ;;  %v7874_v35 = vld [vmem:[%s10484_s23 + $0x30] sm:$0xff] }
 0x470   : > { %7501 = vperm.xlu0 %9040, %v7483_v41  }
 0x471   : > { %7486 = vperm.xlu1 %9041, %v7480_v36   ;;  %v3641_v36 = vld [vmem:[%s10484_s23 + $0x8] sm:$0xff] }
 0x475   : > { %7496 = vperm.xlu1 %9041, %v7482_v37   ;;  %v7873_v37 = vld [vmem:[%s10484_s23 + $0x28] sm:$0xff] }
 0x4f7   : > { %v2261_v42 = vpop.f32.mrf.mxu0 }
 0x4f8   : > { %v2265_v43 = vadd.f32 %v2261_v42, %v9891_v14 }
 0x4f9   : > { %v8442_v44 = vpop.f32.mrf.mxu0 }
 0x507   : > { %v2341_v46 = vpop.f32.mrf.mxu0 }
 0x508   : > { %8463 = vmatpush3.msk.msra.mxu1 %vm1484_vm2, %v2341_v46  ;;  %v7842_v46 = vld [vmem:[%s10480_s24 + $0x2] sm:$0x3] }
 0x509   : > { %v8461_v47 = vpop.f32.mrf.mxu0  ;;  %8465 = vmatmul.mubr.msk.f32.vlgmr.msra.gmra.mxu1 %vm1480_vm3, %v7811_v45  ;;  %8467 = vmatprep.subr.mxu1 %v9353_v0 }
 0x50a   : > { %8483 = vmatprep.mubr.msk.f32.mxu1 %vm9354_vm0, %v9353_v0  ;;  %8468 = vmatpush3.msra.mxu1 %v2444_v48  ;;  %v2912_v47 = vld [vmem:[%s10480_s24] sm:$0x3]  ;;  %v7847_v48 = vld [vmem:[%s10480_s24 + $0x4] sm:$0x3] }
 0x50b   : > { %8469 = vmatprep.subr.mxu1 %v9353_v0 }
 0x50c   : > { %8470 = vmatpush3.msra.mxu1 %v2443_v50  ;;  %v7855_v50 = vld [vmem:[%s10481_s5 + $0x38] sm:$0xff] }
 0x50d   : > { %8471 = vmatprep.subr.mxu1 %v9353_v0 }
 0x50e   : > { %8472 = vmatpush3.msra.mxu1 %v2442_v52  ;;  %v7854_v52 = vld [vmem:[%s10481_s5 + $0x30] sm:$0xff] }
 0x50f   : > { %8473 = vmatprep.subr.mxu1 %v9353_v0 }
 0x510   : > { %8474 = vmatpush3.msra.mxu1 %v2441_v54  ;;  %v7853_v54 = vld [vmem:[%s10481_s5 + $0x28] sm:$0xff] }
 0x511   : > { %8475 = vmatprep.subr.mxu1 %v9353_v0 }
 0x512   : > { %8476 = vmatpush3.msra.mxu1 %v2440_v56  ;;  %v7852_v56 = vld [vmem:[%s10481_s5 + $0x20] sm:$0xff] }
 0x513   : > { %8477 = vmatprep.subr.mxu1 %v9353_v0 }
 0x514   : > { %8478 = vmatpush3.msra.mxu1 %v2439_v58 }
 0x515   : > { %8479 = vmatprep.subr.mxu1 %v9353_v0 }
 0x516   : > { %8480 = vmatpush3.msra.mxu1 %v2438_v60 }
 0x517   : > { %8481 = vmatprep.subr.mxu1 %v9353_v0 }
 0x518   : > { %8482 = vmatpush3.msra.mxu1 %v2437_v62 }
 0x519   : > { %8505 = vmatprep.subr.mxu1 %v9353_v0 }
 0x5c9   : > { %v2419_v1 = vpop.f32.mrf.mxu1 }
 0x5ca   : > { %v2423_v2 = vadd.f32 %v2419_v1, %v2265_v43  ;;  %v7839_v43 = vld [vmem:[%s10474_s22 + $0x8] sm:$0xf] }
 0x5cb   : > { %v8466_v4 = vpop.f32.mrf.mxu1 }
 0x5cc   : > { %v2430_v5 = vadd.f32 %v2428_v3, %v2423_v2  ;;  %v3141_v4 = vpop.permute.xlu0 %3140 }
 0x5ce   : > { %v2432_v6 = vmin.f32 %v2430_v5, 0.0  ;;  %vm2431_vm4 = vcmp.gt.f32.partialorder %v2430_v5, 0.0 }
 0x5d0   : > { %v2433_v7 = vmul.f32 1.442695, %v2432_v6 }
 0x5d2   : > { %9042 = vpow2.f32 %v2433_v7  ;;  %v3148_v7 = vpop.permute.xlu1 %3147 }
 0x5df   : > { %v9043_v8 = vpop.eup %9042 }
 0x5e0   : > { %v7814_v9 = vadd.f32 -1.0, %v9043_v8 }
 0x5e2   : > { %v2436_v10 = vsel %vm2431_vm4, %v2430_v5, %v7814_v9 }
 0x5e3   : > { %8484 = vmatmul.mubr.msk.f32.vlgmr.msra.gmra.mxu1 %vm1324_vm1, %v2436_v10  ;;  %8503 = vmatmul.mubr.msk.f32.vlgmr.msra.gmra.mxu0 %vm1324_vm1, %v2436_v10 }
 0x5e4   : > { %8507 = vmatprep.mubr.msk.f32.mxu1 %vm9354_vm0, %v9353_v0  ;;  %8536 = vmatprep.mubr.msk.f32.mxu0 %vm9354_vm0, %v9353_v0 }
 0x6a3   : > { %v9979_v12 = vpop.f32.mrf.mxu1  ;;  %v9981_v13 = vpop.f32.mrf.mxu0 }
 0x6a4   : > { %8506 = vmatpush3.msk.msra.mxu1 %vm2604_vm5, %v9981_v13 }
 0x6a5   : > { %v8485_v14 = vpop.f32.mrf.mxu1  ;;  %v8504_v15 = vpop.f32.mrf.mxu0  ;;  %8508 = vmatmul.mubr.msk.f32.vlgmr.msra.gmra.mxu1 %vm2600_vm6, %v7825_v11  ;;  %8510 = vmatprep.subr.mxu1 %v9353_v0 }
 0x6a6   : > { %8511 = vmatpush3.msk.msra.mxu1 %vm2604_vm5, %v9979_v12  ;;  %8512 = vmatprep.mubr.msk.f32.mxu1 %vm9354_vm0, %v9353_v0  ;;  %v7857_v14 = vld [vmem:[%s10482_s26 + $0x4] sm:$0xf] }
 0x6a7   : > { %8515 = vmatprep.subr.mxu1 %v9353_v0 }
 0x6a9   : > { %8513 = vmatmul.mubr.msk.f32.vlgmr.msra.gmra.mxu1 %vm2600_vm6, %v2518_v16 }
 0x6aa   : > { %8516 = vmatpush3.msra.mxu1 %v7837_v18  ;;  %8531 = vmatprep.mubr.msk.f32.mxu1 %vm9354_vm0, %v9353_v0  ;;  %v3235_v18 = vld [vmem:[%s10482_s26] sm:$0xf] }
 0x6ab   : > { %8517 = vmatprep.subr.mxu1 %v9353_v0 }
 0x6ac   : > { %8518 = vmatpush3.msra.mxu1 %v7836_v19  ;;  %v7865_v19 = vld [vmem:[%s10481_s5 + $0x58] sm:$0xff] }
 0x6ad   : > { %8519 = vmatprep.subr.mxu1 %v9353_v0 }
 0x6ae   : > { %8520 = vmatpush3.msra.mxu1 %v7835_v20 }
 0x6af   : > { %8521 = vmatprep.subr.mxu1 %v9353_v0 }
 0x6b0   : > { %8522 = vmatpush3.msra.mxu1 %v7834_v21 }
 0x6b1   : > { %8523 = vmatprep.subr.mxu1 %v9353_v0 }
 0x6b2   : > { %8524 = vmatpush3.msra.mxu1 %v7833_v22  ;;  %v7864_v22 = vld [vmem:[%s10481_s5 + $0x50] sm:$0xff] }
 0x6b3   : > { %8525 = vmatprep.subr.mxu1 %v9353_v0 }
 0x6b4   : > { %8526 = vmatpush3.msra.mxu1 %v7832_v23  ;;  %v7863_v23 = vld [vmem:[%s10481_s5 + $0x48] sm:$0xff] }
 0x6b5   : > { %8527 = vmatprep.subr.mxu1 %v9353_v0 }
 0x6b6   : > { %8528 = vmatpush3.msra.mxu1 %v7831_v24  ;;  %v7862_v24 = vld [vmem:[%s10481_s5 + $0x40] sm:$0xff] }
 0x6b7   : > { %8529 = vmatprep.subr.mxu1 %v9353_v0 }
 0x6b8   : > { %8530 = vmatpush3.msra.mxu1 %v7830_v25 }
 0x6b9   : > { %8532 = vmatmul.mubr.msk.f32.vlgmr.msra.gmra.mxu1 %vm1324_vm1, %v2436_v10  ;;  %8554 = vmatprep.subr.mxu1 %v9353_v0 }
 0x6ba   : > { %8562 = vmatprep.mubr.msk.f32.mxu1 %vm9354_vm0, %v9353_v0  ;;  %8555 = vmatpush3.msra.mxu1 %v3160_v49 }
 0x6bb   : > { %8556 = vmatprep.subr.mxu1 %v9353_v0 }
 0x6bc   : > { %8557 = vmatpush3.msra.mxu1 %v3159_v51 }
 0x6bd   : > { %8558 = vmatprep.subr.mxu1 %v9353_v0 }
 0x6be   : > { %8559 = vmatpush3.msra.mxu1 %v3158_v53  ;;  %v7877_v53 = vld [vmem:[%s10485_s0 + $0x8] sm:$0xff] }
 0x6bf   : > { %8560 = vmatprep.subr.mxu1 %v9353_v0 }
 0x6c0   : > { %8561 = vmatpush3.msra.mxu1 %v3157_v55 }
 0x6c1   : > { %8576 = vmatprep.subr.mxu1 %v9353_v0 }
 0x765   : > { %v2674_v38 = vpop.f32.mrf.mxu1 }
 0x767   : > { %v8509_v39 = vpop.f32.mrf.mxu1 }
 0x768   : > { %v7872_v39 = vld [vmem:[%s10484_s23 + $0x20] sm:$0xff] }
 0x769   : > { %v2750_v40 = vpop.f32.mrf.mxu1 }
 0x76a   : > { %v2751_v41 = vadd.f32 %v2750_v40, %v2674_v38  ;;  %v3640_v38 = vld [vmem:[%s10484_s23] sm:$0xff] }
 0x76b   : > { %v8514_v42 = vpop.f32.mrf.mxu1 }
 0x779   : > { %v2829_v44 = vpop.f32.mrf.mxu1 }
 0x77a   : > { %8535 = vmatpush3.msk.msra.mxu0 %vm2604_vm5, %v2829_v44 }
 0x77b   : > { %v8533_v45 = vpop.f32.mrf.mxu1  ;;  %8537 = vmatmul.mubr.msk.f32.vlgmr.msra.gmra.mxu0 %vm2600_vm6, %v7839_v43  ;;  %8539 = vmatprep.subr.mxu0 %v9353_v0 }
 0x77c   : > { %8540 = vmatpush3.msk.msra.mxu0 %vm2604_vm5, %v9981_v13  ;;  %8541 = vmatprep.mubr.msk.f32.mxu0 %vm9354_vm0, %v9353_v0 }
 0x77d   : > { %8544 = vmatprep.subr.mxu0 %v9353_v0 }
 0x77f   : > { %8542 = vmatmul.mubr.msk.f32.vlgmr.msra.gmra.mxu0 %vm2600_vm6, %v7842_v46  ;;  %v3631_v46 = vpop.permute.xlu0 %3630 }
 0x780   : > { %8545 = vmatpush3.msk.msra.mxu0 %vm2604_vm5, %v9979_v12  ;;  %8546 = vmatprep.mubr.msk.f32.mxu0 %vm9354_vm0, %v9353_v0 }
 0x781   : > { %8549 = vmatprep.subr.mxu0 %v9353_v0 }
 0x783   : > { %8547 = vmatmul.mubr.msk.f32.vlgmr.msra.gmra.mxu0 %vm2600_vm6, %v2912_v47 }
 0x784   : > { %8550 = vmatpush3.msk.msra.mxu0 %vm2604_vm5, %v2829_v44  ;;  %8551 = vmatprep.mubr.msk.f32.mxu0 %vm9354_vm0, %v9353_v0  ;;  %v3624_v44 = vpop.permute.xlu1 %3623 }
 0x785   : > { %8565 = vmatprep.subr.mxu0 %v9353_v0 }
 0x787   : > { %8552 = vmatmul.mubr.msk.f32.vlgmr.msra.gmra.mxu0 %vm2600_vm6, %v7847_v48 }
 0x788   : > { %8573 = vmatprep.mubr.msk.f32.mxu0 %vm9354_vm0, %v9353_v0  ;;  %8566 = vmatpush3.msra.mxu0 %v7855_v50 }
 0x789   : > { %8567 = vmatprep.subr.mxu0 %v9353_v0 }
 0x78a   : > { %8568 = vmatpush3.msra.mxu0 %v7854_v52 }
 0x78b   : > { %8569 = vmatprep.subr.mxu0 %v9353_v0 }
 0x78c   : > { %8570 = vmatpush3.msra.mxu0 %v7853_v54 }
 0x78d   : > { %8571 = vmatprep.subr.mxu0 %v9353_v0 }
 0x78e   : > { %8572 = vmatpush3.msra.mxu0 %v7852_v56  ;;  %v3717_v56 = vld [vmem:[%s10485_s0] sm:$0xff] }
 0x78f   : > { %8581 = vmatprep.subr.mxu0 %v9353_v0 }
 0x83b   : > { %v2907_v57 = vpop.f32.mrf.mxu0 }
 0x83c   : > { %v10070_v58 = vadd.f32 %v2907_v57, %v2751_v41  ;;  %v7885_v57 = vld [vmem:[%s10484_s23 + $0x58] sm:$0xff] }
 0x83d   : > { %v8538_v59 = vpop.f32.mrf.mxu0 }
 0x83f   : > { %v2984_v60 = vpop.f32.mrf.mxu0 }
 0x841   : > { %v8543_v61 = vpop.f32.mrf.mxu0 }
 0x842   : > { %v7883_v61 = vld [vmem:[%s10484_s23 + $0x48] sm:$0xff] }
 0x843   : > { %v3057_v62 = vpop.f32.mrf.mxu0 }
 0x844   : > { %v3058_v1 = vadd.f32 %v3057_v62, %v2984_v60  ;;  %v7884_v60 = vld [vmem:[%s10484_s23 + $0x50] sm:$0xff]  ;;  %v7882_v62 = vld [vmem:[%s10484_s23 + $0x40] sm:$0xff] }
 0x845   : > { %v8548_v63 = vpop.f32.mrf.mxu0 }
 0x846   : > { %v4101_v63 = vld [vmem:[#allocation6] sm:$0xf] }
 0x847   : > { %v3132_v2 = vpop.f32.mrf.mxu0 }
 0x848   : > { %v3136_v3 = vadd.f32 %v3132_v2, %v3058_v1 }
 0x849   : > { %v8553_v5 = vpop.f32.mrf.mxu0 }
 0x84a   : > { %v3143_v6 = vmul.f32 %v3141_v4, %v3136_v3 }
 0x84c   : > { %v3150_v8 = vadd.f32 %v3148_v7, %v3143_v6  ;;  %v7887_v6 = vld [vmem:[%s10485_s0 + $0x10] sm:$0xff]  ;;  %s10487_s0 = smov %s10486_s7 }
 0x84e   : > { %v3152_v9 = vmin.f32 %v3150_v8, 0.0  ;;  %vm3151_vm8 = vcmp.gt.f32.partialorder %v3150_v8, 0.0 }
 0x850   : > { %v3153_v10 = vmul.f32 1.442695, %v3152_v9  ;;  %v4103_v9 = vld [vmem:[#allocation6 + $0x4] sm:$0xf] }
 0x852   : > { %9044 = vpow2.f32 %v3153_v10  ;;  %v4251_v10 = vld [vmem:[#allocation6 + $0x8] sm:$0xf] }
 0x85f   : > { %v9045_v11 = vpop.eup %9044 }
 0x860   : > { %v7850_v12 = vadd.f32 -1.0, %v9045_v11 }
 0x862   : > { %v3156_v13 = vsel %vm3151_vm8, %v3150_v8, %v7850_v12  ;;  %vm7549_vm8 = vcmask 7168  }
 0x863   : > { %8563 = vmatmul.mubr.msk.f32.vlgmr.msra.gmra.mxu1 %vm3161_vm7, %v3156_v13  ;;  %8574 = vmatmul.mubr.msk.f32.vlgmr.msra.gmra.mxu0 %vm3161_vm7, %v3156_v13 }
 0x864   : > { %8578 = vmatprep.mubr.msk.f32.mxu1 %vm9354_vm0, %v9353_v0  ;;  %8583 = vmatprep.mubr.msk.f32.mxu0 %vm9354_vm0, %v9353_v0 }
 0x923   : > { %v3231_v15 = vpop.f32.mrf.mxu1  ;;  %v3307_v16 = vpop.f32.mrf.mxu0 }
 0x924   : > { %8577 = vmatpush3.msk.msra.mxu1 %vm2604_vm5, %v3307_v16  ;;  %8582 = vmatpush3.msk.msra.mxu0 %vm2604_vm5, %v3231_v15  ;;  %v4346_v15 = vld [vmem:[#allocation4] sm:$0xff]  ;;  %v4424_v16 = vld [vmem:[#allocation4 + $0x10] sm:$0xff] }
 0x925   : > { %v8564_v20 = vpop.f32.mrf.mxu1  ;;  %v8575_v21 = vpop.f32.mrf.mxu0  ;;  %8579 = vmatmul.mubr.msk.f32.vlgmr.msra.gmra.mxu1 %vm2600_vm6, %v7857_v14  ;;  %8586 = vmatprep.subr.mxu1 %v9353_v0  ;;  %v4425_v14 = vld [vmem:[#allocation4 + $0x18] sm:$0xff] }
 0x926   : > { %8584 = vmatmul.mubr.msk.f32.vlgmr.msra.gmra.mxu0 %vm2600_vm6, %v3235_v18  ;;  %8587 = vmatpush3.msra.mxu1 %v7865_v19 }
 0x927   : > { %8588 = vmatprep.subr.mxu1 %v9353_v0  ;;  %8594 = vmatprep.mubr.msk.f32.mxu1 %vm9354_vm0, %v9353_v0 }
 0x928   : > { %8589 = vmatpush3.msra.mxu1 %v7864_v22  ;;  %8597 = vmatprep.subr.mxu0 %v9353_v0 }
 0x929   : > { %8590 = vmatprep.subr.mxu1 %v9353_v0  ;;  %8599 = vmatprep.mubr.msk.f32.mxu0 %vm9354_vm0, %v9353_v0 }
 0x92a   : > { %8591 = vmatpush3.msra.mxu1 %v7863_v23 }
 0x92b   : > { %8592 = vmatprep.subr.mxu1 %v9353_v0 }
 0x92c   : > { %8593 = vmatpush3.msra.mxu1 %v7862_v24 }
 0x92d   : > { %8595 = vmatmul.mubr.msk.f32.vlgmr.msra.gmra.mxu1 %vm3161_vm7, %v3156_v13  ;;  %8613 = vmatprep.subr.mxu1 %v9353_v0  ;;  %v4347_v13 = vld [vmem:[#allocation4 + $0x8] sm:$0xff] }
 0x92e   : > { %8621 = vmatprep.mubr.msk.f32.mxu1 %vm9354_vm0, %v9353_v0  ;;  %8614 = vmatpush3.msra.mxu1 %v7875_v33 }
 0x92f   : > { %8615 = vmatprep.subr.mxu1 %v9353_v0 }
 0x930   : > { %8616 = vmatpush3.msra.mxu1 %v7874_v35  ;;  %v7899_v35 = vld [vmem:[%s10486_s7 + $0x8] sm:$0xff]  ;;  %s10490_s7 = sld [smem:[#allocation35_spill]] }
 0x931   : > { %8617 = vmatprep.subr.mxu1 %v9353_v0 }
 0x932   : > { %8618 = vmatpush3.msra.mxu1 %v7873_v37 }
 0x933   : > { %8619 = vmatprep.subr.mxu1 %v9353_v0 }
 0x934   : > { %8620 = vmatpush3.msra.mxu1 %v7872_v39  ;;  %v4652_v39 = vld [vmem:[#allocation4 + $0x28] sm:$0xff] }
 0x935   : > { %8629 = vmatprep.subr.mxu1 %v9353_v0 }
 0x9e5   : > { %v3385_v25 = vpop.f32.mrf.mxu1 }
 0x9e6   : > { %v3461_v26 = vpop.f32.mrf.mxu0 }
 0x9e7   : > { %v3462_v27 = vadd.f32 %v3461_v26, %v3385_v25  ;;  %v8580_v28 = vpop.f32.mrf.mxu1  ;;  %v4330_v26 = vpop.permute.xlu1 %4329 }
 0x9e8   : > { %v8585_v29 = vpop.f32.mrf.mxu0 }
 0x9e9   : > { %v4337_v29 = vpop.permute.xlu0 %4336 }
 0x9ed   : > { %v3536_v31 = vpop.f32.mrf.mxu1 }
 0x9ee   : > { %8598 = vmatpush3.msk.msra.mxu0 %vm2604_vm5, %v3536_v31 }
 0x9ef   : > { %v8596_v17 = vpop.f32.mrf.mxu1  ;;  %8600 = vmatmul.mubr.msk.f32.vlgmr.msra.gmra.mxu0 %vm2600_vm6, %v7867_v30  ;;  %8602 = vmatprep.subr.mxu0 %v9353_v0 }
 0x9f0   : > { %8610 = vmatprep.mubr.msk.f32.mxu0 %vm9354_vm0, %v9353_v0  ;;  %8603 = vmatpush3.msra.mxu0 %v3643_v32 }
 0x9f1   : > { %8604 = vmatprep.subr.mxu0 %v9353_v0 }
 0x9f2   : > { %8605 = vmatpush3.msra.mxu0 %v3642_v34 }
 0x9f3   : > { %8606 = vmatprep.subr.mxu0 %v9353_v0 }
 0x9f4   : > { %8607 = vmatpush3.msra.mxu0 %v3641_v36  ;;  %v4422_v36 = vld [vmem:[%s10487_s0] sm:$0xff] }
 0x9f5   : > { %8608 = vmatprep.subr.mxu0 %v9353_v0 }
 0x9f6   : > { %8609 = vmatpush3.msra.mxu0 %v3640_v38 }
 0x9f7   : > { %8624 = vmatprep.subr.mxu0 %v9353_v0 }
 0xaaf   : > { %v3614_v40 = vpop.f32.mrf.mxu0 }
 0xab0   : > { %v3618_v41 = vadd.f32 %v3614_v40, %v3462_v27 }
 0xab1   : > { %v8601_v42 = vpop.f32.mrf.mxu0 }
 0xab2   : > { %v3619_v43 = vadd.f32 %v3618_v41, %v10070_v58  ;;  %v4651_v42 = vld [vmem:[#allocation4 + $0x20] sm:$0xff] }
 0xab4   : > { %v3626_v45 = vmul.f32 %v3624_v44, %v3619_v43 }
 0xab6   : > { %v3633_v47 = vadd.f32 %v3631_v46, %v3626_v45 }
 0xab8   : > { %v3635_v48 = vmin.f32 %v3633_v47, 0.0  ;;  %vm3634_vm9 = vcmp.gt.f32.partialorder %v3633_v47, 0.0 }
 0xaba   : > { %v3636_v49 = vmul.f32 1.442695, %v3635_v48  ;;  %v7905_v48 = vld [vmem:[%s10487_s0 + $0x10] sm:$0xff]  ;;  %s10489_s0 = smov %s10488_s28 }
 0xabc   : > { %9046 = vpow2.f32 %v3636_v49 }
 0xac9   : > { %v9047_v50 = vpop.eup %9046 }
 0xaca   : > { %v7870_v51 = vadd.f32 -1.0, %v9047_v50 }
 0xacc   : > { %v3639_v52 = vsel %vm3634_vm9, %v3633_v47, %v7870_v51  ;;  %v4824_v51 = vld [vmem:[#allocation7 + $0x8] sm:$0xff] }
 0xacd   : > { %8611 = vmatmul.mubr.msk.f32.vlgmr.msra.gmra.mxu0 %vm3161_vm7, %v3639_v52  ;;  %8622 = vmatmul.mubr.msk.f32.vlgmr.msra.gmra.mxu1 %vm3161_vm7, %v3639_v52 }
 0xace   : > { %8626 = vmatprep.mubr.msk.f32.mxu0 %vm9354_vm0, %v9353_v0  ;;  %8631 = vmatprep.mubr.msk.f32.mxu1 %vm9354_vm0, %v9353_v0 }
 0xb8d   : > { %v3713_v54 = vpop.f32.mrf.mxu0  ;;  %v3789_v55 = vpop.f32.mrf.mxu1 }
 0xb8e   : > { %8625 = vmatpush3.msk.msra.mxu0 %vm1484_vm2, %v3789_v55  ;;  %8630 = vmatpush3.msk.msra.mxu1 %vm1484_vm2, %v3713_v54 }
 0xb8f   : > { %v8612_v58 = vpop.f32.mrf.mxu0  ;;  %v8623_v59 = vpop.f32.mrf.mxu1  ;;  %8627 = vmatmul.mubr.msk.f32.vlgmr.msra.gmra.mxu0 %vm1480_vm3, %v7877_v53  ;;  %8634 = vmatprep.subr.mxu0 %v9353_v0  ;;  %v4823_v53 = vld [vmem:[#allocation7] sm:$0xff] }
 0xb90   : > { %8632 = vmatmul.mubr.msk.f32.vlgmr.msra.gmra.mxu1 %vm1480_vm3, %v3717_v56  ;;  %8635 = vmatpush3.msra.mxu0 %v7885_v57  ;;  %v4807_v59 = vpop.permute.xlu1 %4806 }
 0xb91   : > { %8636 = vmatprep.subr.mxu0 %v9353_v0  ;;  %8642 = vmatprep.mubr.msk.f32.mxu0 %vm9354_vm0, %v9353_v0 }
 0xb92   : > { %8637 = vmatpush3.msra.mxu0 %v7884_v60  ;;  %8645 = vmatprep.subr.mxu1 %v9353_v0 }
 0xb93   : > { %8638 = vmatprep.subr.mxu0 %v9353_v0  ;;  %8647 = vmatprep.mubr.msk.f32.mxu1 %vm9354_vm0, %v9353_v0 }
 0xb94   : > { %8639 = vmatpush3.msra.mxu0 %v7883_v61  ;;  %v4814_v61 = vpop.permute.xlu0 %4813 }
 0xb95   : > { %8640 = vmatprep.subr.mxu0 %v9353_v0 }
 0xb96   : > { %8641 = vmatpush3.msra.mxu0 %v7882_v62 }
 0xb97   : > { %8643 = vmatmul.mubr.msk.f32.vlgmr.msra.gmra.mxu0 %vm3161_vm7, %v3639_v52  ;;  %8655 = vmatprep.subr.mxu0 %v9353_v0  ;;  %v4902_v52 = vld [vmem:[#allocation7 + $0x18] sm:$0xff] }
 0xb98   : > { %8656 = vmatpush3.msk.msra.mxu0 %vm1484_vm2, %v3713_v54  ;;  %8657 = vmatprep.mubr.msk.f32.mxu0 %vm9354_vm0, %v9353_v0  ;;  %v4901_v54 = vld [vmem:[#allocation7 + $0x10] sm:$0xff] }
 0xb99   : > { %8665 = vmatprep.subr.mxu0 %v9353_v0 }
 0xb9b   : > { %8658 = vmatmul.mubr.msk.f32.vlgmr.msra.gmra.mxu0 %vm1480_vm3, %v4101_v63 }
 0xb9c   : > { %8669 = vmatprep.mubr.msk.f32.mxu0 %vm9354_vm0, %v9353_v0  ;;  %8666 = vmatpush3.msra.mxu0 %v4347_v13  ;;  %v5141_v13 = vld [vmem:[#allocation7 + $0x28] sm:$0xff] }
 0xb9d   : > { %8667 = vmatprep.subr.mxu0 %v9353_v0 }
 0xb9e   : > { %8668 = vmatpush3.msra.mxu0 %v4346_v15  ;;  %v5300_v15 = vld [vmem:[#allocation10 + $0x8] sm:$0xff] }
 0xb9f   : > { %8679 = vmatprep.subr.mxu0 %v9353_v0 }
 0xc4f   : > { %v3867_v1 = vpop.f32.mrf.mxu0 }
 0xc50   : > { %v3943_v2 = vpop.f32.mrf.mxu1 }
 0xc51   : > { %v3944_v3 = vadd.f32 %v3943_v2, %v3867_v1  ;;  %v8628_v4 = vpop.f32.mrf.mxu0 }
 0xc52   : > { %v8633_v5 = vpop.f32.mrf.mxu1 }
 0xc53   : > { %v7911_v5 = vld [vmem:[%s10488_s28 + $0x10] sm:$0xff]  ;;  %s10492_s28 = sld [smem:[#allocation39_spill]] }
 0xc57   : > { %v4018_v7 = vpop.f32.mrf.mxu0 }
 0xc58   : > { %8646 = vmatpush3.msk.msra.mxu1 %vm1484_vm2, %v4018_v7 }
 0xc59   : > { %v8644_v8 = vpop.f32.mrf.mxu0  ;;  %8648 = vmatmul.mubr.msk.f32.vlgmr.msra.gmra.mxu1 %vm1480_vm3, %v7887_v6  ;;  %8650 = vmatprep.subr.mxu1 %v9353_v0  ;;  %v4898_v6 = vld [vmem:[%s10489_s0] sm:$0xff]  ;;  %s10493_s3 = smov %s10492_s28 }
 0xc5a   : > { %8651 = vmatpush3.msk.msra.mxu1 %vm1484_vm2, %v3789_v55  ;;  %8652 = vmatprep.mubr.msk.f32.mxu1 %vm9354_vm0, %v9353_v0 }
 0xc5b   : > { %8660 = vmatprep.subr.mxu1 %v9353_v0  ;;  %v4246_v11 = vpop.f32.mrf.mxu0 }
 0xc5d   : > { %8653 = vmatmul.mubr.msk.f32.vlgmr.msra.gmra.mxu1 %vm1480_vm3, %v4103_v9  ;;  %v8659_v12 = vpop.f32.mrf.mxu0  ;;  %v7912_v9 = vld [vmem:[%s10489_s0 + $0x18] sm:$0xff] }
 0xc5e   : > { %8661 = vmatpush3.msk.msra.mxu1 %vm1484_vm2, %v4018_v7  ;;  %8662 = vmatprep.mubr.msk.f32.mxu1 %vm9354_vm0, %v9353_v0 }
 0xc5f   : > { %8672 = vmatprep.subr.mxu1 %v9353_v0 }
 0xc61   : > { %8663 = vmatmul.mubr.msk.f32.vlgmr.msra.gmra.mxu1 %vm1480_vm3, %v4251_v10  ;;  %v4899_v10 = vld [vmem:[%s10489_s0 + $0x8] sm:$0xff] }
 0xc62   : > { %8676 = vmatprep.mubr.msk.f32.mxu1 %vm9354_vm0, %v9353_v0  ;;  %8673 = vmatpush3.msra.mxu1 %v4425_v14  ;;  %v5140_v14 = vld [vmem:[#allocation7 + $0x20] sm:$0xff] }
 0xc63   : > { %8674 = vmatprep.subr.mxu1 %v9353_v0 }
 0xc64   : > { %8675 = vmatpush3.msra.mxu1 %v4424_v16  ;;  %v7918_v16 = vld [vmem:[%s10489_s0 + $0x20] sm:$0xff] }
 0xc65   : > { %8684 = vmatprep.subr.mxu1 %v9353_v0 }
 0xd19   : > { %v4096_v18 = vpop.f32.mrf.mxu1 }
 0xd1a   : > { %v10178_v19 = vadd.f32 %v4096_v18, %v3944_v3 }
 0xd1b   : > { %v8649_v20 = vpop.f32.mrf.mxu1 }
 0xd1d   : > { %v4173_v21 = vpop.f32.mrf.mxu1 }
 0xd1e   : > { %v4247_v23 = vadd.f32 %v4246_v11, %v4173_v21 }
 0xd1f   : > { %v8654_v22 = vpop.f32.mrf.mxu1 }
 0xd20   : > { %v5448_v22 = vld [vmem:[#allocation10 + $0x10] sm:$0xff] }
 0xd21   : > { %v4321_v24 = vpop.f32.mrf.mxu1 }
 0xd22   : > { %v4325_v25 = vadd.f32 %v4321_v24, %v4247_v23  ;;  %v7919_v24 = vld [vmem:[%s10489_s0 + $0x28] sm:$0xff]  ;;  %s10491_s0 = smov %s10490_s7 }
 0xd23   : > { %v8664_v27 = vpop.f32.mrf.mxu1 }
 0xd24   : > { %v4332_v28 = vmul.f32 %v4330_v26, %v4325_v25  ;;  %v5298_v26 = vld [vmem:[#allocation10] sm:$0xff] }
 0xd26   : > { %v4339_v30 = vadd.f32 %v4337_v29, %v4332_v28  ;;  %v5543_v29 = vld [vmem:[#allocation9] sm:$0xff] }
 0xd28   : > { %v4341_v31 = vmin.f32 %v4339_v30, 0.0  ;;  %vm4340_vm11 = vcmp.gt.f32.partialorder %v4339_v30, 0.0 }
 0xd2a   : > { %v4342_v17 = vmul.f32 1.442695, %v4341_v31 }
 0xd2c   : > { %9048 = vpow2.f32 %v4342_v17 }
 0xd39   : > { %v9049_v32 = vpop.eup %9048 }
 0xd3a   : > { %v7896_v33 = vadd.f32 -1.0, %v9049_v32 }
 0xd3c   : > { %v4345_v34 = vsel %vm4340_vm11, %v4339_v30, %v7896_v33  ;;  %v5620_v30 = vld [vmem:[#allocation9 + $0x8] sm:$0xff] }
 0xd3d   : > { %8670 = vmatmul.mubr.msk.f32.vlgmr.msra.gmra.mxu0 %vm4348_vm10, %v4345_v34  ;;  %8677 = vmatmul.mubr.msk.f32.vlgmr.msra.gmra.mxu1 %vm4348_vm10, %v4345_v34 }
 0xd3e   : > { %8681 = vmatprep.mubr.msk.f32.mxu0 %vm9354_vm0, %v9353_v0  ;;  %8686 = vmatprep.mubr.msk.f32.mxu1 %vm9354_vm0, %v9353_v0 }
 0xdfd   : > { %v4418_v37 = vpop.f32.mrf.mxu0  ;;  %v4492_v38 = vpop.f32.mrf.mxu1 }
 0xdfe   : > { %8680 = vmatpush3.msk.msra.mxu0 %vm1484_vm2, %v4492_v38  ;;  %8685 = vmatpush3.msk.msra.mxu1 %vm1484_vm2, %v4418_v37 }
 0xdff   : > { %v8671_v40 = vpop.f32.mrf.mxu0  ;;  %v8678_v41 = vpop.f32.mrf.mxu1  ;;  %8682 = vmatmul.mubr.msk.f32.vlgmr.msra.gmra.mxu0 %vm1480_vm3, %v7899_v35  ;;  %8687 = vmatmul.mubr.msk.f32.vlgmr.msra.gmra.mxu1 %vm1480_vm3, %v4422_v36 }
 0xe00   : > { %8689 = vmatprep.subr.mxu0 %v9353_v0  ;;  %8693 = vmatprep.mubr.msk.f32.mxu0 %vm9354_vm0, %v9353_v0 }
 0xe01   : > { %8690 = vmatpush3.msra.mxu0 %v4652_v39  ;;  %8696 = vmatprep.subr.mxu1 %v9353_v0 }
 0xe02   : > { %8691 = vmatprep.subr.mxu0 %v9353_v0  ;;  %8698 = vmatprep.mubr.msk.f32.mxu1 %vm9354_vm0, %v9353_v0 }
 0xe03   : > { %8692 = vmatpush3.msra.mxu0 %v4651_v42  ;;  %v5527_v42 = vpop.permute.xlu1 %5526 }
 0xe04   : > { %8694 = vmatmul.mubr.msk.f32.vlgmr.msra.gmra.mxu0 %vm4348_vm10, %v4345_v34  ;;  %8701 = vmatprep.subr.mxu0 %v9353_v0 }
 0xe05   : > { %8705 = vmatprep.mubr.msk.f32.mxu0 %vm9354_vm0, %v9353_v0  ;;  %8702 = vmatpush3.msra.mxu0 %v4824_v51  ;;  %v7928_v51 = vld [vmem:[%s10490_s7 + $0x10] sm:$0xff]  ;;  %s10494_s7 = sld [smem:[#allocation44_spill]] }
 0xe06   : > { %8703 = vmatprep.subr.mxu0 %v9353_v0 }
 0xe07   : > { %8704 = vmatpush3.msra.mxu0 %v4823_v53 }
 0xebf   : > { %v4570_v43 = vpop.f32.mrf.mxu0  ;;  %v4646_v44 = vpop.f32.mrf.mxu1 }
 0xec0   : > { %v4647_v45 = vadd.f32 %v4646_v44, %v4570_v43  ;;  %v5534_v44 = vpop.permute.xlu0 %5533 }
 0xec1   : > { %v8683_v46 = vpop.f32.mrf.mxu0  ;;  %v8688_v47 = vpop.f32.mrf.mxu1 }
 0xec4   : > { %v4719_v49 = vpop.f32.mrf.mxu0 }
 0xec5   : > { %8697 = vmatpush3.msk.msra.mxu1 %vm1484_vm2, %v4719_v49 }
 0xec6   : > { %v8695_v50 = vpop.f32.mrf.mxu0  ;;  %8699 = vmatmul.mubr.msk.f32.vlgmr.msra.gmra.mxu1 %vm1480_vm3, %v7905_v48  ;;  %8708 = vmatprep.subr.mxu1 %v9353_v0 }
 0xec7   : > { %8712 = vmatprep.mubr.msk.f32.mxu1 %vm9354_vm0, %v9353_v0  ;;  %8709 = vmatpush3.msra.mxu1 %v4902_v52  ;;  %v5617_v52 = vld [vmem:[%s10491_s0] sm:$0xff] }
 0xec8   : > { %8710 = vmatprep.subr.mxu1 %v9353_v0 }
 0xec9   : > { %8711 = vmatpush3.msra.mxu1 %v4901_v54 }
 0xf86   : > { %v4797_v55 = vpop.f32.mrf.mxu1 }
 0xf87   : > { %v4801_v56 = vadd.f32 %v4797_v55, %v4647_v45  ;;  %v7929_v55 = vld [vmem:[%s10491_s0 + $0x18] sm:$0xff] }
 0xf88   : > { %v8700_v57 = vpop.f32.mrf.mxu1 }
 0xf89   : > { %v4802_v58 = vadd.f32 %v4801_v56, %v10178_v19  ;;  %v5618_v56 = vld [vmem:[%s10491_s0 + $0x8] sm:$0xff] }
 0xf8b   : > { %v4809_v60 = vmul.f32 %v4807_v59, %v4802_v58  ;;  %v5857_v59 = vld [vmem:[#allocation9 + $0x10] sm:$0xff] }
 0xf8d   : > { %v4816_v62 = vadd.f32 %v4814_v61, %v4809_v60  ;;  %v7935_v60 = vld [vmem:[%s10491_s0 + $0x20] sm:$0xff] }
 0xf8f   : > { %v4818_v63 = vmin.f32 %v4816_v62, 0.0  ;;  %vm4817_vm12 = vcmp.gt.f32.partialorder %v4816_v62, 0.0 }
 0xf91   : > { %v4819_v1 = vmul.f32 1.442695, %v4818_v63 }
 0xf93   : > { %9050 = vpow2.f32 %v4819_v1  ;;  %v7936_v1 = vld [vmem:[%s10491_s0 + $0x28] sm:$0xff]  ;;  %s10495_s0 = smov %s10494_s7 }
 0xfa0   : > { %v9051_v2 = vpop.eup %9050 }
 0xfa1   : > { %v7908_v3 = vadd.f32 -1.0, %v9051_v2 }
 0xfa3   : > { %v4822_v4 = vsel %vm4817_vm12, %v4816_v62, %v7908_v3  ;;  %v6056_v3 = vld [vmem:[%s10492_s28] sm:$0xff]  ;;  %s10496_s28 = sld [smem:[#allocation40_spill]] }
 0xfa4   : > { %8706 = vmatmul.mubr.msk.f32.vlgmr.msra.gmra.mxu0 %vm4348_vm10, %v4822_v4  ;;  %8713 = vmatmul.mubr.msk.f32.vlgmr.msra.gmra.mxu1 %vm4348_vm10, %v4822_v4 }
 0xfa5   : > { %8717 = vmatprep.mubr.msk.f32.mxu0 %vm4976_vm13, %v7911_v5  ;;  %8722 = vmatprep.mubr.msk.f32.mxu1 %vm4976_vm13, %v4898_v6 }
0x1064   : > { %v4894_v7 = vpop.f32.mrf.mxu0  ;;  %v4969_v8 = vpop.f32.mrf.mxu1 }
0x1065   : > { %8715 = vmatprep.subr.mxu0 %v4969_v8  ;;  %8720 = vmatprep.subr.mxu1 %v4894_v7 }
0x1066   : > { %v8707_v11 = vpop.f32.mrf.mxu0  ;;  %v8714_v12 = vpop.f32.mrf.mxu1  ;;  %8716 = vmatpush3.msra.mxu0 %v4969_v8  ;;  %8721 = vmatpush3.msra.mxu1 %v4894_v7 }
0x1067   : > { %8718 = vmatmul.mubr.msk.f32.vlgmr.msra.gmra.mxu0 %vm4976_vm13, %v7912_v9  ;;  %8723 = vmatmul.mubr.msk.f32.vlgmr.msra.gmra.mxu1 %vm4976_vm13, %v4899_v10  ;;  %v6021_v11 = vpop.permute.xlu1 %6020 }
0x1068   : > { %8725 = vmatprep.subr.mxu0 %v9353_v0  ;;  %8729 = vmatprep.mubr.msk.f32.mxu0 %vm9354_vm0, %v9353_v0 }
0x1069   : > { %8726 = vmatpush3.msra.mxu0 %v5141_v13  ;;  %8734 = vmatprep.mubr.msk.f32.mxu1 %vm4976_vm13, %v7918_v16 }
0x106a   : > { %8727 = vmatprep.subr.mxu0 %v9353_v0 }
0x106b   : > { %8728 = vmatpush3.msra.mxu0 %v5140_v14 }
0x106c   : > { %8730 = vmatmul.mubr.msk.f32.vlgmr.msra.gmra.mxu0 %vm4348_vm10, %v4822_v4  ;;  %8737 = vmatprep.subr.mxu0 %v9353_v0  ;;  %v7943_v4 = vld [vmem:[%s10493_s3 + $0x8] sm:$0xff] }
0x106d   : > { %8738 = vmatpush3.msra.mxu0 %v4969_v8  ;;  %8739 = vmatprep.mubr.msk.f32.mxu0 %vm9354_vm0, %v9353_v0 }
0x106e   : > { %8747 = vmatprep.subr.mxu0 %v9353_v0 }
0x1070   : > { %8740 = vmatmul.mubr.msk.f32.vlgmr.msra.gmra.mxu0 %vm4976_vm13, %v5300_v15 }
0x1071   : > { %8749 = vmatprep.mubr.msk.f32.mxu0 %vm9354_vm0, %v9353_v0 }
0x1127   : > { %v8719_v18 = vpop.f32.mrf.mxu0  ;;  %v8724_v19 = vpop.f32.mrf.mxu1 }
0x1128   : > { %v5136_v20 = vadd.f32 %v8724_v19, %v8719_v18 }
0x1129   : > { %v5049_v21 = vpop.f32.mrf.mxu0  ;;  %v5130_v31 = vpop.f32.mrf.mxu1 }
0x112a   : > { %v5131_v33 = vadd.f32 %v5130_v31, %v5049_v21  ;;  %v6035_v21 = vpop.permute.xlu1 %6034 }
0x112c   : > { %v5208_v23 = vpop.f32.mrf.mxu0 }
0x112d   : > { %8732 = vmatprep.subr.mxu1 %v5208_v23  ;;  %8748 = vmatpush3.msra.mxu0 %v5208_v23 }
0x112e   : > { %v8731_v25 = vpop.f32.mrf.mxu0  ;;  %8733 = vmatpush3.msra.mxu1 %v5208_v23  ;;  %8750 = vmatmul.mubr.msk.f32.vlgmr.msra.gmra.mxu0 %vm4976_vm13, %v5448_v22 }
0x112f   : > { %8735 = vmatmul.mubr.msk.f32.vlgmr.msra.gmra.mxu1 %vm4976_vm13, %v7919_v24  ;;  %8742 = vmatprep.subr.mxu1 %v9353_v0 }
0x1130   : > { %8743 = vmatpush3.msra.mxu1 %v4894_v7  ;;  %8744 = vmatprep.mubr.msk.f32.mxu1 %vm9354_vm0, %v9353_v0  ;;  %v5370_v27 = vpop.f32.mrf.mxu0  ;;  %v6026_v7 = vpop.permute.xlu0 %6025 }
0x1131   : > { %8752 = vmatprep.subr.mxu1 %v9353_v0  ;;  %8757 = vmatprep.subr.mxu0 %v9353_v0 }
0x1132   : > { %8759 = vmatprep.mubr.msk.f32.mxu0 %vm9354_vm0, %v9353_v0  ;;  %v8741_v28 = vpop.f32.mrf.mxu0  ;;  %8758 = vmatpush3.msra.mxu0 %v5620_v30 }
0x1133   : > { %8745 = vmatmul.mubr.msk.f32.vlgmr.msra.gmra.mxu1 %vm4976_vm13, %v5298_v26 }
0x1134   : > { %8754 = vmatprep.mubr.msk.f32.mxu1 %vm9354_vm0, %v9353_v0  ;;  %8753 = vmatpush3.msra.mxu1 %v5543_v29  ;;  %v6040_v18 = vpop.permute.xlu0 %6039 }
0x11ee   : > { %v5518_v17 = vpop.f32.mrf.mxu0 }
0x11ef   : > { %v8736_v32 = vpop.f32.mrf.mxu1 }
0x11f0   : > { %v10249_v34 = vadd.f32 %v8736_v32, %v5136_v20  ;;  %v8751_v35 = vpop.f32.mrf.mxu0  ;;  %v7946_v32 = vld [vmem:[%s10494_s7 + $0x20] sm:$0xff]  ;;  %s10498_s7 = sld [smem:[#allocation43_spill]] }
0x11f1   : > { %v5287_v36 = vpop.f32.mrf.mxu1 }
0x11f2   : > { %v10251_v37 = vadd.f32 %v5287_v36, %v5131_v33  ;;  %v6138_v33 = vld [vmem:[%s10495_s0] sm:$0xff] }
0x11f3   : > { %v5443_v38 = vpop.f32.mrf.mxu1 }
0x11f4   : > { %v5444_v39 = vadd.f32 %v5443_v38, %v5370_v27  ;;  %v7947_v38 = vld [vmem:[%s10495_s0 + $0x28] sm:$0xff] }
0x11f5   : > { %v8746_v40 = vpop.f32.mrf.mxu1 }
0x11f6   : > { %v5522_v41 = vadd.f32 %v5518_v17, %v5444_v39  ;;  %v6139_v39 = vld [vmem:[%s10495_s0 + $0x8] sm:$0xff]  ;;  %v7958_v40 = vld [vmem:[%s10493_s3 + $0x10] sm:$0xff]  ;;  %s10497_s3 = smov %s10496_s28 }
0x11f8   : > { %v5529_v43 = vmul.f32 %v5527_v42, %v5522_v41  ;;  %v7948_v41 = vld [vmem:[%s10495_s0 + $0x30] sm:$0xff] }
0x11f9   : > { %v6140_v42 = vld [vmem:[%s10495_s0 + $0x10] sm:$0xff] }
0x11fa   : > { %v5536_v45 = vadd.f32 %v5534_v44, %v5529_v43  ;;  %v7949_v43 = vld [vmem:[%s10495_s0 + $0x38] sm:$0xff] }
0x11fb   : > { %v6141_v44 = vld [vmem:[%s10495_s0 + $0x18] sm:$0xff] }
0x11fc   : > { %v5538_v46 = vmin.f32 %v5536_v45, 0.0  ;;  %vm5537_vm14 = vcmp.gt.f32.partialorder %v5536_v45, 0.0 }
0x11fe   : > { %v5539_v47 = vmul.f32 1.442695, %v5538_v46  ;;  %v6605_v46 = vld [vmem:[#allocation12 + $0x18] sm:$0xff] }
0x1200   : > { %9052 = vpow2.f32 %v5539_v47  ;;  %v7961_v47 = vld [vmem:[%s10495_s0 + $0x40] sm:$0xff] }
0x120d   : > { %v9053_v48 = vpop.eup %9052 }
0x120e   : > { %v7925_v49 = vadd.f32 -1.0, %v9053_v48  ;;  %v6601_v48 = vld [vmem:[#allocation12] sm:$0xff] }
0x1210   : > { %v5542_v50 = vsel %vm5537_vm14, %v5536_v45, %v7925_v49  ;;  %v6604_v45 = vld [vmem:[#allocation12 + $0x10] sm:$0xff]  ;;  %v6602_v49 = vld [vmem:[#allocation12 + $0x8] sm:$0xff] }
0x1211   : > { %8755 = vmatmul.mubr.msk.f32.vlgmr.msra.gmra.mxu1 %vm4976_vm13, %v5542_v50  ;;  %8760 = vmatmul.mubr.msk.f32.vlgmr.msra.gmra.mxu0 %vm4976_vm13, %v5542_v50 }
0x1212   : > { %8764 = vmatprep.mubr.msk.f32.mxu1 %vm4976_vm13, %v7928_v51  ;;  %8769 = vmatprep.mubr.msk.f32.mxu0 %vm4976_vm13, %v5617_v52 }
0x12d1   : > { %v5613_v53 = vpop.f32.mrf.mxu1  ;;  %v5687_v54 = vpop.f32.mrf.mxu0 }
0x12d2   : > { %8762 = vmatprep.subr.mxu1 %v5687_v54  ;;  %8767 = vmatprep.subr.mxu0 %v5613_v53 }
0x12d3   : > { %v8756_v57 = vpop.f32.mrf.mxu1  ;;  %v8761_v58 = vpop.f32.mrf.mxu0  ;;  %8763 = vmatpush3.msra.mxu1 %v5687_v54  ;;  %8768 = vmatpush3.msra.mxu0 %v5613_v53 }
0x12d4   : > { %8765 = vmatmul.mubr.msk.f32.vlgmr.msra.gmra.mxu1 %vm4976_vm13, %v7929_v55  ;;  %8770 = vmatmul.mubr.msk.f32.vlgmr.msra.gmra.mxu0 %vm4976_vm13, %v5618_v56 }
0x12d5   : > { %8772 = vmatprep.subr.mxu1 %v9353_v0  ;;  %8774 = vmatprep.mubr.msk.f32.mxu1 %vm9354_vm0, %v9353_v0 }
0x12d6   : > { %8773 = vmatpush3.msra.mxu1 %v5857_v59  ;;  %8779 = vmatprep.mubr.msk.f32.mxu0 %vm4976_vm13, %v7935_v60 }
0x12d7   : > { %8782 = vmatprep.subr.mxu1 %v6056_v3 }
0x12d8   : > { %8775 = vmatmul.mubr.msk.f32.vlgmr.msra.gmra.mxu1 %vm4976_vm13, %v5542_v50 }
0x12d9   : > { %8783 = vmatpush3.msra.mxu1 %v6056_v3  ;;  %v6770_v3 = vld [vmem:[#allocation12 + $0x28] sm:$0xff] }
0x1394   : > { %v8766_v61 = vpop.f32.mrf.mxu1  ;;  %v8771_v0 = vpop.f32.mrf.mxu0 }
0x1395   : > { %v5853_v6 = vadd.f32 %v8771_v0, %v8766_v61  ;;  %v7980_v0 = vld [vmem:[%s10497_s3 + $0x4] sm:$0xf] }
0x1396   : > { %v5766_v62 = vpop.f32.mrf.mxu1  ;;  %v5847_v5 = vpop.f32.mrf.mxu0 }
0x1397   : > { %v5848_v9 = vadd.f32 %v5847_v5, %v5766_v62  ;;  %v7962_v62 = vld [vmem:[%s10495_s0 + $0x48] sm:$0xff] }
0x1398   : > { %v5924_v63 = vpop.f32.mrf.mxu1 }
0x1399   : > { %8777 = vmatprep.subr.mxu0 %v5924_v63 }
0x139a   : > { %v8776_v2 = vpop.f32.mrf.mxu1  ;;  %8778 = vmatpush3.msra.mxu0 %v5924_v63  ;;  %v7963_v63 = vld [vmem:[%s10495_s0 + $0x50] sm:$0xff] }
0x139b   : > { %8780 = vmatmul.mubr.msk.f32.vlgmr.msra.gmra.mxu0 %vm4976_vm13, %v7936_v1  ;;  %8787 = vmatprep.subr.mxu0 %v7943_v4  ;;  %v7964_v1 = vld [vmem:[%s10495_s0 + $0x58] sm:$0xff]  ;;  %v6769_v2 = vld [vmem:[#allocation12 + $0x20] sm:$0xff]  ;;  %s10499_s0 = smov %s10498_s7 }
0x139c   : > { %8788 = vmatpush3.msra.mxu0 %v7943_v4  ;;  %v6894_v4 = vld [vmem:[%s10496_s28] sm:$0xf]  ;;  %s10500_s28 = sld [smem:[#allocation45_spill]] }
0x145b   : > { %v8781_v8 = vpop.f32.mrf.mxu0 }
0x145c   : > { %v6013_v10 = vadd.f32 %v8781_v8, %v5853_v6 }
0x145d   : > { %v6003_v12 = vpop.f32.mrf.mxu0 }
0x145e   : > { %v6015_v13 = vadd.f32 %v6013_v10, %v10249_v34  ;;  %v6012_v14 = vadd.f32 %v6003_v12, %v5848_v9 }
0x1460   : > { %v6029_v15 = vmul.f32 %v6026_v7, %v6015_v13  ;;  %v6014_v16 = vadd.f32 %v6012_v14, %v10251_v37  ;;  %v6864_v14 = vpop.permute.xlu0 %6863 }
0x1462   : > { %v6043_v19 = vadd.f32 %v6040_v18, %v6029_v15  ;;  %v6028_v20 = vmul.f32 %v6021_v11, %v6014_v16 }
0x1464   : > { %v6047_v22 = vmin.f32 %v6043_v19, 0.0  ;;  %v6042_v23 = vadd.f32 %v6035_v21, %v6028_v20  ;;  %vm6045_vm0 = vcmp.gt.f32.partialorder %v6043_v19, 0.0 }
0x1466   : > { %v6050_v24 = vmul.f32 1.442695, %v6047_v22  ;;  %v6046_v25 = vmin.f32 %v6042_v23, 0.0  ;;  %vm6044_vm15 = vcmp.gt.f32.partialorder %v6042_v23, 0.0  ;;  %v6859_v22 = vpop.permute.xlu1 %6858 }
0x1468   : > { %9054 = vpow2.f32 %v6050_v24  ;;  %v6048_v26 = vmul.f32 1.442695, %v6046_v25 }
0x146a   : > { %9056 = vpow2.f32 %v6048_v26 }
0x1475   : > { %v9055_v27 = vpop.eup %9054 }
0x1476   : > { %v7940_v29 = vadd.f32 -1.0, %v9055_v27 }
0x1477   : > { %v9057_v28 = vpop.eup %9056 }
0x1478   : > { %v7939_v30 = vadd.f32 -1.0, %v9057_v28  ;;  %v6055_v17 = vsel %vm6045_vm0, %v6043_v19, %v7940_v29  ;;  %v6878_v29 = vpop.permute.xlu0 %6877 }
0x147a   : > { %v6054_v31 = vsel %vm6044_vm15, %v6042_v23, %v7939_v30 }
0x147b   : > { %8784 = vmatprep.mubr.msk.f32.mxu1 %vm4976_vm13, %v6054_v31  ;;  %8789 = vmatprep.mubr.msk.f32.mxu0 %vm4976_vm13, %v6054_v31 }
0x147c   : > { %8785 = vmatmul.mubr.msk.f32.vlgmr.msra.gmra.mxu1 %vm4976_vm13, %v6055_v17  ;;  %8790 = vmatmul.mubr.msk.f32.vlgmr.msra.gmra.mxu0 %vm4976_vm13, %v6055_v17 }
0x147d   : > { %8796 = vmatprep.mubr.msk.f32.mxu1 %vm4348_vm10, %v7946_v32  ;;  %8806 = vmatprep.mubr.msk.f32.mxu0 %vm4348_vm10, %v6138_v33 }
0x153c   : > { %v8786_v34 = vpop.f32.mrf.mxu1  ;;  %v8791_v35 = vpop.f32.mrf.mxu0 }
0x153d   : > { %8792 = vmatprep.subr.mxu1 %v8791_v35  ;;  %8802 = vmatprep.subr.mxu0 %v8786_v34 }
0x153e   : > { %v6129_v36 = vpop.f32.mrf.mxu1  ;;  %v6210_v37 = vpop.f32.mrf.mxu0  ;;  %8793 = vmatpush3.msra.mxu1 %v8791_v35  ;;  %8803 = vmatpush3.msra.mxu0 %v8786_v34 }
0x153f   : > { %8794 = vmatprep.subr.mxu1 %v6210_v37  ;;  %8804 = vmatprep.subr.mxu0 %v6129_v36 }
0x1540   : > { %8795 = vmatpush3.msra.mxu1 %v6210_v37  ;;  %8805 = vmatpush3.msra.mxu0 %v6129_v36 }
0x1541   : > { %8797 = vmatmul.mubr.msk.f32.vlgmr.msra.gmra.mxu1 %vm4348_vm10, %v7947_v38  ;;  %8807 = vmatmul.mubr.msk.f32.vlgmr.msra.gmra.mxu0 %vm4348_vm10, %v6139_v39 }
0x1542   : > { %8812 = vmatprep.subr.mxu1 %v7958_v40  ;;  %8799 = vmatprep.mubr.msk.f32.mxu1 %vm4348_vm10, %v7948_v41 }
0x1543   : > { %8813 = vmatpush3.msra.mxu1 %v7958_v40  ;;  %8809 = vmatprep.mubr.msk.f32.mxu0 %vm4348_vm10, %v6140_v42 }
0x1544   : > { %8827 = vmatprep.subr.mxu1 %v8791_v35 }
0x1545   : > { %8800 = vmatmul.mubr.msk.f32.gmra.mxu1 %vm4348_vm10, %v7949_v43  ;;  %8810 = vmatmul.mubr.msk.f32.gmra.mxu0 %vm4348_vm10, %v6141_v44  ;;  %v7984_v43 = vld [vmem:[%s10498_s7 + $0x20] sm:$0xff]  ;;  %s8014_s7 = sshll.u32 %s10506_s11, 5 }
0x1546   : > { %8814 = vmatprep.mubr.msk.f32.mxu1 %vm4976_vm13, %v6054_v31  ;;  %8821 = vmatprep.mubr.msk.f32.mxu0 %vm4348_vm10, %v7961_v47  ;;  %v6979_v44 = vld [vmem:[%s10499_s0] sm:$0xff] }
0x1549   : > { %8815 = vmatmul.mubr.msk.f32.vlgmr.msra.gmra.mxu1 %vm4976_vm13, %v6055_v17  ;;  %v6873_v17 = vpop.permute.xlu1 %6872 }
0x154a   : > { %8828 = vmatpush3.msra.mxu1 %v8791_v35  ;;  %8831 = vmatprep.mubr.msk.f32.mxu1 %vm4348_vm10, %v6604_v45 }
0x154b   : > { %8829 = vmatprep.subr.mxu1 %v6210_v37 }
0x154c   : > { %8830 = vmatpush3.msra.mxu1 %v6210_v37 }
0x154d   : > { %8834 = vmatprep.subr.mxu1 %v8786_v34  ;;  %8832 = vmatmul.mubr.msk.f32.vlgmr.msra.gmra.mxu1 %vm4348_vm10, %v6605_v46 }
0x154e   : > { %8835 = vmatpush3.msra.mxu1 %v8786_v34  ;;  %8838 = vmatprep.mubr.msk.f32.mxu1 %vm4348_vm10, %v6601_v48 }
0x154f   : > { %8836 = vmatprep.subr.mxu1 %v6129_v36 }
0x1550   : > { %8837 = vmatpush3.msra.mxu1 %v6129_v36 }
0x1551   : > { %8839 = vmatmul.mubr.msk.f32.vlgmr.msra.gmra.mxu1 %vm4348_vm10, %v6602_v49  ;;  %8848 = vmatprep.subr.msk.mxu1 %vm1484_vm2, %v6894_v4  ;;  %v7985_v49 = vld [vmem:[%s10499_s0 + $0x28] sm:$0xff] }
0x1552   : > { %8849 = vmatpush3.msk.msra.mxu1 %vm1484_vm2, %v6894_v4 }
0x1601   : > { %v8798_v50 = vpop.f32.mrf.mxu1  ;;  %v8808_v51 = vpop.f32.mrf.mxu0 }
0x1602   : > { %v6405_v52 = vadd.f32 %v8808_v51, %v8798_v50  ;;  %v6980_v50 = vld [vmem:[%s10499_s0 + $0x8] sm:$0xff]  ;;  %v7986_v51 = vld [vmem:[%s10499_s0 + $0x30] sm:$0xff] }
0x1603   : > { %v6302_v53 = vpop.f32.mrf.mxu1  ;;  %v6399_v54 = vpop.f32.mrf.mxu0 }
0x1604   : > { %v6400_v55 = vadd.f32 %v6399_v54, %v6302_v53  ;;  %v7996_v53 = vld [vmem:[%s10497_s3 + $0x8] sm:$0xf]  ;;  %v7987_v54 = vld [vmem:[%s10499_s0 + $0x38] sm:$0xff] }
0x1605   : > { %v8801_v56 = vpop.f32.mrf.mxu1  ;;  %v8811_v57 = vpop.f32.mrf.mxu0 }
0x1606   : > { %v6415_v58 = vadd.f32 %v8811_v57, %v8801_v56  ;;  %v8000_v56 = vld [vmem:[%s10499_s0 + $0x40] sm:$0xff] }
0x1607   : > { %v6312_v59 = vpop.f32.mrf.mxu1  ;;  %v6409_v6 = vpop.f32.mrf.mxu0 }
0x1608   : > { %v6410_v15 = vadd.f32 %v6409_v6, %v6312_v59 }
0x1609   : > { %v8816_v60 = vpop.f32.mrf.mxu1 }
0x160a   : > { %8817 = vmatprep.subr.mxu0 %v8816_v60 }
0x160b   : > { %v6486_v61 = vpop.f32.mrf.mxu1  ;;  %8818 = vmatpush3.msra.mxu0 %v8816_v60 }
0x160c   : > { %8819 = vmatprep.subr.mxu0 %v6486_v61 }
0x160d   : > { %8820 = vmatpush3.msra.mxu0 %v6486_v61  ;;  %v8833_v5 = vpop.f32.mrf.mxu1 }
0x160e   : > { %8822 = vmatmul.mubr.msk.f32.vlgmr.msra.gmra.mxu0 %vm4348_vm10, %v7962_v62  ;;  %8841 = vmatprep.subr.mxu0 %v8816_v60 }
0x160f   : > { %8842 = vmatpush3.msra.mxu0 %v8816_v60  ;;  %8824 = vmatprep.mubr.msk.f32.mxu0 %vm4348_vm10, %v7963_v63  ;;  %v6678_v7 = vpop.f32.mrf.mxu1  ;;  %v8001_v63 = vld [vmem:[%s10499_s0 + $0x48] sm:$0xff] }
0x1610   : > { %8843 = vmatprep.subr.mxu0 %v6486_v61 }
0x1611   : > { %8844 = vmatpush3.msra.mxu0 %v6486_v61  ;;  %v8840_v10 = vpop.f32.mrf.mxu1 }
0x1612   : > { %8825 = vmatmul.mubr.msk.f32.gmra.mxu0 %vm4348_vm10, %v7964_v1  ;;  %8853 = vmatprep.subr.msk.mxu0 %vm1484_vm2, %v7980_v0  ;;  %v6765_v20 = vadd.f32 %v8840_v10, %v8833_v5  ;;  %v8002_v1 = vld [vmem:[%s10499_s0 + $0x50] sm:$0xff]  ;;  %v7459_v5 = vpop.permute.xlu1 %7458 }
0x1613   : > { %8845 = vmatprep.mubr.msk.f32.mxu0 %vm4348_vm10, %v6769_v2  ;;  %v6759_v18 = vpop.f32.mrf.mxu1  ;;  %v8003_v2 = vld [vmem:[%s10499_s0 + $0x58] sm:$0xff] }
0x1614   : > { %v6760_v24 = vadd.f32 %v6759_v18, %v6678_v7 }
0x1616   : > { %8846 = vmatmul.mubr.msk.f32.vlgmr.msra.gmra.mxu0 %vm4348_vm10, %v6770_v3 }
0x1617   : > { %8854 = vmatpush3.msk.msra.mxu0 %vm1484_vm2, %v7980_v0  ;;  %v7464_v0 = vpop.permute.xlu0 %7463 }
0x161b   : > { %v7474_v7 = vpop.permute.xlu0 %7473 }
0x16ce   : > { %v8823_v8 = vpop.f32.mrf.mxu0 }
0x16cf   : > { %v10318_v9 = vadd.f32 %v8823_v8, %v6405_v52  ;;  %v6981_v52 = vld [vmem:[%s10499_s0 + $0x10] sm:$0xff] }
0x16d0   : > { %v6578_v11 = vpop.f32.mrf.mxu0 }
0x16d1   : > { %v10320_v12 = vadd.f32 %v6578_v11, %v6400_v55  ;;  %v6982_v55 = vld [vmem:[%s10499_s0 + $0x18] sm:$0xff]  ;;  %v7469_v11 = vpop.permute.xlu1 %7468  ;;  %s1314_s0 = scalar_lea.vmem %s10500_s28, %s8014_s7 }
0x16d2   : > { %v8826_v13 = vpop.f32.mrf.mxu0 }
0x16d3   : > { %v10322_v16 = vadd.f32 %v8826_v13, %v6415_v58 }
0x16d4   : > { %v6588_v19 = vpop.f32.mrf.mxu0 }
0x16d5   : > { %v10324_v21 = vadd.f32 %v6588_v19, %v6410_v15 }
0x16d6   : > { %v8847_v23 = vpop.f32.mrf.mxu0 }
0x16d7   : > { %v6853_v25 = vadd.f32 %v8847_v23, %v6765_v20  ;;  %v7492_v23 = vpop.permute.xlu0 %7491 }
0x16d8   : > { %v6843_v26 = vpop.f32.mrf.mxu0 }
0x16d9   : > { %v6867_v27 = vmul.f32 %v6864_v14, %v6853_v25  ;;  %v6852_v28 = vadd.f32 %v6843_v26, %v6760_v24 }
0x16db   : > { %v6881_v30 = vadd.f32 %v6878_v29, %v6867_v27  ;;  %v6866_v31 = vmul.f32 %v6859_v22, %v6852_v28  ;;  %v7487_v29 = vpop.permute.xlu1 %7486 }
0x16dd   : > { %v6885_v32 = vmin.f32 %v6881_v30, 0.0  ;;  %v6880_v33 = vadd.f32 %v6873_v17, %v6866_v31  ;;  %vm6883_vm4 = vcmp.gt.f32.partialorder %v6881_v30, 0.0 }
0x16df   : > { %v6888_v34 = vmul.f32 1.442695, %v6885_v32  ;;  %v6884_v35 = vmin.f32 %v6880_v33, 0.0  ;;  %vm6882_vm1 = vcmp.gt.f32.partialorder %v6880_v33, 0.0 }
0x16e1   : > { %9058 = vpow2.f32 %v6888_v34  ;;  %v6886_v36 = vmul.f32 1.442695, %v6884_v35 }
0x16e3   : > { %9060 = vpow2.f32 %v6886_v36 }
0x16ee   : > { %v9059_v37 = vpop.eup %9058 }
0x16ef   : > { %v7976_v39 = vadd.f32 -1.0, %v9059_v37 }
0x16f0   : > { %v9061_v38 = vpop.eup %9060 }
0x16f1   : > { %v7975_v40 = vadd.f32 -1.0, %v9061_v38  ;;  %v6893_v42 = vsel %vm6883_vm4, %v6881_v30, %v7976_v39 }
0x16f3   : > { %v6892_v41 = vsel %vm6882_vm1, %v6880_v33, %v7975_v40 }
0x16f4   : > { %8850 = vmatprep.mubr.msk.f32.mxu1 %vm1480_vm3, %v6892_v41  ;;  %8855 = vmatprep.mubr.msk.f32.mxu0 %vm1480_vm3, %v6892_v41 }
0x16f5   : > { %8851 = vmatmul.mubr.msk.f32.vlgmr.msra.gmra.mxu1 %vm1480_vm3, %v6893_v42  ;;  %8856 = vmatmul.mubr.msk.f32.vlgmr.msra.gmra.mxu0 %vm1480_vm3, %v6893_v42 }
0x16f6   : > { %8862 = vmatprep.mubr.msk.f32.mxu1 %vm4348_vm10, %v7984_v43  ;;  %8872 = vmatprep.mubr.msk.f32.mxu0 %vm4348_vm10, %v6979_v44 }
0x17b5   : > { %v8852_v45 = vpop.f32.mrf.mxu1  ;;  %v8857_v46 = vpop.f32.mrf.mxu0 }
0x17b6   : > { %8858 = vmatprep.subr.mxu1 %v8857_v46  ;;  %8868 = vmatprep.subr.mxu0 %v8852_v45 }
0x17b7   : > { %v6970_v47 = vpop.f32.mrf.mxu1  ;;  %v7054_v48 = vpop.f32.mrf.mxu0  ;;  %8859 = vmatpush3.msra.mxu1 %v8857_v46  ;;  %8869 = vmatpush3.msra.mxu0 %v8852_v45 }
0x17b8   : > { %8860 = vmatprep.subr.mxu1 %v7054_v48  ;;  %8870 = vmatprep.subr.mxu0 %v6970_v47 }
0x17b9   : > { %8861 = vmatpush3.msra.mxu1 %v7054_v48  ;;  %8871 = vmatpush3.msra.mxu0 %v6970_v47 }
0x17ba   : > { %8863 = vmatmul.mubr.msk.f32.vlgmr.msra.gmra.mxu1 %vm4348_vm10, %v7985_v49  ;;  %8873 = vmatmul.mubr.msk.f32.vlgmr.msra.gmra.mxu0 %vm4348_vm10, %v6980_v50 }
0x17bb   : > { %8865 = vmatprep.mubr.msk.f32.mxu1 %vm4348_vm10, %v7986_v51  ;;  %8875 = vmatprep.mubr.msk.f32.mxu0 %vm4348_vm10, %v6981_v52 }
0x17bc   : > { %8878 = vmatprep.subr.msk.mxu1 %vm1484_vm2, %v7996_v53 }
0x17bd   : > { %8879 = vmatpush3.msk.msra.mxu1 %vm1484_vm2, %v7996_v53 }
0x17be   : > { %8866 = vmatmul.mubr.msk.f32.gmra.mxu1 %vm4348_vm10, %v7987_v54  ;;  %8876 = vmatmul.mubr.msk.f32.gmra.mxu0 %vm4348_vm10, %v6982_v55 }
0x17bf   : > { %8880 = vmatprep.mubr.msk.f32.mxu1 %vm1480_vm3, %v6892_v41  ;;  %8887 = vmatprep.mubr.msk.f32.mxu0 %vm4348_vm10, %v8000_v56  ;;  %v7497_v41 = vpop.permute.xlu1 %7496 }
0x17c2   : > { %8881 = vmatmul.mubr.msk.f32.vlgmr.msra.gmra.mxu1 %vm1480_vm3, %v6893_v42 }
0x187a   : > { %v8864_v57 = vpop.f32.mrf.mxu1  ;;  %v8874_v3 = vpop.f32.mrf.mxu0 }
0x187b   : > { %v7249_v10 = vadd.f32 %v8874_v3, %v8864_v57 }
0x187c   : > { %v7146_v58 = vpop.f32.mrf.mxu1  ;;  %v7243_v4 = vpop.f32.mrf.mxu0 }
0x187d   : > { %v7244_v14 = vadd.f32 %v7243_v4, %v7146_v58 }
0x187e   : > { %v8867_v59 = vpop.f32.mrf.mxu1  ;;  %v8877_v6 = vpop.f32.mrf.mxu0 }
0x187f   : > { %v7259_v19 = vadd.f32 %v8877_v6, %v8867_v59 }
0x1880   : > { %v7156_v60 = vpop.f32.mrf.mxu1  ;;  %v7253_v8 = vpop.f32.mrf.mxu0 }
0x1881   : > { %v7254_v25 = vadd.f32 %v7253_v8, %v7156_v60 }
0x1882   : > { %v8882_v61 = vpop.f32.mrf.mxu1 }
0x1883   : > { %8883 = vmatprep.subr.mxu0 %v8882_v61 }
0x1884   : > { %v7333_v62 = vpop.f32.mrf.mxu1  ;;  %8884 = vmatpush3.msra.mxu0 %v8882_v61 }
0x1885   : > { %8885 = vmatprep.subr.mxu0 %v7333_v62 }
0x1886   : > { %8886 = vmatpush3.msra.mxu0 %v7333_v62 }
0x1887   : > { %8888 = vmatmul.mubr.msk.f32.vlgmr.msra.gmra.mxu0 %vm4348_vm10, %v8001_v63 }
0x1888   : > { %8890 = vmatprep.mubr.msk.f32.mxu0 %vm4348_vm10, %v8002_v1 }
0x188b   : > { %8891 = vmatmul.mubr.msk.f32.gmra.mxu0 %vm4348_vm10, %v8003_v2 }
0x1947   : > { %v8889_v13 = vpop.f32.mrf.mxu0 }
0x1948   : > { %v7445_v15 = vadd.f32 %v8889_v13, %v7249_v10 }
0x1949   : > { %v7425_v18 = vpop.f32.mrf.mxu0 }
0x194a   : > { %v7449_v20 = vadd.f32 %v7445_v15, %v10318_v9  ;;  %v7444_v22 = vadd.f32 %v7425_v18, %v7244_v14  ;;  %v7502_v9 = vpop.permute.xlu0 %7501 }
0x194b   : > { %v8892_v24 = vpop.f32.mrf.mxu0 }
0x194c   : > { %v7477_v26 = vmul.f32 %v7464_v0, %v7449_v20  ;;  %v7448_v27 = vadd.f32 %v7444_v22, %v10320_v12  ;;  %v7447_v28 = vadd.f32 %v8892_v24, %v7259_v19 }
0x194d   : > { %v7435_v30 = vpop.f32.mrf.mxu0 }
0x194e   : > { %v7476_v31 = vmul.f32 %v7459_v5, %v7448_v27  ;;  %v7451_v17 = vadd.f32 %v7447_v28, %v10322_v16  ;;  %v7446_v32 = vadd.f32 %v7435_v30, %v7254_v25  ;;  %v7505_v33 = vadd.f32 %v7492_v23, %v7477_v26 }
0x1950   : > { %v7479_v34 = vmul.f32 %v7474_v7, %v7451_v17  ;;  %v7450_v35 = vadd.f32 %v7446_v32, %v10324_v21  ;;  %v7513_v36 = vmin.f32 %v7505_v33, 0.0  ;;  %v7504_v37 = vadd.f32 %v7487_v29, %v7476_v31 }
0x1951   : > { %vm7509_vm2 = vcmp.gt.f32.partialorder %v7505_v33, 0.0 }
0x1952   : > { %v7478_v38 = vmul.f32 %v7469_v11, %v7450_v35  ;;  %v7518_v39 = vmul.f32 1.442695, %v7513_v36  ;;  %v7507_v40 = vadd.f32 %v7502_v9, %v7479_v34  ;;  %v7512_v42 = vmin.f32 %v7504_v37, 0.0 }
0x1953   : > { %vm7508_vm5 = vcmp.gt.f32.partialorder %v7504_v37, 0.0 }
0x1954   : > { %9062 = vpow2.f32 %v7518_v39  ;;  %v7515_v12 = vmin.f32 %v7507_v40, 0.0  ;;  %v7506_v43 = vadd.f32 %v7497_v41, %v7478_v38  ;;  %v7516_v44 = vmul.f32 1.442695, %v7512_v42 }
0x1955   : > { %vm7511_vm6 = vcmp.gt.f32.partialorder %v7507_v40, 0.0 }
0x1956   : > { %v7522_v45 = vmul.f32 1.442695, %v7515_v12  ;;  %v7514_v46 = vmin.f32 %v7506_v43, 0.0  ;;  %9064 = vpow2.f32 %v7516_v44  ;;  %vm7510_vm7 = vcmp.gt.f32.partialorder %v7506_v43, 0.0 }
0x1958   : > { %9066 = vpow2.f32 %v7522_v45  ;;  %v7520_v16 = vmul.f32 1.442695, %v7514_v46 }
0x195a   : > { %9068 = vpow2.f32 %v7520_v16 }
0x1961   : > { %v9063_v47 = vpop.eup %9062 }
0x1962   : > { %v8009_v21 = vadd.f32 -1.0, %v9063_v47 }
0x1963   : > { %v9065_v48 = vpop.eup %9064 }
0x1964   : > { %v7529_v49 = vsel %vm7509_vm2, %v7505_v33, %v8009_v21  ;;  %v8008_v52 = vadd.f32 -1.0, %v9065_v48 }
0x1965   : > { %v9067_v50 = vpop.eup %9066  ;;  %v7535_v51 = vsel %vm1480_vm3, %v7529_v49, 0.0 }
0x1966   : > { %7536 = vadd.xlane.f32.xlu0 %v7535_v51  ;;  %v8011_v53 = vadd.f32 -1.0, %v9067_v50  ;;  %v7528_v55 = vsel %vm7508_vm5, %v7504_v37, %v8008_v52 }
0x1967   : > { %v9069_v54 = vpop.eup %9068  ;;  %v7532_v56 = vsel %vm1480_vm3, %v7528_v55, 0.0 }
0x1968   : > { %v8010_v57 = vadd.f32 -1.0, %v9069_v54  ;;  %7533 = vadd.xlane.f32.xlu1 %v7532_v56  ;;  %v7531_v58 = vsel %vm7511_vm6, %v7507_v40, %v8011_v53 }
0x1969   : > { %v7541_v61 = vsel %vm1480_vm3, %v7531_v58, 0.0 }
0x196a   : > { %v7530_v59 = vsel %vm7510_vm7, %v7506_v43, %v8010_v57 }
0x196b   : > { %v7538_v60 = vsel %vm1480_vm3, %v7530_v59, 0.0 }
0x196c   : > { %7539 = vadd.xlane.f32.xlu0 %v7538_v60  ;;  %7542 = vadd.xlane.f32.xlu1 %v7541_v61 }
0x19ef   : > { %v7537_v62 = vpop.xlane.xlu0 %7536 }
0x19f0   : > { %v7546_v63 = vmul.f32 0.25, %v7537_v62 }
0x19f1   : > { %v7534_v1 = vpop.xlane.xlu1 %7533 }
0x19f2   : > { %7551 = vst.msk [vmem:[%s1314_s0 + $0x8] sm:$0xff] %vm7549_vm8, %v7546_v63  ;;  %v7545_v2 = vmul.f32 0.25, %v7534_v1 }
0x19f4   : > { %7550 = vst.msk [vmem:[%s1314_s0] sm:$0xff] %vm7549_vm8, %v7545_v2 }
0x19f5   : > { %v7540_v3 = vpop.xlane.xlu0 %7539  ;;  %v7543_v4 = vpop.xlane.xlu1 %7542 }
0x19f6   : > { %v7547_v0 = vmul.f32 0.25, %v7540_v3  ;;  %v7548_v5 = vmul.f32 0.25, %v7543_v4 }
0x19f8   : > { %7552 = vst.msk [vmem:[%s1314_s0 + $0x10] sm:$0xff] %vm7549_vm8, %v7547_v0  ;;  %7553 = vst.msk [vmem:[%s1314_s0 + $0x18] sm:$0xff] %vm7549_vm8, %v7548_v5 }
0x19f9 PF: > { %p94_p8 = scmp.ge.s32.totalorder %s9670_s12, 4   ;;  %s10501_s28 = smov %s9292_s1 }
0x19fa   : > { %s10502_s1 = smov %s9296_s2  ;;  %s10503_s2 = smov %s9682_s10 }
0x19fb   : > { %s10504_s7 = smov %s9670_s12  ;;  %96 = sbr.rel (!%p94_p8) target bundleno = 85 (0x55), region = 336 }
0x1a00   :  { %7575 = vsyncpa [#allocation3], 1 }
0x1a01   :  { %7577 = vsyncpa [#allocation3 + $0x1], 1 }
0x1a02   :  { %7578 = vsyncpa [#allocation5], 1 }
0x1a03   :  { %7579 = vsyncpa [#allocation8], 1 }
0x1a04   :  { %7580 = vsyncpa [#allocation11], 1 }

</bundles_post_ra>
